<compile_context>
chip_gen: v6e
topology: v6e:2x2x1
jax: 0.10.0
libtpu: 0.0.40
codegen_flags: <defaults>
</compile_context>

<pallas_src>
import functools

import jax
import jax.numpy as jnp
from jax import lax
from jax.experimental import pallas as pl
from jax.experimental.pallas import tpu as pltpu

_VMEM_LIMIT = 32 * 1024 * 1024   # safe on v5e/v6e/v7x; blocks here are tiny anyway
_SQRT_HALF = 0.7071067811865476


def _erf(x):
    # Numerical-Recipes erfc approximation (|rel err| <= 1.2e-7): pure VPU
    # polynomial + one EUP exp.  Used because exact-erf lowering in Mosaic is
    # not guaranteed; error is ~3 orders of magnitude below the check tolerance.
    z = jnp.abs(x)
    t = 1.0 / (1.0 + 0.5 * z)
    poly = -1.26551223 + t * (
        1.00002368 + t * (
            0.37409196 + t * (
                0.09678418 + t * (
                    -0.18628806 + t * (
                        0.27886807 + t * (
                            -1.13520398 + t * (
                                1.48851587 + t * (
                                    -0.82215223 + t * 0.17087277))))))))
    erfc_pos = t * jnp.exp(-z * z + poly)
    erfc_val = jnp.where(x >= 0.0, erfc_pos, 2.0 - erfc_pos)
    return 1.0 - erfc_val


def _gelu_exact(v):
    return 0.5 * v * (1.0 + _erf(v * _SQRT_HALF))


# ----------------------------------------------------------------------------
# Fused kernel: pool -> MLP -> channel scale -> maps -> pad -> 7x7 conv ->
# spatial sigmoid -> final multiply, all on one VMEM-resident batch block.
# ----------------------------------------------------------------------------
def _attention_kernel(x_ref, w1t_ref, b1_ref, w2_ref, b2_ref, wb_ref,
                      out_ref, pmap_ref, roll_ref, att_ref, *, C, H, W, K):
    HW = H * W
    pad = (K - 1) // 2
    Hp = H + 2 * pad
    Wp = W + 2 * pad
    Lp = pmap_ref.shape[-1]                 # lane-padded map width (128)
    kk = K * K

    x = x_ref[0]                            # (C, HW) f32, lane-dense

    # ---- channel attention: pooled stats + tiny 2-layer MLP, all in-kernel ----
    avg = jnp.mean(x, axis=1, keepdims=True)         # (C, 1)
    mx = jnp.max(x, axis=1, keepdims=True)           # (C, 1)

    def mlp(p):                                      # p: (C, 1)
        h = jnp.sum(w1t_ref[...] * p, axis=0, keepdims=True) + b1_ref[...]   # (1, C4)
        h = _gelu_exact(h)
        return jnp.sum(w2_ref[...] * h, axis=1, keepdims=True) + b2_ref[...]  # (C, 1)

    scale = jax.nn.sigmoid(mlp(avg) + mlp(mx))       # (C, 1)

    # ---- channel-scale apply; store y immediately so it is not live (in
    #      vregs) across the whole unrolled conv section ----
    y = x * scale                                    # (C, HW)
    out_ref[0] = y

    # ---- channel-wise max / mean maps (sublane reductions, flat layout) ----
    cmax = jnp.max(y, axis=0, keepdims=True)         # (1, HW)
    cmean = jnp.mean(y, axis=0, keepdims=True)       # (1, HW)

    # ---- replicate-padded maps in VMEM scratch.  Channels stacked on the
    #      sublane axis (rows [0,Hp) = max, [Hp,2Hp) = mean) so one lane roll
    #      per kx serves both.  NOTE: lanes >= Wp are never written nor read
    #      (the conv only touches lanes < W + K - 1 = Wp), so no zero-init. ----
    for c, cm in enumerate((cmax, cmean)):           # channel 0 = max, 1 = mean
        base = c * Hp
        for h in range(H):
            row = cm[:, h * W:(h + 1) * W]           # (1, W)
            if h == 0:            # fold top replicate pad into the first store
                pmap_ref[base:base + pad + 1, pad:pad + W] = \
                    jnp.broadcast_to(row, (pad + 1, W))
            elif h == H - 1:      # fold bottom replicate pad into the last store
                pmap_ref[base + pad + H - 1:base + Hp, pad:pad + W] = \
                    jnp.broadcast_to(row, (pad + 1, W))
            else:
                pmap_ref[base + pad + h:base + pad + h + 1, pad:pad + W] = row
    # left / right replicate pads for BOTH channels with two column stores
    left = pmap_ref[:, pad:pad + 1]                  # (2*Hp, 1)
    pmap_ref[:, 0:pad] = jnp.broadcast_to(left, (2 * Hp, pad))
    right = pmap_ref[:, pad + W - 1:pad + W]         # (2*Hp, 1)
    pmap_ref[:, pad + W:Wp] = jnp.broadcast_to(right, (2 * Hp, pad))

    # ---- hoist the kx lane shifts: K rolls total (XLU slot), staged to VMEM
    #      so each conv tap is a cheap aligned load, not a value relayout ----
    pm = pmap_ref[...]                               # (2*Hp, Lp)
    for kx in range(K):
        roll_ref[kx, :, :] = pm if kx == 0 else pltpu.roll(pm, Lp - kx, 1)

    # ---- K x K conv over the 2 maps + bias, then sigmoid (VPU FMAs) ----
    acc = jnp.zeros((H, W), jnp.float32) + wb_ref[2 * kk]       # bias
    for c in range(2):
        for kx in range(K):
            for ky in range(K):
                w = wb_ref[c * kk + ky * K + kx]
                acc = acc + w * roll_ref[kx, c * Hp + ky:c * Hp + ky + H, 0:W]
    att = jax.nn.sigmoid(acc)                        # (H, W)

    # ---- flatten att to (1, HW) and finish with ONE lane-dense RMW store ----
    for h in range(H):
        att_ref[0:1, h * W:(h + 1) * W] = att[h:h + 1, :]
    out_ref[0] = out_ref[0] * att_ref[...]           # (C, HW) dense store


def fused_attention(x_flat, w1, b1, w2, b2, w_sp, b_sp, H, W):
    B, C, HW = x_flat.shape
    C4 = w1.shape[0]
    K = w_sp.shape[-1]
    pad = (K - 1) // 2
    Hp = H + 2 * pad
    Lp = 128                                  # lane-padded scratch width
    assert H * W == HW and W + 2 * pad <= Lp  # conv never reads lanes >= Wp

    w1t = jnp.asarray(w1, jnp.float32).T                  # (C, C4)
    b1r = jnp.asarray(b1, jnp.float32).reshape(1, C4)     # (1, C4)
    w2r = jnp.asarray(w2, jnp.float32)                    # (C, C4)
    b2r = jnp.asarray(b2, jnp.float32).reshape(C, 1)      # (C, 1)
    wb = jnp.concatenate([w_sp.reshape(-1),
                          b_sp.reshape(-1)]).astype(jnp.float32)   # (2*K*K + 1,)

    kern = functools.partial(_attention_kernel, C=C, H=H, W=W, K=K)
    return pl.pallas_call(
        kern,
        out_shape=jax.ShapeDtypeStruct((B, C, HW), jnp.float32),
        grid=(B,),
        in_specs=[
            pl.BlockSpec((1, C, HW), lambda b: (b, 0, 0)),          # x (streamed)
            pl.BlockSpec((C, C4), lambda b: (0, 0)),                # w1^T
            pl.BlockSpec((1, C4), lambda b: (0, 0)),                # b1
            pl.BlockSpec((C, C4), lambda b: (0, 0)),                # w2
            pl.BlockSpec((C, 1), lambda b: (0, 0)),                 # b2
            pl.BlockSpec(memory_space=pltpu.MemorySpace.SMEM),      # conv w + b
        ],
        out_specs=pl.BlockSpec((1, C, HW), lambda b: (b, 0, 0)),
        scratch_shapes=[
            pltpu.VMEM((2 * Hp, Lp), jnp.float32),      # padded max/mean maps
            pltpu.VMEM((K, 2 * Hp, Lp), jnp.float32),   # kx-rolled map staging
            pltpu.VMEM((1, HW), jnp.float32),           # flattened spatial att
        ],
        compiler_params=pltpu.CompilerParams(
            dimension_semantics=("parallel",),
            vmem_limit_bytes=_VMEM_LIMIT),
    )(x_flat, w1t, b1r, w2r, b2r, wb)


# ----------------------------------------------------------------------------
# Full AttentionBlock forward (one fused pallas_call; x touches HBM twice).
# ----------------------------------------------------------------------------
def attention_block(x, p):
    B, C, H, W = x.shape
    x_flat = x.reshape(B, C, H * W).astype(jnp.float32)   # trailing-dim fold, free
    out_flat = fused_attention(x_flat, p["w1"], p["b1"], p["w2"], p["b2"],
                               p["w_sp"], p["b_sp"], H, W)
    return out_flat.reshape(B, C, H, W)


# ----------------------------------------------------------------------------
# Deterministic parameter init (mimics PyTorch Conv2d default U(-1/sqrt(fan_in))).
# ----------------------------------------------------------------------------
def init_params(key, filters):
    c4 = filters // 4
    ks = jax.random.split(key, 6)

    def u(k, shape, fan_in):
        b = 1.0 / (fan_in ** 0.5)
        return jax.random.uniform(k, shape, jnp.float32, -b, b)

    return dict(
        w1=u(ks[0], (c4, filters), filters),     # Conv2d(C, C//4, 1) weight
        b1=u(ks[1], (c4,), filters),
        w2=u(ks[2], (filters, c4), c4),          # Conv2d(C//4, C, 1) weight
        b2=u(ks[3], (filters,), c4),
        w_sp=u(ks[4], (1, 2, 7, 7), 2 * 7 * 7),  # Conv2d(2, 1, 7) weight
        b_sp=u(ks[5], (1,), 2 * 7 * 7),
    )


# ----------------------------------------------------------------------------
# Pure-JAX reference (full f32 precision) for a numerical sanity check.
# ----------------------------------------------------------------------------
def reference(x, p):
    hi = lax.Precision.HIGHEST
    avg = jnp.mean(x, axis=(2, 3))
    mx = jnp.max(x, axis=(2, 3))

    def mlp(v):
        h = jax.nn.gelu(jnp.dot(v, p["w1"].T, precision=hi) + p["b1"],
                        approximate=False)
        return jnp.dot(h, p["w2"].T, precision=hi) + p["b2"]

    scale = jax.nn.sigmoid(mlp(avg) + mlp(mx))[:, :, None, None]
    y = x * scale
    m = jnp.concatenate([jnp.max(y, axis=1, keepdims=True),
                         jnp.mean(y, axis=1, keepdims=True)], axis=1)
    mp = jnp.pad(m, ((0, 0), (0, 0), (3, 3), (3, 3)), mode="edge")
    conv = lax.conv_general_dilated(
        mp, p["w_sp"], (1, 1), "VALID",
        dimension_numbers=("NCHW", "OIHW", "NCHW"), precision=hi)
    conv = conv + p["b_sp"].reshape(1, 1, 1, 1)
    return y * jax.nn.sigmoid(conv)


if __name__ == "__main__":
    key = jax.random.PRNGKey(0)
    kx_, kp = jax.random.split(key)
    B, filters, H, W = 2, 8, 16, 16
    x = jax.random.normal(kx_, (B, filters, H, W), jnp.float32)
    params = init_params(kp, filters)

    out = jax.block_until_ready(attention_block(x, params))
    ref = jax.block_until_ready(reference(x, params))

    assert out.shape == (B, filters, H, W)
    max_err = float(jnp.max(jnp.abs(out - ref)))
    assert max_err < 2e-4, f"mismatch vs reference: {max_err}"
    print("KERNEL_OK")
</pallas_src>

<mosaic_0001>
module attributes {stable_mosaic.version = 11 : i64} {
  func.func @_attention_kernel(%arg0: i32, %arg1: memref<1x8x256xf32, #tpu.memory_space<vmem>>, %arg2: memref<8x2xf32, #tpu.memory_space<vmem>>, %arg3: memref<1x2xf32, #tpu.memory_space<vmem>>, %arg4: memref<8x2xf32, #tpu.memory_space<vmem>>, %arg5: memref<8x1xf32, #tpu.memory_space<vmem>>, %arg6: memref<99xf32, #tpu.memory_space<smem>>, %arg7: memref<1x8x256xf32, #tpu.memory_space<vmem>>, %arg8: memref<44x128xf32, #tpu.memory_space<vmem>>, %arg9: memref<7x44x128xf32, #tpu.memory_space<vmem>>, %arg10: memref<1x256xf32, #tpu.memory_space<vmem>>) attributes {dimension_semantics = [#tpu.dimension_semantics<parallel>], iteration_bounds = array<i64: 2>, scalar_prefetch = 0 : i64, scratch_operands = 3 : i64, tpu.core_type = #tpu.core_type<tc>, window_params = [{transform_indices = @transform_0, window_bounds = array<i64: 1, 8, 256>}, {pipeline_mode = #tpu.pipeline_mode<synchronous>, transform_indices = @transform_1, window_bounds = array<i64: 8, 2>}, {pipeline_mode = #tpu.pipeline_mode<synchronous>, transform_indices = @transform_2, window_bounds = array<i64: 1, 2>}, {pipeline_mode = #tpu.pipeline_mode<synchronous>, transform_indices = @transform_3, window_bounds = array<i64: 8, 2>}, {pipeline_mode = #tpu.pipeline_mode<synchronous>, transform_indices = @transform_4, window_bounds = array<i64: 8, 1>}, {transform_indices = @transform_5, window_bounds = array<i64: 99>}, {transform_indices = @transform_6, window_bounds = array<i64: 1, 8, 256>}]} {
    %c0 = arith.constant 0 : index
    %c0_0 = arith.constant 0 : index
    %c0_1 = arith.constant 0 : index
    %0 = vector.load %arg1[%c0, %c0_0, %c0_1] : memref<1x8x256xf32, #tpu.memory_space<vmem>>, vector<1x8x256xf32>
    %1 = vector.shape_cast %0 : vector<1x8x256xf32> to vector<8x256xf32>
    %cst = arith.constant dense<0.000000e+00> : vector<8xf32>
    %2 = vector.multi_reduction <add>, %1, %cst [1] : vector<8x256xf32> to vector<8xf32>
    %3 = vector.shape_cast %2 : vector<8xf32> to vector<8x1xf32>
    %cst_2 = arith.constant 2.560000e+02 : f32
    %4 = vector.broadcast %cst_2 : f32 to vector<8x1xf32>
    %5 = arith.divf %3, %4 : vector<8x1xf32>
    %cst_3 = arith.constant dense<0xFF800000> : vector<8xf32>
    %6 = vector.multi_reduction <maximumf>, %1, %cst_3 [1] : vector<8x256xf32> to vector<8xf32>
    %7 = vector.shape_cast %6 : vector<8xf32> to vector<8x1xf32>
    %c0_4 = arith.constant 0 : index
    %c0_5 = arith.constant 0 : index
    %8 = vector.load %arg2[%c0_4, %c0_5] : memref<8x2xf32, #tpu.memory_space<vmem>>, vector<8x2xf32>
    %9 = vector.broadcast %5 : vector<8x1xf32> to vector<8x2xf32>
    %10 = arith.mulf %8, %9 : vector<8x2xf32>
    %cst_6 = arith.constant dense<0.000000e+00> : vector<2xf32>
    %11 = vector.multi_reduction <add>, %10, %cst_6 [0] : vector<8x2xf32> to vector<2xf32>
    %12 = vector.shape_cast %11 : vector<2xf32> to vector<1x2xf32>
    %c0_7 = arith.constant 0 : index
    %c0_8 = arith.constant 0 : index
    %13 = vector.load %arg3[%c0_7, %c0_8] : memref<1x2xf32, #tpu.memory_space<vmem>>, vector<1x2xf32>
    %14 = arith.addf %12, %13 : vector<1x2xf32>
    %cst_9 = arith.constant 5.000000e-01 : f32
    %15 = vector.broadcast %cst_9 : f32 to vector<1x2xf32>
    %16 = arith.mulf %15, %14 : vector<1x2xf32>
    %cst_10 = arith.constant 0.707106769 : f32
    %17 = vector.broadcast %cst_10 : f32 to vector<1x2xf32>
    %18 = arith.mulf %14, %17 : vector<1x2xf32>
    %19 = math.absf %18 : vector<1x2xf32>
    %cst_11 = arith.constant 5.000000e-01 : f32
    %20 = vector.broadcast %cst_11 : f32 to vector<1x2xf32>
    %21 = arith.mulf %20, %19 : vector<1x2xf32>
    %cst_12 = arith.constant 1.000000e+00 : f32
    %22 = vector.broadcast %cst_12 : f32 to vector<1x2xf32>
    %23 = arith.addf %22, %21 : vector<1x2xf32>
    %cst_13 = arith.constant 1.000000e+00 : f32
    %24 = vector.broadcast %cst_13 : f32 to vector<1x2xf32>
    %25 = arith.divf %24, %23 : vector<1x2xf32>
    %cst_14 = arith.constant 0.170872763 : f32
    %26 = vector.broadcast %cst_14 : f32 to vector<1x2xf32>
    %27 = arith.mulf %25, %26 : vector<1x2xf32>
    %cst_15 = arith.constant -0.822152256 : f32
    %28 = vector.broadcast %cst_15 : f32 to vector<1x2xf32>
    %29 = arith.addf %28, %27 : vector<1x2xf32>
    %30 = arith.mulf %25, %29 : vector<1x2xf32>
    %cst_16 = arith.constant 1.48851585 : f32
    %31 = vector.broadcast %cst_16 : f32 to vector<1x2xf32>
    %32 = arith.addf %31, %30 : vector<1x2xf32>
    %33 = arith.mulf %25, %32 : vector<1x2xf32>
    %cst_17 = arith.constant -1.13520396 : f32
    %34 = vector.broadcast %cst_17 : f32 to vector<1x2xf32>
    %35 = arith.addf %34, %33 : vector<1x2xf32>
    %36 = arith.mulf %25, %35 : vector<1x2xf32>
    %cst_18 = arith.constant 0.278868079 : f32
    %37 = vector.broadcast %cst_18 : f32 to vector<1x2xf32>
    %38 = arith.addf %37, %36 : vector<1x2xf32>
    %39 = arith.mulf %25, %38 : vector<1x2xf32>
    %cst_19 = arith.constant -0.186288059 : f32
    %40 = vector.broadcast %cst_19 : f32 to vector<1x2xf32>
    %41 = arith.addf %40, %39 : vector<1x2xf32>
    %42 = arith.mulf %25, %41 : vector<1x2xf32>
    %cst_20 = arith.constant 0.0967841818 : f32
    %43 = vector.broadcast %cst_20 : f32 to vector<1x2xf32>
    %44 = arith.addf %43, %42 : vector<1x2xf32>
    %45 = arith.mulf %25, %44 : vector<1x2xf32>
    %cst_21 = arith.constant 0.374091953 : f32
    %46 = vector.broadcast %cst_21 : f32 to vector<1x2xf32>
    %47 = arith.addf %46, %45 : vector<1x2xf32>
    %48 = arith.mulf %25, %47 : vector<1x2xf32>
    %cst_22 = arith.constant 1.00002372 : f32
    %49 = vector.broadcast %cst_22 : f32 to vector<1x2xf32>
    %50 = arith.addf %49, %48 : vector<1x2xf32>
    %51 = arith.mulf %25, %50 : vector<1x2xf32>
    %cst_23 = arith.constant -1.26551223 : f32
    %52 = vector.broadcast %cst_23 : f32 to vector<1x2xf32>
    %53 = arith.addf %52, %51 : vector<1x2xf32>
    %cst_24 = arith.constant 0.000000e+00 : f32
    %54 = vector.broadcast %cst_24 : f32 to vector<1x2xf32>
    %55 = arith.subf %54, %19 : vector<1x2xf32>
    %56 = arith.mulf %55, %19 : vector<1x2xf32>
    %57 = arith.addf %56, %53 : vector<1x2xf32>
    %58 = math.exp %57 : vector<1x2xf32>
    %59 = arith.mulf %25, %58 : vector<1x2xf32>
    %cst_25 = arith.constant 0.000000e+00 : f32
    %60 = vector.broadcast %cst_25 : f32 to vector<1x2xf32>
    %61 = arith.cmpf oge, %18, %60 : vector<1x2xf32>
    %cst_26 = arith.constant 2.000000e+00 : f32
    %62 = vector.broadcast %cst_26 : f32 to vector<1x2xf32>
    %63 = arith.subf %62, %59 : vector<1x2xf32>
    %64 = arith.select %61, %59, %63 : vector<1x2xi1>, vector<1x2xf32>
    %cst_27 = arith.constant 1.000000e+00 : f32
    %65 = vector.broadcast %cst_27 : f32 to vector<1x2xf32>
    %66 = arith.subf %65, %64 : vector<1x2xf32>
    %cst_28 = arith.constant 1.000000e+00 : f32
    %67 = vector.broadcast %cst_28 : f32 to vector<1x2xf32>
    %68 = arith.addf %67, %66 : vector<1x2xf32>
    %69 = arith.mulf %16, %68 : vector<1x2xf32>
    %c0_29 = arith.constant 0 : index
    %c0_30 = arith.constant 0 : index
    %70 = vector.load %arg4[%c0_29, %c0_30] : memref<8x2xf32, #tpu.memory_space<vmem>>, vector<8x2xf32>
    %71 = vector.broadcast %69 : vector<1x2xf32> to vector<8x2xf32>
    %72 = arith.mulf %70, %71 : vector<8x2xf32>
    %cst_31 = arith.constant dense<0.000000e+00> : vector<8xf32>
    %73 = vector.multi_reduction <add>, %72, %cst_31 [1] : vector<8x2xf32> to vector<8xf32>
    %74 = vector.shape_cast %73 : vector<8xf32> to vector<8x1xf32>
    %c0_32 = arith.constant 0 : index
    %c0_33 = arith.constant 0 : index
    %75 = vector.load %arg5[%c0_32, %c0_33] : memref<8x1xf32, #tpu.memory_space<vmem>>, vector<8x1xf32>
    %76 = arith.addf %74, %75 : vector<8x1xf32>
    %c0_34 = arith.constant 0 : index
    %c0_35 = arith.constant 0 : index
    %77 = vector.load %arg2[%c0_34, %c0_35] : memref<8x2xf32, #tpu.memory_space<vmem>>, vector<8x2xf32>
    %78 = vector.broadcast %7 : vector<8x1xf32> to vector<8x2xf32>
    %79 = arith.mulf %77, %78 : vector<8x2xf32>
    %cst_36 = arith.constant dense<0.000000e+00> : vector<2xf32>
    %80 = vector.multi_reduction <add>, %79, %cst_36 [0] : vector<8x2xf32> to vector<2xf32>
    %81 = vector.shape_cast %80 : vector<2xf32> to vector<1x2xf32>
    %c0_37 = arith.constant 0 : index
    %c0_38 = arith.constant 0 : index
    %82 = vector.load %arg3[%c0_37, %c0_38] : memref<1x2xf32, #tpu.memory_space<vmem>>, vector<1x2xf32>
    %83 = arith.addf %81, %82 : vector<1x2xf32>
    %cst_39 = arith.constant 5.000000e-01 : f32
    %84 = vector.broadcast %cst_39 : f32 to vector<1x2xf32>
    %85 = arith.mulf %84, %83 : vector<1x2xf32>
    %cst_40 = arith.constant 0.707106769 : f32
    %86 = vector.broadcast %cst_40 : f32 to vector<1x2xf32>
    %87 = arith.mulf %83, %86 : vector<1x2xf32>
    %88 = math.absf %87 : vector<1x2xf32>
    %cst_41 = arith.constant 5.000000e-01 : f32
    %89 = vector.broadcast %cst_41 : f32 to vector<1x2xf32>
    %90 = arith.mulf %89, %88 : vector<1x2xf32>
    %cst_42 = arith.constant 1.000000e+00 : f32
    %91 = vector.broadcast %cst_42 : f32 to vector<1x2xf32>
    %92 = arith.addf %91, %90 : vector<1x2xf32>
    %cst_43 = arith.constant 1.000000e+00 : f32
    %93 = vector.broadcast %cst_43 : f32 to vector<1x2xf32>
    %94 = arith.divf %93, %92 : vector<1x2xf32>
    %cst_44 = arith.constant 0.170872763 : f32
    %95 = vector.broadcast %cst_44 : f32 to vector<1x2xf32>
    %96 = arith.mulf %94, %95 : vector<1x2xf32>
    %cst_45 = arith.constant -0.822152256 : f32
    %97 = vector.broadcast %cst_45 : f32 to vector<1x2xf32>
    %98 = arith.addf %97, %96 : vector<1x2xf32>
    %99 = arith.mulf %94, %98 : vector<1x2xf32>
    %cst_46 = arith.constant 1.48851585 : f32
    %100 = vector.broadcast %cst_46 : f32 to vector<1x2xf32>
    %101 = arith.addf %100, %99 : vector<1x2xf32>
    %102 = arith.mulf %94, %101 : vector<1x2xf32>
    %cst_47 = arith.constant -1.13520396 : f32
    %103 = vector.broadcast %cst_47 : f32 to vector<1x2xf32>
    %104 = arith.addf %103, %102 : vector<1x2xf32>
    %105 = arith.mulf %94, %104 : vector<1x2xf32>
    %cst_48 = arith.constant 0.278868079 : f32
    %106 = vector.broadcast %cst_48 : f32 to vector<1x2xf32>
    %107 = arith.addf %106, %105 : vector<1x2xf32>
    %108 = arith.mulf %94, %107 : vector<1x2xf32>
    %cst_49 = arith.constant -0.186288059 : f32
    %109 = vector.broadcast %cst_49 : f32 to vector<1x2xf32>
    %110 = arith.addf %109, %108 : vector<1x2xf32>
    %111 = arith.mulf %94, %110 : vector<1x2xf32>
    %cst_50 = arith.constant 0.0967841818 : f32
    %112 = vector.broadcast %cst_50 : f32 to vector<1x2xf32>
    %113 = arith.addf %112, %111 : vector<1x2xf32>
    %114 = arith.mulf %94, %113 : vector<1x2xf32>
    %cst_51 = arith.constant 0.374091953 : f32
    %115 = vector.broadcast %cst_51 : f32 to vector<1x2xf32>
    %116 = arith.addf %115, %114 : vector<1x2xf32>
    %117 = arith.mulf %94, %116 : vector<1x2xf32>
    %cst_52 = arith.constant 1.00002372 : f32
    %118 = vector.broadcast %cst_52 : f32 to vector<1x2xf32>
    %119 = arith.addf %118, %117 : vector<1x2xf32>
    %120 = arith.mulf %94, %119 : vector<1x2xf32>
    %cst_53 = arith.constant -1.26551223 : f32
    %121 = vector.broadcast %cst_53 : f32 to vector<1x2xf32>
    %122 = arith.addf %121, %120 : vector<1x2xf32>
    %cst_54 = arith.constant 0.000000e+00 : f32
    %123 = vector.broadcast %cst_54 : f32 to vector<1x2xf32>
    %124 = arith.subf %123, %88 : vector<1x2xf32>
    %125 = arith.mulf %124, %88 : vector<1x2xf32>
    %126 = arith.addf %125, %122 : vector<1x2xf32>
    %127 = math.exp %126 : vector<1x2xf32>
    %128 = arith.mulf %94, %127 : vector<1x2xf32>
    %cst_55 = arith.constant 0.000000e+00 : f32
    %129 = vector.broadcast %cst_55 : f32 to vector<1x2xf32>
    %130 = arith.cmpf oge, %87, %129 : vector<1x2xf32>
    %cst_56 = arith.constant 2.000000e+00 : f32
    %131 = vector.broadcast %cst_56 : f32 to vector<1x2xf32>
    %132 = arith.subf %131, %128 : vector<1x2xf32>
    %133 = arith.select %130, %128, %132 : vector<1x2xi1>, vector<1x2xf32>
    %cst_57 = arith.constant 1.000000e+00 : f32
    %134 = vector.broadcast %cst_57 : f32 to vector<1x2xf32>
    %135 = arith.subf %134, %133 : vector<1x2xf32>
    %cst_58 = arith.constant 1.000000e+00 : f32
    %136 = vector.broadcast %cst_58 : f32 to vector<1x2xf32>
    %137 = arith.addf %136, %135 : vector<1x2xf32>
    %138 = arith.mulf %85, %137 : vector<1x2xf32>
    %c0_59 = arith.constant 0 : index
    %c0_60 = arith.constant 0 : index
    %139 = vector.load %arg4[%c0_59, %c0_60] : memref<8x2xf32, #tpu.memory_space<vmem>>, vector<8x2xf32>
    %140 = vector.broadcast %138 : vector<1x2xf32> to vector<8x2xf32>
    %141 = arith.mulf %139, %140 : vector<8x2xf32>
    %cst_61 = arith.constant dense<0.000000e+00> : vector<8xf32>
    %142 = vector.multi_reduction <add>, %141, %cst_61 [1] : vector<8x2xf32> to vector<8xf32>
    %143 = vector.shape_cast %142 : vector<8xf32> to vector<8x1xf32>
    %c0_62 = arith.constant 0 : index
    %c0_63 = arith.constant 0 : index
    %144 = vector.load %arg5[%c0_62, %c0_63] : memref<8x1xf32, #tpu.memory_space<vmem>>, vector<8x1xf32>
    %145 = arith.addf %143, %144 : vector<8x1xf32>
    %146 = arith.addf %76, %145 : vector<8x1xf32>
    %147 = arith.negf %146 : vector<8x1xf32>
    %148 = math.exp %147 : vector<8x1xf32>
    %cst_64 = arith.constant 1.000000e+00 : f32
    %149 = vector.broadcast %cst_64 : f32 to vector<8x1xf32>
    %150 = arith.addf %149, %148 : vector<8x1xf32>
    %151 = arith.divf %149, %150 : vector<8x1xf32>
    %152 = vector.broadcast %151 : vector<8x1xf32> to vector<8x256xf32>
    %153 = arith.mulf %1, %152 : vector<8x256xf32>
    %c0_65 = arith.constant 0 : index
    %c0_66 = arith.constant 0 : index
    %c0_67 = arith.constant 0 : index
    %154 = vector.load %arg7[%c0_65, %c0_66, %c0_67] : memref<1x8x256xf32, #tpu.memory_space<vmem>>, vector<1x8x256xf32>
    %155 = vector.shape_cast %154 : vector<1x8x256xf32> to vector<8x256xf32>
    %156 = vector.shape_cast %153 : vector<8x256xf32> to vector<1x8x256xf32>
    tpu.vector_store %arg7[%c0_65, %c0_66, %c0_67], %156 {strides = array<i32>} : memref<1x8x256xf32, #tpu.memory_space<vmem>>, vector<1x8x256xf32>,
    %cst_68 = arith.constant dense<0xFF800000> : vector<256xf32>
    %157 = vector.multi_reduction <maximumf>, %153, %cst_68 [0] : vector<8x256xf32> to vector<256xf32>
    %158 = vector.shape_cast %157 : vector<256xf32> to vector<1x256xf32>
    %cst_69 = arith.constant dense<0.000000e+00> : vector<256xf32>
    %159 = vector.multi_reduction <add>, %153, %cst_69 [0] : vector<8x256xf32> to vector<256xf32>
    %160 = vector.shape_cast %159 : vector<256xf32> to vector<1x256xf32>
    %cst_70 = arith.constant 8.000000e+00 : f32
    %161 = vector.broadcast %cst_70 : f32 to vector<1x256xf32>
    %162 = arith.divf %160, %161 : vector<1x256xf32>
    %163 = vector.extract_strided_slice %158 {offsets = [0, 0], sizes = [1, 16], strides = [1, 1]} : vector<1x256xf32> to vector<1x16xf32>
    %164 = vector.shape_cast %163 : vector<1x16xf32> to vector<1x16xf32>
    %165 = vector.broadcast %164 : vector<1x16xf32> to vector<4x16xf32>
    %c0_71 = arith.constant 0 : index
    %c3 = arith.constant 3 : index
    %166 = vector.load %arg8[%c0_71, %c3] : memref<44x128xf32, #tpu.memory_space<vmem>>, vector<4x16xf32>
    tpu.vector_store %arg8[%c0_71, %c3], %165 {strides = array<i32>} : memref<44x128xf32, #tpu.memory_space<vmem>>, vector<4x16xf32>,
    %167 = vector.extract_strided_slice %158 {offsets = [0, 16], sizes = [1, 16], strides = [1, 1]} : vector<1x256xf32> to vector<1x16xf32>
    %c4 = arith.constant 4 : index
    %c3_72 = arith.constant 3 : index
    %168 = vector.load %arg8[%c4, %c3_72] : memref<44x128xf32, #tpu.memory_space<vmem>>, vector<1x16xf32>
    tpu.vector_store %arg8[%c4, %c3_72], %167 {strides = array<i32>} : memref<44x128xf32, #tpu.memory_space<vmem>>, vector<1x16xf32>,
    %169 = vector.extract_strided_slice %158 {offsets = [0, 32], sizes = [1, 16], strides = [1, 1]} : vector<1x256xf32> to vector<1x16xf32>
    %c5 = arith.constant 5 : index
    %c3_73 = arith.constant 3 : index
    %170 = vector.load %arg8[%c5, %c3_73] : memref<44x128xf32, #tpu.memory_space<vmem>>, vector<1x16xf32>
    tpu.vector_store %arg8[%c5, %c3_73], %169 {strides = array<i32>} : memref<44x128xf32, #tpu.memory_space<vmem>>, vector<1x16xf32>,
    %171 = vector.extract_strided_slice %158 {offsets = [0, 48], sizes = [1, 16], strides = [1, 1]} : vector<1x256xf32> to vector<1x16xf32>
    %c6 = arith.constant 6 : index
    %c3_74 = arith.constant 3 : index
    %172 = vector.load %arg8[%c6, %c3_74] : memref<44x128xf32, #tpu.memory_space<vmem>>, vector<1x16xf32>
    tpu.vector_store %arg8[%c6, %c3_74], %171 {strides = array<i32>} : memref<44x128xf32, #tpu.memory_space<vmem>>, vector<1x16xf32>,
    %173 = vector.extract_strided_slice %158 {offsets = [0, 64], sizes = [1, 16], strides = [1, 1]} : vector<1x256xf32> to vector<1x16xf32>
    %c7 = arith.constant 7 : index
    %c3_75 = arith.constant 3 : index
    %174 = vector.load %arg8[%c7, %c3_75] : memref<44x128xf32, #tpu.memory_space<vmem>>, vector<1x16xf32>
    tpu.vector_store %arg8[%c7, %c3_75], %173 {strides = array<i32>} : memref<44x128xf32, #tpu.memory_space<vmem>>, vector<1x16xf32>,
    %175 = vector.extract_strided_slice %158 {offsets = [0, 80], sizes = [1, 16], strides = [1, 1]} : vector<1x256xf32> to vector<1x16xf32>
    %c8 = arith.constant 8 : index
    %c3_76 = arith.constant 3 : index
    %176 = vector.load %arg8[%c8, %c3_76] : memref<44x128xf32, #tpu.memory_space<vmem>>, vector<1x16xf32>
    tpu.vector_store %arg8[%c8, %c3_76], %175 {strides = array<i32>} : memref<44x128xf32, #tpu.memory_space<vmem>>, vector<1x16xf32>,
    %177 = vector.extract_strided_slice %158 {offsets = [0, 96], sizes = [1, 16], strides = [1, 1]} : vector<1x256xf32> to vector<1x16xf32>
    %c9 = arith.constant 9 : index
    %c3_77 = arith.constant 3 : index
    %178 = vector.load %arg8[%c9, %c3_77] : memref<44x128xf32, #tpu.memory_space<vmem>>, vector<1x16xf32>
    tpu.vector_store %arg8[%c9, %c3_77], %177 {strides = array<i32>} : memref<44x128xf32, #tpu.memory_space<vmem>>, vector<1x16xf32>,
    %179 = vector.extract_strided_slice %158 {offsets = [0, 112], sizes = [1, 16], strides = [1, 1]} : vector<1x256xf32> to vector<1x16xf32>
    %c10 = arith.constant 10 : index
    %c3_78 = arith.constant 3 : index
    %180 = vector.load %arg8[%c10, %c3_78] : memref<44x128xf32, #tpu.memory_space<vmem>>, vector<1x16xf32>
    tpu.vector_store %arg8[%c10, %c3_78], %179 {strides = array<i32>} : memref<44x128xf32, #tpu.memory_space<vmem>>, vector<1x16xf32>,
    %181 = vector.extract_strided_slice %158 {offsets = [0, 128], sizes = [1, 16], strides = [1, 1]} : vector<1x256xf32> to vector<1x16xf32>
    %c11 = arith.constant 11 : index
    %c3_79 = arith.constant 3 : index
    %182 = vector.load %arg8[%c11, %c3_79] : memref<44x128xf32, #tpu.memory_space<vmem>>, vector<1x16xf32>
    tpu.vector_store %arg8[%c11, %c3_79], %181 {strides = array<i32>} : memref<44x128xf32, #tpu.memory_space<vmem>>, vector<1x16xf32>,
    %183 = vector.extract_strided_slice %158 {offsets = [0, 144], sizes = [1, 16], strides = [1, 1]} : vector<1x256xf32> to vector<1x16xf32>
    %c12 = arith.constant 12 : index
    %c3_80 = arith.constant 3 : index
    %184 = vector.load %arg8[%c12, %c3_80] : memref<44x128xf32, #tpu.memory_space<vmem>>, vector<1x16xf32>
    tpu.vector_store %arg8[%c12, %c3_80], %183 {strides = array<i32>} : memref<44x128xf32, #tpu.memory_space<vmem>>, vector<1x16xf32>,
    %185 = vector.extract_strided_slice %158 {offsets = [0, 160], sizes = [1, 16], strides = [1, 1]} : vector<1x256xf32> to vector<1x16xf32>
    %c13 = arith.constant 13 : index
    %c3_81 = arith.constant 3 : index
    %186 = vector.load %arg8[%c13, %c3_81] : memref<44x128xf32, #tpu.memory_space<vmem>>, vector<1x16xf32>
    tpu.vector_store %arg8[%c13, %c3_81], %185 {strides = array<i32>} : memref<44x128xf32, #tpu.memory_space<vmem>>, vector<1x16xf32>,
    %187 = vector.extract_strided_slice %158 {offsets = [0, 176], sizes = [1, 16], strides = [1, 1]} : vector<1x256xf32> to vector<1x16xf32>
    %c14 = arith.constant 14 : index
    %c3_82 = arith.constant 3 : index
    %188 = vector.load %arg8[%c14, %c3_82] : memref<44x128xf32, #tpu.memory_space<vmem>>, vector<1x16xf32>
    tpu.vector_store %arg8[%c14, %c3_82], %187 {strides = array<i32>} : memref<44x128xf32, #tpu.memory_space<vmem>>, vector<1x16xf32>,
    %189 = vector.extract_strided_slice %158 {offsets = [0, 192], sizes = [1, 16], strides = [1, 1]} : vector<1x256xf32> to vector<1x16xf32>
    %c15 = arith.constant 15 : index
    %c3_83 = arith.constant 3 : index
    %190 = vector.load %arg8[%c15, %c3_83] : memref<44x128xf32, #tpu.memory_space<vmem>>, vector<1x16xf32>
    tpu.vector_store %arg8[%c15, %c3_83], %189 {strides = array<i32>} : memref<44x128xf32, #tpu.memory_space<vmem>>, vector<1x16xf32>,
    %191 = vector.extract_strided_slice %158 {offsets = [0, 208], sizes = [1, 16], strides = [1, 1]} : vector<1x256xf32> to vector<1x16xf32>
    %c16 = arith.constant 16 : index
    %c3_84 = arith.constant 3 : index
    %192 = vector.load %arg8[%c16, %c3_84] : memref<44x128xf32, #tpu.memory_space<vmem>>, vector<1x16xf32>
    tpu.vector_store %arg8[%c16, %c3_84], %191 {strides = array<i32>} : memref<44x128xf32, #tpu.memory_space<vmem>>, vector<1x16xf32>,
    %193 = vector.extract_strided_slice %158 {offsets = [0, 224], sizes = [1, 16], strides = [1, 1]} : vector<1x256xf32> to vector<1x16xf32>
    %c17 = arith.constant 17 : index
    %c3_85 = arith.constant 3 : index
    %194 = vector.load %arg8[%c17, %c3_85] : memref<44x128xf32, #tpu.memory_space<vmem>>, vector<1x16xf32>
    tpu.vector_store %arg8[%c17, %c3_85], %193 {strides = array<i32>} : memref<44x128xf32, #tpu.memory_space<vmem>>, vector<1x16xf32>,
    %195 = vector.extract_strided_slice %158 {offsets = [0, 240], sizes = [1, 16], strides = [1, 1]} : vector<1x256xf32> to vector<1x16xf32>
    %196 = vector.shape_cast %195 : vector<1x16xf32> to vector<1x16xf32>
    %197 = vector.broadcast %196 : vector<1x16xf32> to vector<4x16xf32>
    %c18 = arith.constant 18 : index
    %c3_86 = arith.constant 3 : index
    %198 = vector.load %arg8[%c18, %c3_86] : memref<44x128xf32, #tpu.memory_space<vmem>>, vector<4x16xf32>
    tpu.vector_store %arg8[%c18, %c3_86], %197 {strides = array<i32>} : memref<44x128xf32, #tpu.memory_space<vmem>>, vector<4x16xf32>,
    %199 = vector.extract_strided_slice %162 {offsets = [0, 0], sizes = [1, 16], strides = [1, 1]} : vector<1x256xf32> to vector<1x16xf32>
    %200 = vector.shape_cast %199 : vector<1x16xf32> to vector<1x16xf32>
    %201 = vector.broadcast %200 : vector<1x16xf32> to vector<4x16xf32>
    %c22 = arith.constant 22 : index
    %c3_87 = arith.constant 3 : index
    %202 = vector.load %arg8[%c22, %c3_87] : memref<44x128xf32, #tpu.memory_space<vmem>>, vector<4x16xf32>
    tpu.vector_store %arg8[%c22, %c3_87], %201 {strides = array<i32>} : memref<44x128xf32, #tpu.memory_space<vmem>>, vector<4x16xf32>,
    %203 = vector.extract_strided_slice %162 {offsets = [0, 16], sizes = [1, 16], strides = [1, 1]} : vector<1x256xf32> to vector<1x16xf32>
    %c26 = arith.constant 26 : index
    %c3_88 = arith.constant 3 : index
    %204 = vector.load %arg8[%c26, %c3_88] : memref<44x128xf32, #tpu.memory_space<vmem>>, vector<1x16xf32>
    tpu.vector_store %arg8[%c26, %c3_88], %203 {strides = array<i32>} : memref<44x128xf32, #tpu.memory_space<vmem>>, vector<1x16xf32>,
    %205 = vector.extract_strided_slice %162 {offsets = [0, 32], sizes = [1, 16], strides = [1, 1]} : vector<1x256xf32> to vector<1x16xf32>
    %c27 = arith.constant 27 : index
    %c3_89 = arith.constant 3 : index
    %206 = vector.load %arg8[%c27, %c3_89] : memref<44x128xf32, #tpu.memory_space<vmem>>, vector<1x16xf32>
    tpu.vector_store %arg8[%c27, %c3_89], %205 {strides = array<i32>} : memref<44x128xf32, #tpu.memory_space<vmem>>, vector<1x16xf32>,
    %207 = vector.extract_strided_slice %162 {offsets = [0, 48], sizes = [1, 16], strides = [1, 1]} : vector<1x256xf32> to vector<1x16xf32>
    %c28 = arith.constant 28 : index
    %c3_90 = arith.constant 3 : index
    %208 = vector.load %arg8[%c28, %c3_90] : memref<44x128xf32, #tpu.memory_space<vmem>>, vector<1x16xf32>
    tpu.vector_store %arg8[%c28, %c3_90], %207 {strides = array<i32>} : memref<44x128xf32, #tpu.memory_space<vmem>>, vector<1x16xf32>,
    %209 = vector.extract_strided_slice %162 {offsets = [0, 64], sizes = [1, 16], strides = [1, 1]} : vector<1x256xf32> to vector<1x16xf32>
    %c29 = arith.constant 29 : index
    %c3_91 = arith.constant 3 : index
    %210 = vector.load %arg8[%c29, %c3_91] : memref<44x128xf32, #tpu.memory_space<vmem>>, vector<1x16xf32>
    tpu.vector_store %arg8[%c29, %c3_91], %209 {strides = array<i32>} : memref<44x128xf32, #tpu.memory_space<vmem>>, vector<1x16xf32>,
    %211 = vector.extract_strided_slice %162 {offsets = [0, 80], sizes = [1, 16], strides = [1, 1]} : vector<1x256xf32> to vector<1x16xf32>
    %c30 = arith.constant 30 : index
    %c3_92 = arith.constant 3 : index
    %212 = vector.load %arg8[%c30, %c3_92] : memref<44x128xf32, #tpu.memory_space<vmem>>, vector<1x16xf32>
    tpu.vector_store %arg8[%c30, %c3_92], %211 {strides = array<i32>} : memref<44x128xf32, #tpu.memory_space<vmem>>, vector<1x16xf32>,
    %213 = vector.extract_strided_slice %162 {offsets = [0, 96], sizes = [1, 16], strides = [1, 1]} : vector<1x256xf32> to vector<1x16xf32>
    %c31 = arith.constant 31 : index
    %c3_93 = arith.constant 3 : index
    %214 = vector.load %arg8[%c31, %c3_93] : memref<44x128xf32, #tpu.memory_space<vmem>>, vector<1x16xf32>
    tpu.vector_store %arg8[%c31, %c3_93], %213 {strides = array<i32>} : memref<44x128xf32, #tpu.memory_space<vmem>>, vector<1x16xf32>,
    %215 = vector.extract_strided_slice %162 {offsets = [0, 112], sizes = [1, 16], strides = [1, 1]} : vector<1x256xf32> to vector<1x16xf32>
    %c32 = arith.constant 32 : index
    %c3_94 = arith.constant 3 : index
    %216 = vector.load %arg8[%c32, %c3_94] : memref<44x128xf32, #tpu.memory_space<vmem>>, vector<1x16xf32>
    tpu.vector_store %arg8[%c32, %c3_94], %215 {strides = array<i32>} : memref<44x128xf32, #tpu.memory_space<vmem>>, vector<1x16xf32>,
    %217 = vector.extract_strided_slice %162 {offsets = [0, 128], sizes = [1, 16], strides = [1, 1]} : vector<1x256xf32> to vector<1x16xf32>
    %c33 = arith.constant 33 : index
    %c3_95 = arith.constant 3 : index
    %218 = vector.load %arg8[%c33, %c3_95] : memref<44x128xf32, #tpu.memory_space<vmem>>, vector<1x16xf32>
    tpu.vector_store %arg8[%c33, %c3_95], %217 {strides = array<i32>} : memref<44x128xf32, #tpu.memory_space<vmem>>, vector<1x16xf32>,
    %219 = vector.extract_strided_slice %162 {offsets = [0, 144], sizes = [1, 16], strides = [1, 1]} : vector<1x256xf32> to vector<1x16xf32>
    %c34 = arith.constant 34 : index
    %c3_96 = arith.constant 3 : index
    %220 = vector.load %arg8[%c34, %c3_96] : memref<44x128xf32, #tpu.memory_space<vmem>>, vector<1x16xf32>
    tpu.vector_store %arg8[%c34, %c3_96], %219 {strides = array<i32>} : memref<44x128xf32, #tpu.memory_space<vmem>>, vector<1x16xf32>,
    %221 = vector.extract_strided_slice %162 {offsets = [0, 160], sizes = [1, 16], strides = [1, 1]} : vector<1x256xf32> to vector<1x16xf32>
    %c35 = arith.constant 35 : index
    %c3_97 = arith.constant 3 : index
    %222 = vector.load %arg8[%c35, %c3_97] : memref<44x128xf32, #tpu.memory_space<vmem>>, vector<1x16xf32>
    tpu.vector_store %arg8[%c35, %c3_97], %221 {strides = array<i32>} : memref<44x128xf32, #tpu.memory_space<vmem>>, vector<1x16xf32>,
    %223 = vector.extract_strided_slice %162 {offsets = [0, 176], sizes = [1, 16], strides = [1, 1]} : vector<1x256xf32> to vector<1x16xf32>
    %c36 = arith.constant 36 : index
    %c3_98 = arith.constant 3 : index
    %224 = vector.load %arg8[%c36, %c3_98] : memref<44x128xf32, #tpu.memory_space<vmem>>, vector<1x16xf32>
    tpu.vector_store %arg8[%c36, %c3_98], %223 {strides = array<i32>} : memref<44x128xf32, #tpu.memory_space<vmem>>, vector<1x16xf32>,
    %225 = vector.extract_strided_slice %162 {offsets = [0, 192], sizes = [1, 16], strides = [1, 1]} : vector<1x256xf32> to vector<1x16xf32>
    %c37 = arith.constant 37 : index
    %c3_99 = arith.constant 3 : index
    %226 = vector.load %arg8[%c37, %c3_99] : memref<44x128xf32, #tpu.memory_space<vmem>>, vector<1x16xf32>
    tpu.vector_store %arg8[%c37, %c3_99], %225 {strides = array<i32>} : memref<44x128xf32, #tpu.memory_space<vmem>>, vector<1x16xf32>,
    %227 = vector.extract_strided_slice %162 {offsets = [0, 208], sizes = [1, 16], strides = [1, 1]} : vector<1x256xf32> to vector<1x16xf32>
    %c38 = arith.constant 38 : index
    %c3_100 = arith.constant 3 : index
    %228 = vector.load %arg8[%c38, %c3_100] : memref<44x128xf32, #tpu.memory_space<vmem>>, vector<1x16xf32>
    tpu.vector_store %arg8[%c38, %c3_100], %227 {strides = array<i32>} : memref<44x128xf32, #tpu.memory_space<vmem>>, vector<1x16xf32>,
    %229 = vector.extract_strided_slice %162 {offsets = [0, 224], sizes = [1, 16], strides = [1, 1]} : vector<1x256xf32> to vector<1x16xf32>
    %c39 = arith.constant 39 : index
    %c3_101 = arith.constant 3 : index
    %230 = vector.load %arg8[%c39, %c3_101] : memref<44x128xf32, #tpu.memory_space<vmem>>, vector<1x16xf32>
    tpu.vector_store %arg8[%c39, %c3_101], %229 {strides = array<i32>} : memref<44x128xf32, #tpu.memory_space<vmem>>, vector<1x16xf32>,
    %231 = vector.extract_strided_slice %162 {offsets = [0, 240], sizes = [1, 16], strides = [1, 1]} : vector<1x256xf32> to vector<1x16xf32>
    %232 = vector.shape_cast %231 : vector<1x16xf32> to vector<1x16xf32>
    %233 = vector.broadcast %232 : vector<1x16xf32> to vector<4x16xf32>
    %c40 = arith.constant 40 : index
    %c3_102 = arith.constant 3 : index
    %234 = vector.load %arg8[%c40, %c3_102] : memref<44x128xf32, #tpu.memory_space<vmem>>, vector<4x16xf32>
    tpu.vector_store %arg8[%c40, %c3_102], %233 {strides = array<i32>} : memref<44x128xf32, #tpu.memory_space<vmem>>, vector<4x16xf32>,
    %c0_103 = arith.constant 0 : index
    %c3_104 = arith.constant 3 : index
    %235 = vector.load %arg8[%c0_103, %c3_104] : memref<44x128xf32, #tpu.memory_space<vmem>>, vector<44x1xf32>
    %236 = vector.shape_cast %235 : vector<44x1xf32> to vector<44x1xf32>
    %237 = vector.broadcast %236 : vector<44x1xf32> to vector<44x3xf32>
    %c0_105 = arith.constant 0 : index
    %c0_106 = arith.constant 0 : index
    %238 = vector.load %arg8[%c0_105, %c0_106] : memref<44x128xf32, #tpu.memory_space<vmem>>, vector<44x3xf32>
    tpu.vector_store %arg8[%c0_105, %c0_106], %237 {strides = array<i32>} : memref<44x128xf32, #tpu.memory_space<vmem>>, vector<44x3xf32>,
    %c0_107 = arith.constant 0 : index
    %c18_108 = arith.constant 18 : index
    %239 = vector.load %arg8[%c0_107, %c18_108] : memref<44x128xf32, #tpu.memory_space<vmem>>, vector<44x1xf32>
    %240 = vector.shape_cast %239 : vector<44x1xf32> to vector<44x1xf32>
    %241 = vector.broadcast %240 : vector<44x1xf32> to vector<44x3xf32>
    %c0_109 = arith.constant 0 : index
    %c19 = arith.constant 19 : index
    %242 = vector.load %arg8[%c0_109, %c19] : memref<44x128xf32, #tpu.memory_space<vmem>>, vector<44x3xf32>
    tpu.vector_store %arg8[%c0_109, %c19], %241 {strides = array<i32>} : memref<44x128xf32, #tpu.memory_space<vmem>>, vector<44x3xf32>,
    %c0_110 = arith.constant 0 : index
    %c0_111 = arith.constant 0 : index
    %243 = vector.load %arg8[%c0_110, %c0_111] : memref<44x128xf32, #tpu.memory_space<vmem>>, vector<44x128xf32>
    %c0_112 = arith.constant 0 : index
    %c0_113 = arith.constant 0 : index
    %c0_114 = arith.constant 0 : index
    %244 = vector.load %arg9[%c0_112, %c0_113, %c0_114] : memref<7x44x128xf32, #tpu.memory_space<vmem>>, vector<1x44x128xf32>
    %245 = vector.shape_cast %244 : vector<1x44x128xf32> to vector<44x128xf32>
    %246 = vector.shape_cast %243 : vector<44x128xf32> to vector<1x44x128xf32>
    tpu.vector_store %arg9[%c0_112, %c0_113, %c0_114], %246 {strides = array<i32>} : memref<7x44x128xf32, #tpu.memory_space<vmem>>, vector<1x44x128xf32>,
    %c127_i32 = arith.constant 127 : i32
    %247 = tpu.dynamic_rotate %243 by %c127_i32 dim 1 : vector<44x128xf32>, i32 -> vector<44x128xf32>
    %c1 = arith.constant 1 : index
    %c0_115 = arith.constant 0 : index
    %c0_116 = arith.constant 0 : index
    %248 = vector.load %arg9[%c1, %c0_115, %c0_116] : memref<7x44x128xf32, #tpu.memory_space<vmem>>, vector<1x44x128xf32>
    %249 = vector.shape_cast %248 : vector<1x44x128xf32> to vector<44x128xf32>
    %250 = vector.shape_cast %247 : vector<44x128xf32> to vector<1x44x128xf32>
    tpu.vector_store %arg9[%c1, %c0_115, %c0_116], %250 {strides = array<i32>} : memref<7x44x128xf32, #tpu.memory_space<vmem>>, vector<1x44x128xf32>,
    %c126_i32 = arith.constant 126 : i32
    %251 = tpu.dynamic_rotate %243 by %c126_i32 dim 1 : vector<44x128xf32>, i32 -> vector<44x128xf32>
    %c2 = arith.constant 2 : index
    %c0_117 = arith.constant 0 : index
    %c0_118 = arith.constant 0 : index
    %252 = vector.load %arg9[%c2, %c0_117, %c0_118] : memref<7x44x128xf32, #tpu.memory_space<vmem>>, vector<1x44x128xf32>
    %253 = vector.shape_cast %252 : vector<1x44x128xf32> to vector<44x128xf32>
    %254 = vector.shape_cast %251 : vector<44x128xf32> to vector<1x44x128xf32>
    tpu.vector_store %arg9[%c2, %c0_117, %c0_118], %254 {strides = array<i32>} : memref<7x44x128xf32, #tpu.memory_space<vmem>>, vector<1x44x128xf32>,
    %c125_i32 = arith.constant 125 : i32
    %255 = tpu.dynamic_rotate %243 by %c125_i32 dim 1 : vector<44x128xf32>, i32 -> vector<44x128xf32>
    %c3_119 = arith.constant 3 : index
    %c0_120 = arith.constant 0 : index
    %c0_121 = arith.constant 0 : index
    %256 = vector.load %arg9[%c3_119, %c0_120, %c0_121] : memref<7x44x128xf32, #tpu.memory_space<vmem>>, vector<1x44x128xf32>
    %257 = vector.shape_cast %256 : vector<1x44x128xf32> to vector<44x128xf32>
    %258 = vector.shape_cast %255 : vector<44x128xf32> to vector<1x44x128xf32>
    tpu.vector_store %arg9[%c3_119, %c0_120, %c0_121], %258 {strides = array<i32>} : memref<7x44x128xf32, #tpu.memory_space<vmem>>, vector<1x44x128xf32>,
    %c124_i32 = arith.constant 124 : i32
    %259 = tpu.dynamic_rotate %243 by %c124_i32 dim 1 : vector<44x128xf32>, i32 -> vector<44x128xf32>
    %c4_122 = arith.constant 4 : index
    %c0_123 = arith.constant 0 : index
    %c0_124 = arith.constant 0 : index
    %260 = vector.load %arg9[%c4_122, %c0_123, %c0_124] : memref<7x44x128xf32, #tpu.memory_space<vmem>>, vector<1x44x128xf32>
    %261 = vector.shape_cast %260 : vector<1x44x128xf32> to vector<44x128xf32>
    %262 = vector.shape_cast %259 : vector<44x128xf32> to vector<1x44x128xf32>
    tpu.vector_store %arg9[%c4_122, %c0_123, %c0_124], %262 {strides = array<i32>} : memref<7x44x128xf32, #tpu.memory_space<vmem>>, vector<1x44x128xf32>,
    %c123_i32 = arith.constant 123 : i32
    %263 = tpu.dynamic_rotate %243 by %c123_i32 dim 1 : vector<44x128xf32>, i32 -> vector<44x128xf32>
    %c5_125 = arith.constant 5 : index
    %c0_126 = arith.constant 0 : index
    %c0_127 = arith.constant 0 : index
    %264 = vector.load %arg9[%c5_125, %c0_126, %c0_127] : memref<7x44x128xf32, #tpu.memory_space<vmem>>, vector<1x44x128xf32>
    %265 = vector.shape_cast %264 : vector<1x44x128xf32> to vector<44x128xf32>
    %266 = vector.shape_cast %263 : vector<44x128xf32> to vector<1x44x128xf32>
    tpu.vector_store %arg9[%c5_125, %c0_126, %c0_127], %266 {strides = array<i32>} : memref<7x44x128xf32, #tpu.memory_space<vmem>>, vector<1x44x128xf32>,
    %c122_i32 = arith.constant 122 : i32
    %267 = tpu.dynamic_rotate %243 by %c122_i32 dim 1 : vector<44x128xf32>, i32 -> vector<44x128xf32>
    %c6_128 = arith.constant 6 : index
    %c0_129 = arith.constant 0 : index
    %c0_130 = arith.constant 0 : index
    %268 = vector.load %arg9[%c6_128, %c0_129, %c0_130] : memref<7x44x128xf32, #tpu.memory_space<vmem>>, vector<1x44x128xf32>
    %269 = vector.shape_cast %268 : vector<1x44x128xf32> to vector<44x128xf32>
    %270 = vector.shape_cast %267 : vector<44x128xf32> to vector<1x44x128xf32>
    tpu.vector_store %arg9[%c6_128, %c0_129, %c0_130], %270 {strides = array<i32>} : memref<7x44x128xf32, #tpu.memory_space<vmem>>, vector<1x44x128xf32>,
    %cst_131 = arith.constant 0.000000e+00 : f32
    %271 = vector.broadcast %cst_131 : f32 to vector<16x16xf32>
    %c98 = arith.constant 98 : index
    %272 = memref.load %arg6[%c98] : memref<99xf32, #tpu.memory_space<smem>>
    %273 = vector.broadcast %272 : f32 to vector<16x16xf32>
    %274 = arith.addf %271, %273 : vector<16x16xf32>
    %c0_132 = arith.constant 0 : index
    %275 = memref.load %arg6[%c0_132] : memref<99xf32, #tpu.memory_space<smem>>
    %c0_133 = arith.constant 0 : index
    %c0_134 = arith.constant 0 : index
    %c0_135 = arith.constant 0 : index
    %276 = vector.load %arg9[%c0_133, %c0_134, %c0_135] : memref<7x44x128xf32, #tpu.memory_space<vmem>>, vector<1x16x16xf32>
    %277 = vector.shape_cast %276 : vector<1x16x16xf32> to vector<16x16xf32>
    %278 = vector.broadcast %275 : f32 to vector<16x16xf32>
    %279 = arith.mulf %278, %277 : vector<16x16xf32>
    %280 = arith.addf %274, %279 : vector<16x16xf32>
    %c7_136 = arith.constant 7 : index
    %281 = memref.load %arg6[%c7_136] : memref<99xf32, #tpu.memory_space<smem>>
    %c0_137 = arith.constant 0 : index
    %c1_138 = arith.constant 1 : index
    %c0_139 = arith.constant 0 : index
    %282 = vector.load %arg9[%c0_137, %c1_138, %c0_139] : memref<7x44x128xf32, #tpu.memory_space<vmem>>, vector<1x16x16xf32>
    %283 = vector.shape_cast %282 : vector<1x16x16xf32> to vector<16x16xf32>
    %284 = vector.broadcast %281 : f32 to vector<16x16xf32>
    %285 = arith.mulf %284, %283 : vector<16x16xf32>
    %286 = arith.addf %280, %285 : vector<16x16xf32>
    %c14_140 = arith.constant 14 : index
    %287 = memref.load %arg6[%c14_140] : memref<99xf32, #tpu.memory_space<smem>>
    %c0_141 = arith.constant 0 : index
    %c2_142 = arith.constant 2 : index
    %c0_143 = arith.constant 0 : index
    %288 = vector.load %arg9[%c0_141, %c2_142, %c0_143] : memref<7x44x128xf32, #tpu.memory_space<vmem>>, vector<1x16x16xf32>
    %289 = vector.shape_cast %288 : vector<1x16x16xf32> to vector<16x16xf32>
    %290 = vector.broadcast %287 : f32 to vector<16x16xf32>
    %291 = arith.mulf %290, %289 : vector<16x16xf32>
    %292 = arith.addf %286, %291 : vector<16x16xf32>
    %c21 = arith.constant 21 : index
    %293 = memref.load %arg6[%c21] : memref<99xf32, #tpu.memory_space<smem>>
    %c0_144 = arith.constant 0 : index
    %c3_145 = arith.constant 3 : index
    %c0_146 = arith.constant 0 : index
    %294 = vector.load %arg9[%c0_144, %c3_145, %c0_146] : memref<7x44x128xf32, #tpu.memory_space<vmem>>, vector<1x16x16xf32>
    %295 = vector.shape_cast %294 : vector<1x16x16xf32> to vector<16x16xf32>
    %296 = vector.broadcast %293 : f32 to vector<16x16xf32>
    %297 = arith.mulf %296, %295 : vector<16x16xf32>
    %298 = arith.addf %292, %297 : vector<16x16xf32>
    %c28_147 = arith.constant 28 : index
    %299 = memref.load %arg6[%c28_147] : memref<99xf32, #tpu.memory_space<smem>>
    %c0_148 = arith.constant 0 : index
    %c4_149 = arith.constant 4 : index
    %c0_150 = arith.constant 0 : index
    %300 = vector.load %arg9[%c0_148, %c4_149, %c0_150] : memref<7x44x128xf32, #tpu.memory_space<vmem>>, vector<1x16x16xf32>
    %301 = vector.shape_cast %300 : vector<1x16x16xf32> to vector<16x16xf32>
    %302 = vector.broadcast %299 : f32 to vector<16x16xf32>
    %303 = arith.mulf %302, %301 : vector<16x16xf32>
    %304 = arith.addf %298, %303 : vector<16x16xf32>
    %c35_151 = arith.constant 35 : index
    %305 = memref.load %arg6[%c35_151] : memref<99xf32, #tpu.memory_space<smem>>
    %c0_152 = arith.constant 0 : index
    %c5_153 = arith.constant 5 : index
    %c0_154 = arith.constant 0 : index
    %306 = vector.load %arg9[%c0_152, %c5_153, %c0_154] : memref<7x44x128xf32, #tpu.memory_space<vmem>>, vector<1x16x16xf32>
    %307 = vector.shape_cast %306 : vector<1x16x16xf32> to vector<16x16xf32>
    %308 = vector.broadcast %305 : f32 to vector<16x16xf32>
    %309 = arith.mulf %308, %307 : vector<16x16xf32>
    %310 = arith.addf %304, %309 : vector<16x16xf32>
    %c42 = arith.constant 42 : index
    %311 = memref.load %arg6[%c42] : memref<99xf32, #tpu.memory_space<smem>>
    %c0_155 = arith.constant 0 : index
    %c6_156 = arith.constant 6 : index
    %c0_157 = arith.constant 0 : index
    %312 = vector.load %arg9[%c0_155, %c6_156, %c0_157] : memref<7x44x128xf32, #tpu.memory_space<vmem>>, vector<1x16x16xf32>
    %313 = vector.shape_cast %312 : vector<1x16x16xf32> to vector<16x16xf32>
    %314 = vector.broadcast %311 : f32 to vector<16x16xf32>
    %315 = arith.mulf %314, %313 : vector<16x16xf32>
    %316 = arith.addf %310, %315 : vector<16x16xf32>
    %c1_158 = arith.constant 1 : index
    %317 = memref.load %arg6[%c1_158] : memref<99xf32, #tpu.memory_space<smem>>
    %c1_159 = arith.constant 1 : index
    %c0_160 = arith.constant 0 : index
    %c0_161 = arith.constant 0 : index
    %318 = vector.load %arg9[%c1_159, %c0_160, %c0_161] : memref<7x44x128xf32, #tpu.memory_space<vmem>>, vector<1x16x16xf32>
    %319 = vector.shape_cast %318 : vector<1x16x16xf32> to vector<16x16xf32>
    %320 = vector.broadcast %317 : f32 to vector<16x16xf32>
    %321 = arith.mulf %320, %319 : vector<16x16xf32>
    %322 = arith.addf %316, %321 : vector<16x16xf32>
    %c8_162 = arith.constant 8 : index
    %323 = memref.load %arg6[%c8_162] : memref<99xf32, #tpu.memory_space<smem>>
    %c1_163 = arith.constant 1 : index
    %c1_164 = arith.constant 1 : index
    %c0_165 = arith.constant 0 : index
    %324 = vector.load %arg9[%c1_163, %c1_164, %c0_165] : memref<7x44x128xf32, #tpu.memory_space<vmem>>, vector<1x16x16xf32>
    %325 = vector.shape_cast %324 : vector<1x16x16xf32> to vector<16x16xf32>
    %326 = vector.broadcast %323 : f32 to vector<16x16xf32>
    %327 = arith.mulf %326, %325 : vector<16x16xf32>
    %328 = arith.addf %322, %327 : vector<16x16xf32>
    %c15_166 = arith.constant 15 : index
    %329 = memref.load %arg6[%c15_166] : memref<99xf32, #tpu.memory_space<smem>>
    %c1_167 = arith.constant 1 : index
    %c2_168 = arith.constant 2 : index
    %c0_169 = arith.constant 0 : index
    %330 = vector.load %arg9[%c1_167, %c2_168, %c0_169] : memref<7x44x128xf32, #tpu.memory_space<vmem>>, vector<1x16x16xf32>
    %331 = vector.shape_cast %330 : vector<1x16x16xf32> to vector<16x16xf32>
    %332 = vector.broadcast %329 : f32 to vector<16x16xf32>
    %333 = arith.mulf %332, %331 : vector<16x16xf32>
    %334 = arith.addf %328, %333 : vector<16x16xf32>
    %c22_170 = arith.constant 22 : index
    %335 = memref.load %arg6[%c22_170] : memref<99xf32, #tpu.memory_space<smem>>
    %c1_171 = arith.constant 1 : index
    %c3_172 = arith.constant 3 : index
    %c0_173 = arith.constant 0 : index
    %336 = vector.load %arg9[%c1_171, %c3_172, %c0_173] : memref<7x44x128xf32, #tpu.memory_space<vmem>>, vector<1x16x16xf32>
    %337 = vector.shape_cast %336 : vector<1x16x16xf32> to vector<16x16xf32>
    %338 = vector.broadcast %335 : f32 to vector<16x16xf32>
    %339 = arith.mulf %338, %337 : vector<16x16xf32>
    %340 = arith.addf %334, %339 : vector<16x16xf32>
    %c29_174 = arith.constant 29 : index
    %341 = memref.load %arg6[%c29_174] : memref<99xf32, #tpu.memory_space<smem>>
    %c1_175 = arith.constant 1 : index
    %c4_176 = arith.constant 4 : index
    %c0_177 = arith.constant 0 : index
    %342 = vector.load %arg9[%c1_175, %c4_176, %c0_177] : memref<7x44x128xf32, #tpu.memory_space<vmem>>, vector<1x16x16xf32>
    %343 = vector.shape_cast %342 : vector<1x16x16xf32> to vector<16x16xf32>
    %344 = vector.broadcast %341 : f32 to vector<16x16xf32>
    %345 = arith.mulf %344, %343 : vector<16x16xf32>
    %346 = arith.addf %340, %345 : vector<16x16xf32>
    %c36_178 = arith.constant 36 : index
    %347 = memref.load %arg6[%c36_178] : memref<99xf32, #tpu.memory_space<smem>>
    %c1_179 = arith.constant 1 : index
    %c5_180 = arith.constant 5 : index
    %c0_181 = arith.constant 0 : index
    %348 = vector.load %arg9[%c1_179, %c5_180, %c0_181] : memref<7x44x128xf32, #tpu.memory_space<vmem>>, vector<1x16x16xf32>
    %349 = vector.shape_cast %348 : vector<1x16x16xf32> to vector<16x16xf32>
    %350 = vector.broadcast %347 : f32 to vector<16x16xf32>
    %351 = arith.mulf %350, %349 : vector<16x16xf32>
    %352 = arith.addf %346, %351 : vector<16x16xf32>
    %c43 = arith.constant 43 : index
    %353 = memref.load %arg6[%c43] : memref<99xf32, #tpu.memory_space<smem>>
    %c1_182 = arith.constant 1 : index
    %c6_183 = arith.constant 6 : index
    %c0_184 = arith.constant 0 : index
    %354 = vector.load %arg9[%c1_182, %c6_183, %c0_184] : memref<7x44x128xf32, #tpu.memory_space<vmem>>, vector<1x16x16xf32>
    %355 = vector.shape_cast %354 : vector<1x16x16xf32> to vector<16x16xf32>
    %356 = vector.broadcast %353 : f32 to vector<16x16xf32>
    %357 = arith.mulf %356, %355 : vector<16x16xf32>
    %358 = arith.addf %352, %357 : vector<16x16xf32>
    %c2_185 = arith.constant 2 : index
    %359 = memref.load %arg6[%c2_185] : memref<99xf32, #tpu.memory_space<smem>>
    %c2_186 = arith.constant 2 : index
    %c0_187 = arith.constant 0 : index
    %c0_188 = arith.constant 0 : index
    %360 = vector.load %arg9[%c2_186, %c0_187, %c0_188] : memref<7x44x128xf32, #tpu.memory_space<vmem>>, vector<1x16x16xf32>
    %361 = vector.shape_cast %360 : vector<1x16x16xf32> to vector<16x16xf32>
    %362 = vector.broadcast %359 : f32 to vector<16x16xf32>
    %363 = arith.mulf %362, %361 : vector<16x16xf32>
    %364 = arith.addf %358, %363 : vector<16x16xf32>
    %c9_189 = arith.constant 9 : index
    %365 = memref.load %arg6[%c9_189] : memref<99xf32, #tpu.memory_space<smem>>
    %c2_190 = arith.constant 2 : index
    %c1_191 = arith.constant 1 : index
    %c0_192 = arith.constant 0 : index
    %366 = vector.load %arg9[%c2_190, %c1_191, %c0_192] : memref<7x44x128xf32, #tpu.memory_space<vmem>>, vector<1x16x16xf32>
    %367 = vector.shape_cast %366 : vector<1x16x16xf32> to vector<16x16xf32>
    %368 = vector.broadcast %365 : f32 to vector<16x16xf32>
    %369 = arith.mulf %368, %367 : vector<16x16xf32>
    %370 = arith.addf %364, %369 : vector<16x16xf32>
    %c16_193 = arith.constant 16 : index
    %371 = memref.load %arg6[%c16_193] : memref<99xf32, #tpu.memory_space<smem>>
    %c2_194 = arith.constant 2 : index
    %c2_195 = arith.constant 2 : index
    %c0_196 = arith.constant 0 : index
    %372 = vector.load %arg9[%c2_194, %c2_195, %c0_196] : memref<7x44x128xf32, #tpu.memory_space<vmem>>, vector<1x16x16xf32>
    %373 = vector.shape_cast %372 : vector<1x16x16xf32> to vector<16x16xf32>
    %374 = vector.broadcast %371 : f32 to vector<16x16xf32>
    %375 = arith.mulf %374, %373 : vector<16x16xf32>
    %376 = arith.addf %370, %375 : vector<16x16xf32>
    %c23 = arith.constant 23 : index
    %377 = memref.load %arg6[%c23] : memref<99xf32, #tpu.memory_space<smem>>
    %c2_197 = arith.constant 2 : index
    %c3_198 = arith.constant 3 : index
    %c0_199 = arith.constant 0 : index
    %378 = vector.load %arg9[%c2_197, %c3_198, %c0_199] : memref<7x44x128xf32, #tpu.memory_space<vmem>>, vector<1x16x16xf32>
    %379 = vector.shape_cast %378 : vector<1x16x16xf32> to vector<16x16xf32>
    %380 = vector.broadcast %377 : f32 to vector<16x16xf32>
    %381 = arith.mulf %380, %379 : vector<16x16xf32>
    %382 = arith.addf %376, %381 : vector<16x16xf32>
    %c30_200 = arith.constant 30 : index
    %383 = memref.load %arg6[%c30_200] : memref<99xf32, #tpu.memory_space<smem>>
    %c2_201 = arith.constant 2 : index
    %c4_202 = arith.constant 4 : index
    %c0_203 = arith.constant 0 : index
    %384 = vector.load %arg9[%c2_201, %c4_202, %c0_203] : memref<7x44x128xf32, #tpu.memory_space<vmem>>, vector<1x16x16xf32>
    %385 = vector.shape_cast %384 : vector<1x16x16xf32> to vector<16x16xf32>
    %386 = vector.broadcast %383 : f32 to vector<16x16xf32>
    %387 = arith.mulf %386, %385 : vector<16x16xf32>
    %388 = arith.addf %382, %387 : vector<16x16xf32>
    %c37_204 = arith.constant 37 : index
    %389 = memref.load %arg6[%c37_204] : memref<99xf32, #tpu.memory_space<smem>>
    %c2_205 = arith.constant 2 : index
    %c5_206 = arith.constant 5 : index
    %c0_207 = arith.constant 0 : index
    %390 = vector.load %arg9[%c2_205, %c5_206, %c0_207] : memref<7x44x128xf32, #tpu.memory_space<vmem>>, vector<1x16x16xf32>
    %391 = vector.shape_cast %390 : vector<1x16x16xf32> to vector<16x16xf32>
    %392 = vector.broadcast %389 : f32 to vector<16x16xf32>
    %393 = arith.mulf %392, %391 : vector<16x16xf32>
    %394 = arith.addf %388, %393 : vector<16x16xf32>
    %c44 = arith.constant 44 : index
    %395 = memref.load %arg6[%c44] : memref<99xf32, #tpu.memory_space<smem>>
    %c2_208 = arith.constant 2 : index
    %c6_209 = arith.constant 6 : index
    %c0_210 = arith.constant 0 : index
    %396 = vector.load %arg9[%c2_208, %c6_209, %c0_210] : memref<7x44x128xf32, #tpu.memory_space<vmem>>, vector<1x16x16xf32>
    %397 = vector.shape_cast %396 : vector<1x16x16xf32> to vector<16x16xf32>
    %398 = vector.broadcast %395 : f32 to vector<16x16xf32>
    %399 = arith.mulf %398, %397 : vector<16x16xf32>
    %400 = arith.addf %394, %399 : vector<16x16xf32>
    %c3_211 = arith.constant 3 : index
    %401 = memref.load %arg6[%c3_211] : memref<99xf32, #tpu.memory_space<smem>>
    %c3_212 = arith.constant 3 : index
    %c0_213 = arith.constant 0 : index
    %c0_214 = arith.constant 0 : index
    %402 = vector.load %arg9[%c3_212, %c0_213, %c0_214] : memref<7x44x128xf32, #tpu.memory_space<vmem>>, vector<1x16x16xf32>
    %403 = vector.shape_cast %402 : vector<1x16x16xf32> to vector<16x16xf32>
    %404 = vector.broadcast %401 : f32 to vector<16x16xf32>
    %405 = arith.mulf %404, %403 : vector<16x16xf32>
    %406 = arith.addf %400, %405 : vector<16x16xf32>
    %c10_215 = arith.constant 10 : index
    %407 = memref.load %arg6[%c10_215] : memref<99xf32, #tpu.memory_space<smem>>
    %c3_216 = arith.constant 3 : index
    %c1_217 = arith.constant 1 : index
    %c0_218 = arith.constant 0 : index
    %408 = vector.load %arg9[%c3_216, %c1_217, %c0_218] : memref<7x44x128xf32, #tpu.memory_space<vmem>>, vector<1x16x16xf32>
    %409 = vector.shape_cast %408 : vector<1x16x16xf32> to vector<16x16xf32>
    %410 = vector.broadcast %407 : f32 to vector<16x16xf32>
    %411 = arith.mulf %410, %409 : vector<16x16xf32>
    %412 = arith.addf %406, %411 : vector<16x16xf32>
    %c17_219 = arith.constant 17 : index
    %413 = memref.load %arg6[%c17_219] : memref<99xf32, #tpu.memory_space<smem>>
    %c3_220 = arith.constant 3 : index
    %c2_221 = arith.constant 2 : index
    %c0_222 = arith.constant 0 : index
    %414 = vector.load %arg9[%c3_220, %c2_221, %c0_222] : memref<7x44x128xf32, #tpu.memory_space<vmem>>, vector<1x16x16xf32>
    %415 = vector.shape_cast %414 : vector<1x16x16xf32> to vector<16x16xf32>
    %416 = vector.broadcast %413 : f32 to vector<16x16xf32>
    %417 = arith.mulf %416, %415 : vector<16x16xf32>
    %418 = arith.addf %412, %417 : vector<16x16xf32>
    %c24 = arith.constant 24 : index
    %419 = memref.load %arg6[%c24] : memref<99xf32, #tpu.memory_space<smem>>
    %c3_223 = arith.constant 3 : index
    %c3_224 = arith.constant 3 : index
    %c0_225 = arith.constant 0 : index
    %420 = vector.load %arg9[%c3_223, %c3_224, %c0_225] : memref<7x44x128xf32, #tpu.memory_space<vmem>>, vector<1x16x16xf32>
    %421 = vector.shape_cast %420 : vector<1x16x16xf32> to vector<16x16xf32>
    %422 = vector.broadcast %419 : f32 to vector<16x16xf32>
    %423 = arith.mulf %422, %421 : vector<16x16xf32>
    %424 = arith.addf %418, %423 : vector<16x16xf32>
    %c31_226 = arith.constant 31 : index
    %425 = memref.load %arg6[%c31_226] : memref<99xf32, #tpu.memory_space<smem>>
    %c3_227 = arith.constant 3 : index
    %c4_228 = arith.constant 4 : index
    %c0_229 = arith.constant 0 : index
    %426 = vector.load %arg9[%c3_227, %c4_228, %c0_229] : memref<7x44x128xf32, #tpu.memory_space<vmem>>, vector<1x16x16xf32>
    %427 = vector.shape_cast %426 : vector<1x16x16xf32> to vector<16x16xf32>
    %428 = vector.broadcast %425 : f32 to vector<16x16xf32>
    %429 = arith.mulf %428, %427 : vector<16x16xf32>
    %430 = arith.addf %424, %429 : vector<16x16xf32>
    %c38_230 = arith.constant 38 : index
    %431 = memref.load %arg6[%c38_230] : memref<99xf32, #tpu.memory_space<smem>>
    %c3_231 = arith.constant 3 : index
    %c5_232 = arith.constant 5 : index
    %c0_233 = arith.constant 0 : index
    %432 = vector.load %arg9[%c3_231, %c5_232, %c0_233] : memref<7x44x128xf32, #tpu.memory_space<vmem>>, vector<1x16x16xf32>
    %433 = vector.shape_cast %432 : vector<1x16x16xf32> to vector<16x16xf32>
    %434 = vector.broadcast %431 : f32 to vector<16x16xf32>
    %435 = arith.mulf %434, %433 : vector<16x16xf32>
    %436 = arith.addf %430, %435 : vector<16x16xf32>
    %c45 = arith.constant 45 : index
    %437 = memref.load %arg6[%c45] : memref<99xf32, #tpu.memory_space<smem>>
    %c3_234 = arith.constant 3 : index
    %c6_235 = arith.constant 6 : index
    %c0_236 = arith.constant 0 : index
    %438 = vector.load %arg9[%c3_234, %c6_235, %c0_236] : memref<7x44x128xf32, #tpu.memory_space<vmem>>, vector<1x16x16xf32>
    %439 = vector.shape_cast %438 : vector<1x16x16xf32> to vector<16x16xf32>
    %440 = vector.broadcast %437 : f32 to vector<16x16xf32>
    %441 = arith.mulf %440, %439 : vector<16x16xf32>
    %442 = arith.addf %436, %441 : vector<16x16xf32>
    %c4_237 = arith.constant 4 : index
    %443 = memref.load %arg6[%c4_237] : memref<99xf32, #tpu.memory_space<smem>>
    %c4_238 = arith.constant 4 : index
    %c0_239 = arith.constant 0 : index
    %c0_240 = arith.constant 0 : index
    %444 = vector.load %arg9[%c4_238, %c0_239, %c0_240] : memref<7x44x128xf32, #tpu.memory_space<vmem>>, vector<1x16x16xf32>
    %445 = vector.shape_cast %444 : vector<1x16x16xf32> to vector<16x16xf32>
    %446 = vector.broadcast %443 : f32 to vector<16x16xf32>
    %447 = arith.mulf %446, %445 : vector<16x16xf32>
    %448 = arith.addf %442, %447 : vector<16x16xf32>
    %c11_241 = arith.constant 11 : index
    %449 = memref.load %arg6[%c11_241] : memref<99xf32, #tpu.memory_space<smem>>
    %c4_242 = arith.constant 4 : index
    %c1_243 = arith.constant 1 : index
    %c0_244 = arith.constant 0 : index
    %450 = vector.load %arg9[%c4_242, %c1_243, %c0_244] : memref<7x44x128xf32, #tpu.memory_space<vmem>>, vector<1x16x16xf32>
    %451 = vector.shape_cast %450 : vector<1x16x16xf32> to vector<16x16xf32>
    %452 = vector.broadcast %449 : f32 to vector<16x16xf32>
    %453 = arith.mulf %452, %451 : vector<16x16xf32>
    %454 = arith.addf %448, %453 : vector<16x16xf32>
    %c18_245 = arith.constant 18 : index
    %455 = memref.load %arg6[%c18_245] : memref<99xf32, #tpu.memory_space<smem>>
    %c4_246 = arith.constant 4 : index
    %c2_247 = arith.constant 2 : index
    %c0_248 = arith.constant 0 : index
    %456 = vector.load %arg9[%c4_246, %c2_247, %c0_248] : memref<7x44x128xf32, #tpu.memory_space<vmem>>, vector<1x16x16xf32>
    %457 = vector.shape_cast %456 : vector<1x16x16xf32> to vector<16x16xf32>
    %458 = vector.broadcast %455 : f32 to vector<16x16xf32>
    %459 = arith.mulf %458, %457 : vector<16x16xf32>
    %460 = arith.addf %454, %459 : vector<16x16xf32>
    %c25 = arith.constant 25 : index
    %461 = memref.load %arg6[%c25] : memref<99xf32, #tpu.memory_space<smem>>
    %c4_249 = arith.constant 4 : index
    %c3_250 = arith.constant 3 : index
    %c0_251 = arith.constant 0 : index
    %462 = vector.load %arg9[%c4_249, %c3_250, %c0_251] : memref<7x44x128xf32, #tpu.memory_space<vmem>>, vector<1x16x16xf32>
    %463 = vector.shape_cast %462 : vector<1x16x16xf32> to vector<16x16xf32>
    %464 = vector.broadcast %461 : f32 to vector<16x16xf32>
    %465 = arith.mulf %464, %463 : vector<16x16xf32>
    %466 = arith.addf %460, %465 : vector<16x16xf32>
    %c32_252 = arith.constant 32 : index
    %467 = memref.load %arg6[%c32_252] : memref<99xf32, #tpu.memory_space<smem>>
    %c4_253 = arith.constant 4 : index
    %c4_254 = arith.constant 4 : index
    %c0_255 = arith.constant 0 : index
    %468 = vector.load %arg9[%c4_253, %c4_254, %c0_255] : memref<7x44x128xf32, #tpu.memory_space<vmem>>, vector<1x16x16xf32>
    %469 = vector.shape_cast %468 : vector<1x16x16xf32> to vector<16x16xf32>
    %470 = vector.broadcast %467 : f32 to vector<16x16xf32>
    %471 = arith.mulf %470, %469 : vector<16x16xf32>
    %472 = arith.addf %466, %471 : vector<16x16xf32>
    %c39_256 = arith.constant 39 : index
    %473 = memref.load %arg6[%c39_256] : memref<99xf32, #tpu.memory_space<smem>>
    %c4_257 = arith.constant 4 : index
    %c5_258 = arith.constant 5 : index
    %c0_259 = arith.constant 0 : index
    %474 = vector.load %arg9[%c4_257, %c5_258, %c0_259] : memref<7x44x128xf32, #tpu.memory_space<vmem>>, vector<1x16x16xf32>
    %475 = vector.shape_cast %474 : vector<1x16x16xf32> to vector<16x16xf32>
    %476 = vector.broadcast %473 : f32 to vector<16x16xf32>
    %477 = arith.mulf %476, %475 : vector<16x16xf32>
    %478 = arith.addf %472, %477 : vector<16x16xf32>
    %c46 = arith.constant 46 : index
    %479 = memref.load %arg6[%c46] : memref<99xf32, #tpu.memory_space<smem>>
    %c4_260 = arith.constant 4 : index
    %c6_261 = arith.constant 6 : index
    %c0_262 = arith.constant 0 : index
    %480 = vector.load %arg9[%c4_260, %c6_261, %c0_262] : memref<7x44x128xf32, #tpu.memory_space<vmem>>, vector<1x16x16xf32>
    %481 = vector.shape_cast %480 : vector<1x16x16xf32> to vector<16x16xf32>
    %482 = vector.broadcast %479 : f32 to vector<16x16xf32>
    %483 = arith.mulf %482, %481 : vector<16x16xf32>
    %484 = arith.addf %478, %483 : vector<16x16xf32>
    %c5_263 = arith.constant 5 : index
    %485 = memref.load %arg6[%c5_263] : memref<99xf32, #tpu.memory_space<smem>>
    %c5_264 = arith.constant 5 : index
    %c0_265 = arith.constant 0 : index
    %c0_266 = arith.constant 0 : index
    %486 = vector.load %arg9[%c5_264, %c0_265, %c0_266] : memref<7x44x128xf32, #tpu.memory_space<vmem>>, vector<1x16x16xf32>
    %487 = vector.shape_cast %486 : vector<1x16x16xf32> to vector<16x16xf32>
    %488 = vector.broadcast %485 : f32 to vector<16x16xf32>
    %489 = arith.mulf %488, %487 : vector<16x16xf32>
    %490 = arith.addf %484, %489 : vector<16x16xf32>
    %c12_267 = arith.constant 12 : index
    %491 = memref.load %arg6[%c12_267] : memref<99xf32, #tpu.memory_space<smem>>
    %c5_268 = arith.constant 5 : index
    %c1_269 = arith.constant 1 : index
    %c0_270 = arith.constant 0 : index
    %492 = vector.load %arg9[%c5_268, %c1_269, %c0_270] : memref<7x44x128xf32, #tpu.memory_space<vmem>>, vector<1x16x16xf32>
    %493 = vector.shape_cast %492 : vector<1x16x16xf32> to vector<16x16xf32>
    %494 = vector.broadcast %491 : f32 to vector<16x16xf32>
    %495 = arith.mulf %494, %493 : vector<16x16xf32>
    %496 = arith.addf %490, %495 : vector<16x16xf32>
    %c19_271 = arith.constant 19 : index
    %497 = memref.load %arg6[%c19_271] : memref<99xf32, #tpu.memory_space<smem>>
    %c5_272 = arith.constant 5 : index
    %c2_273 = arith.constant 2 : index
    %c0_274 = arith.constant 0 : index
    %498 = vector.load %arg9[%c5_272, %c2_273, %c0_274] : memref<7x44x128xf32, #tpu.memory_space<vmem>>, vector<1x16x16xf32>
    %499 = vector.shape_cast %498 : vector<1x16x16xf32> to vector<16x16xf32>
    %500 = vector.broadcast %497 : f32 to vector<16x16xf32>
    %501 = arith.mulf %500, %499 : vector<16x16xf32>
    %502 = arith.addf %496, %501 : vector<16x16xf32>
    %c26_275 = arith.constant 26 : index
    %503 = memref.load %arg6[%c26_275] : memref<99xf32, #tpu.memory_space<smem>>
    %c5_276 = arith.constant 5 : index
    %c3_277 = arith.constant 3 : index
    %c0_278 = arith.constant 0 : index
    %504 = vector.load %arg9[%c5_276, %c3_277, %c0_278] : memref<7x44x128xf32, #tpu.memory_space<vmem>>, vector<1x16x16xf32>
    %505 = vector.shape_cast %504 : vector<1x16x16xf32> to vector<16x16xf32>
    %506 = vector.broadcast %503 : f32 to vector<16x16xf32>
    %507 = arith.mulf %506, %505 : vector<16x16xf32>
    %508 = arith.addf %502, %507 : vector<16x16xf32>
    %c33_279 = arith.constant 33 : index
    %509 = memref.load %arg6[%c33_279] : memref<99xf32, #tpu.memory_space<smem>>
    %c5_280 = arith.constant 5 : index
    %c4_281 = arith.constant 4 : index
    %c0_282 = arith.constant 0 : index
    %510 = vector.load %arg9[%c5_280, %c4_281, %c0_282] : memref<7x44x128xf32, #tpu.memory_space<vmem>>, vector<1x16x16xf32>
    %511 = vector.shape_cast %510 : vector<1x16x16xf32> to vector<16x16xf32>
    %512 = vector.broadcast %509 : f32 to vector<16x16xf32>
    %513 = arith.mulf %512, %511 : vector<16x16xf32>
    %514 = arith.addf %508, %513 : vector<16x16xf32>
    %c40_283 = arith.constant 40 : index
    %515 = memref.load %arg6[%c40_283] : memref<99xf32, #tpu.memory_space<smem>>
    %c5_284 = arith.constant 5 : index
    %c5_285 = arith.constant 5 : index
    %c0_286 = arith.constant 0 : index
    %516 = vector.load %arg9[%c5_284, %c5_285, %c0_286] : memref<7x44x128xf32, #tpu.memory_space<vmem>>, vector<1x16x16xf32>
    %517 = vector.shape_cast %516 : vector<1x16x16xf32> to vector<16x16xf32>
    %518 = vector.broadcast %515 : f32 to vector<16x16xf32>
    %519 = arith.mulf %518, %517 : vector<16x16xf32>
    %520 = arith.addf %514, %519 : vector<16x16xf32>
    %c47 = arith.constant 47 : index
    %521 = memref.load %arg6[%c47] : memref<99xf32, #tpu.memory_space<smem>>
    %c5_287 = arith.constant 5 : index
    %c6_288 = arith.constant 6 : index
    %c0_289 = arith.constant 0 : index
    %522 = vector.load %arg9[%c5_287, %c6_288, %c0_289] : memref<7x44x128xf32, #tpu.memory_space<vmem>>, vector<1x16x16xf32>
    %523 = vector.shape_cast %522 : vector<1x16x16xf32> to vector<16x16xf32>
    %524 = vector.broadcast %521 : f32 to vector<16x16xf32>
    %525 = arith.mulf %524, %523 : vector<16x16xf32>
    %526 = arith.addf %520, %525 : vector<16x16xf32>
    %c6_290 = arith.constant 6 : index
    %527 = memref.load %arg6[%c6_290] : memref<99xf32, #tpu.memory_space<smem>>
    %c6_291 = arith.constant 6 : index
    %c0_292 = arith.constant 0 : index
    %c0_293 = arith.constant 0 : index
    %528 = vector.load %arg9[%c6_291, %c0_292, %c0_293] : memref<7x44x128xf32, #tpu.memory_space<vmem>>, vector<1x16x16xf32>
    %529 = vector.shape_cast %528 : vector<1x16x16xf32> to vector<16x16xf32>
    %530 = vector.broadcast %527 : f32 to vector<16x16xf32>
    %531 = arith.mulf %530, %529 : vector<16x16xf32>
    %532 = arith.addf %526, %531 : vector<16x16xf32>
    %c13_294 = arith.constant 13 : index
    %533 = memref.load %arg6[%c13_294] : memref<99xf32, #tpu.memory_space<smem>>
    %c6_295 = arith.constant 6 : index
    %c1_296 = arith.constant 1 : index
    %c0_297 = arith.constant 0 : index
    %534 = vector.load %arg9[%c6_295, %c1_296, %c0_297] : memref<7x44x128xf32, #tpu.memory_space<vmem>>, vector<1x16x16xf32>
    %535 = vector.shape_cast %534 : vector<1x16x16xf32> to vector<16x16xf32>
    %536 = vector.broadcast %533 : f32 to vector<16x16xf32>
    %537 = arith.mulf %536, %535 : vector<16x16xf32>
    %538 = arith.addf %532, %537 : vector<16x16xf32>
    %c20 = arith.constant 20 : index
    %539 = memref.load %arg6[%c20] : memref<99xf32, #tpu.memory_space<smem>>
    %c6_298 = arith.constant 6 : index
    %c2_299 = arith.constant 2 : index
    %c0_300 = arith.constant 0 : index
    %540 = vector.load %arg9[%c6_298, %c2_299, %c0_300] : memref<7x44x128xf32, #tpu.memory_space<vmem>>, vector<1x16x16xf32>
    %541 = vector.shape_cast %540 : vector<1x16x16xf32> to vector<16x16xf32>
    %542 = vector.broadcast %539 : f32 to vector<16x16xf32>
    %543 = arith.mulf %542, %541 : vector<16x16xf32>
    %544 = arith.addf %538, %543 : vector<16x16xf32>
    %c27_301 = arith.constant 27 : index
    %545 = memref.load %arg6[%c27_301] : memref<99xf32, #tpu.memory_space<smem>>
    %c6_302 = arith.constant 6 : index
    %c3_303 = arith.constant 3 : index
    %c0_304 = arith.constant 0 : index
    %546 = vector.load %arg9[%c6_302, %c3_303, %c0_304] : memref<7x44x128xf32, #tpu.memory_space<vmem>>, vector<1x16x16xf32>
    %547 = vector.shape_cast %546 : vector<1x16x16xf32> to vector<16x16xf32>
    %548 = vector.broadcast %545 : f32 to vector<16x16xf32>
    %549 = arith.mulf %548, %547 : vector<16x16xf32>
    %550 = arith.addf %544, %549 : vector<16x16xf32>
    %c34_305 = arith.constant 34 : index
    %551 = memref.load %arg6[%c34_305] : memref<99xf32, #tpu.memory_space<smem>>
    %c6_306 = arith.constant 6 : index
    %c4_307 = arith.constant 4 : index
    %c0_308 = arith.constant 0 : index
    %552 = vector.load %arg9[%c6_306, %c4_307, %c0_308] : memref<7x44x128xf32, #tpu.memory_space<vmem>>, vector<1x16x16xf32>
    %553 = vector.shape_cast %552 : vector<1x16x16xf32> to vector<16x16xf32>
    %554 = vector.broadcast %551 : f32 to vector<16x16xf32>
    %555 = arith.mulf %554, %553 : vector<16x16xf32>
    %556 = arith.addf %550, %555 : vector<16x16xf32>
    %c41 = arith.constant 41 : index
    %557 = memref.load %arg6[%c41] : memref<99xf32, #tpu.memory_space<smem>>
    %c6_309 = arith.constant 6 : index
    %c5_310 = arith.constant 5 : index
    %c0_311 = arith.constant 0 : index
    %558 = vector.load %arg9[%c6_309, %c5_310, %c0_311] : memref<7x44x128xf32, #tpu.memory_space<vmem>>, vector<1x16x16xf32>
    %559 = vector.shape_cast %558 : vector<1x16x16xf32> to vector<16x16xf32>
    %560 = vector.broadcast %557 : f32 to vector<16x16xf32>
    %561 = arith.mulf %560, %559 : vector<16x16xf32>
    %562 = arith.addf %556, %561 : vector<16x16xf32>
    %c48 = arith.constant 48 : index
    %563 = memref.load %arg6[%c48] : memref<99xf32, #tpu.memory_space<smem>>
    %c6_312 = arith.constant 6 : index
    %c6_313 = arith.constant 6 : index
    %c0_314 = arith.constant 0 : index
    %564 = vector.load %arg9[%c6_312, %c6_313, %c0_314] : memref<7x44x128xf32, #tpu.memory_space<vmem>>, vector<1x16x16xf32>
    %565 = vector.shape_cast %564 : vector<1x16x16xf32> to vector<16x16xf32>
    %566 = vector.broadcast %563 : f32 to vector<16x16xf32>
    %567 = arith.mulf %566, %565 : vector<16x16xf32>
    %568 = arith.addf %562, %567 : vector<16x16xf32>
    %c49 = arith.constant 49 : index
    %569 = memref.load %arg6[%c49] : memref<99xf32, #tpu.memory_space<smem>>
    %c0_315 = arith.constant 0 : index
    %c22_316 = arith.constant 22 : index
    %c0_317 = arith.constant 0 : index
    %570 = vector.load %arg9[%c0_315, %c22_316, %c0_317] : memref<7x44x128xf32, #tpu.memory_space<vmem>>, vector<1x16x16xf32>
    %571 = vector.shape_cast %570 : vector<1x16x16xf32> to vector<16x16xf32>
    %572 = vector.broadcast %569 : f32 to vector<16x16xf32>
    %573 = arith.mulf %572, %571 : vector<16x16xf32>
    %574 = arith.addf %568, %573 : vector<16x16xf32>
    %c56 = arith.constant 56 : index
    %575 = memref.load %arg6[%c56] : memref<99xf32, #tpu.memory_space<smem>>
    %c0_318 = arith.constant 0 : index
    %c23_319 = arith.constant 23 : index
    %c0_320 = arith.constant 0 : index
    %576 = vector.load %arg9[%c0_318, %c23_319, %c0_320] : memref<7x44x128xf32, #tpu.memory_space<vmem>>, vector<1x16x16xf32>
    %577 = vector.shape_cast %576 : vector<1x16x16xf32> to vector<16x16xf32>
    %578 = vector.broadcast %575 : f32 to vector<16x16xf32>
    %579 = arith.mulf %578, %577 : vector<16x16xf32>
    %580 = arith.addf %574, %579 : vector<16x16xf32>
    %c63 = arith.constant 63 : index
    %581 = memref.load %arg6[%c63] : memref<99xf32, #tpu.memory_space<smem>>
    %c0_321 = arith.constant 0 : index
    %c24_322 = arith.constant 24 : index
    %c0_323 = arith.constant 0 : index
    %582 = vector.load %arg9[%c0_321, %c24_322, %c0_323] : memref<7x44x128xf32, #tpu.memory_space<vmem>>, vector<1x16x16xf32>
    %583 = vector.shape_cast %582 : vector<1x16x16xf32> to vector<16x16xf32>
    %584 = vector.broadcast %581 : f32 to vector<16x16xf32>
    %585 = arith.mulf %584, %583 : vector<16x16xf32>
    %586 = arith.addf %580, %585 : vector<16x16xf32>
    %c70 = arith.constant 70 : index
    %587 = memref.load %arg6[%c70] : memref<99xf32, #tpu.memory_space<smem>>
    %c0_324 = arith.constant 0 : index
    %c25_325 = arith.constant 25 : index
    %c0_326 = arith.constant 0 : index
    %588 = vector.load %arg9[%c0_324, %c25_325, %c0_326] : memref<7x44x128xf32, #tpu.memory_space<vmem>>, vector<1x16x16xf32>
    %589 = vector.shape_cast %588 : vector<1x16x16xf32> to vector<16x16xf32>
    %590 = vector.broadcast %587 : f32 to vector<16x16xf32>
    %591 = arith.mulf %590, %589 : vector<16x16xf32>
    %592 = arith.addf %586, %591 : vector<16x16xf32>
    %c77 = arith.constant 77 : index
    %593 = memref.load %arg6[%c77] : memref<99xf32, #tpu.memory_space<smem>>
    %c0_327 = arith.constant 0 : index
    %c26_328 = arith.constant 26 : index
    %c0_329 = arith.constant 0 : index
    %594 = vector.load %arg9[%c0_327, %c26_328, %c0_329] : memref<7x44x128xf32, #tpu.memory_space<vmem>>, vector<1x16x16xf32>
    %595 = vector.shape_cast %594 : vector<1x16x16xf32> to vector<16x16xf32>
    %596 = vector.broadcast %593 : f32 to vector<16x16xf32>
    %597 = arith.mulf %596, %595 : vector<16x16xf32>
    %598 = arith.addf %592, %597 : vector<16x16xf32>
    %c84 = arith.constant 84 : index
    %599 = memref.load %arg6[%c84] : memref<99xf32, #tpu.memory_space<smem>>
    %c0_330 = arith.constant 0 : index
    %c27_331 = arith.constant 27 : index
    %c0_332 = arith.constant 0 : index
    %600 = vector.load %arg9[%c0_330, %c27_331, %c0_332] : memref<7x44x128xf32, #tpu.memory_space<vmem>>, vector<1x16x16xf32>
    %601 = vector.shape_cast %600 : vector<1x16x16xf32> to vector<16x16xf32>
    %602 = vector.broadcast %599 : f32 to vector<16x16xf32>
    %603 = arith.mulf %602, %601 : vector<16x16xf32>
    %604 = arith.addf %598, %603 : vector<16x16xf32>
    %c91 = arith.constant 91 : index
    %605 = memref.load %arg6[%c91] : memref<99xf32, #tpu.memory_space<smem>>
    %c0_333 = arith.constant 0 : index
    %c28_334 = arith.constant 28 : index
    %c0_335 = arith.constant 0 : index
    %606 = vector.load %arg9[%c0_333, %c28_334, %c0_335] : memref<7x44x128xf32, #tpu.memory_space<vmem>>, vector<1x16x16xf32>
    %607 = vector.shape_cast %606 : vector<1x16x16xf32> to vector<16x16xf32>
    %608 = vector.broadcast %605 : f32 to vector<16x16xf32>
    %609 = arith.mulf %608, %607 : vector<16x16xf32>
    %610 = arith.addf %604, %609 : vector<16x16xf32>
    %c50 = arith.constant 50 : index
    %611 = memref.load %arg6[%c50] : memref<99xf32, #tpu.memory_space<smem>>
    %c1_336 = arith.constant 1 : index
    %c22_337 = arith.constant 22 : index
    %c0_338 = arith.constant 0 : index
    %612 = vector.load %arg9[%c1_336, %c22_337, %c0_338] : memref<7x44x128xf32, #tpu.memory_space<vmem>>, vector<1x16x16xf32>
    %613 = vector.shape_cast %612 : vector<1x16x16xf32> to vector<16x16xf32>
    %614 = vector.broadcast %611 : f32 to vector<16x16xf32>
    %615 = arith.mulf %614, %613 : vector<16x16xf32>
    %616 = arith.addf %610, %615 : vector<16x16xf32>
    %c57 = arith.constant 57 : index
    %617 = memref.load %arg6[%c57] : memref<99xf32, #tpu.memory_space<smem>>
    %c1_339 = arith.constant 1 : index
    %c23_340 = arith.constant 23 : index
    %c0_341 = arith.constant 0 : index
    %618 = vector.load %arg9[%c1_339, %c23_340, %c0_341] : memref<7x44x128xf32, #tpu.memory_space<vmem>>, vector<1x16x16xf32>
    %619 = vector.shape_cast %618 : vector<1x16x16xf32> to vector<16x16xf32>
    %620 = vector.broadcast %617 : f32 to vector<16x16xf32>
    %621 = arith.mulf %620, %619 : vector<16x16xf32>
    %622 = arith.addf %616, %621 : vector<16x16xf32>
    %c64 = arith.constant 64 : index
    %623 = memref.load %arg6[%c64] : memref<99xf32, #tpu.memory_space<smem>>
    %c1_342 = arith.constant 1 : index
    %c24_343 = arith.constant 24 : index
    %c0_344 = arith.constant 0 : index
    %624 = vector.load %arg9[%c1_342, %c24_343, %c0_344] : memref<7x44x128xf32, #tpu.memory_space<vmem>>, vector<1x16x16xf32>
    %625 = vector.shape_cast %624 : vector<1x16x16xf32> to vector<16x16xf32>
    %626 = vector.broadcast %623 : f32 to vector<16x16xf32>
    %627 = arith.mulf %626, %625 : vector<16x16xf32>
    %628 = arith.addf %622, %627 : vector<16x16xf32>
    %c71 = arith.constant 71 : index
    %629 = memref.load %arg6[%c71] : memref<99xf32, #tpu.memory_space<smem>>
    %c1_345 = arith.constant 1 : index
    %c25_346 = arith.constant 25 : index
    %c0_347 = arith.constant 0 : index
    %630 = vector.load %arg9[%c1_345, %c25_346, %c0_347] : memref<7x44x128xf32, #tpu.memory_space<vmem>>, vector<1x16x16xf32>
    %631 = vector.shape_cast %630 : vector<1x16x16xf32> to vector<16x16xf32>
    %632 = vector.broadcast %629 : f32 to vector<16x16xf32>
    %633 = arith.mulf %632, %631 : vector<16x16xf32>
    %634 = arith.addf %628, %633 : vector<16x16xf32>
    %c78 = arith.constant 78 : index
    %635 = memref.load %arg6[%c78] : memref<99xf32, #tpu.memory_space<smem>>
    %c1_348 = arith.constant 1 : index
    %c26_349 = arith.constant 26 : index
    %c0_350 = arith.constant 0 : index
    %636 = vector.load %arg9[%c1_348, %c26_349, %c0_350] : memref<7x44x128xf32, #tpu.memory_space<vmem>>, vector<1x16x16xf32>
    %637 = vector.shape_cast %636 : vector<1x16x16xf32> to vector<16x16xf32>
    %638 = vector.broadcast %635 : f32 to vector<16x16xf32>
    %639 = arith.mulf %638, %637 : vector<16x16xf32>
    %640 = arith.addf %634, %639 : vector<16x16xf32>
    %c85 = arith.constant 85 : index
    %641 = memref.load %arg6[%c85] : memref<99xf32, #tpu.memory_space<smem>>
    %c1_351 = arith.constant 1 : index
    %c27_352 = arith.constant 27 : index
    %c0_353 = arith.constant 0 : index
    %642 = vector.load %arg9[%c1_351, %c27_352, %c0_353] : memref<7x44x128xf32, #tpu.memory_space<vmem>>, vector<1x16x16xf32>
    %643 = vector.shape_cast %642 : vector<1x16x16xf32> to vector<16x16xf32>
    %644 = vector.broadcast %641 : f32 to vector<16x16xf32>
    %645 = arith.mulf %644, %643 : vector<16x16xf32>
    %646 = arith.addf %640, %645 : vector<16x16xf32>
    %c92 = arith.constant 92 : index
    %647 = memref.load %arg6[%c92] : memref<99xf32, #tpu.memory_space<smem>>
    %c1_354 = arith.constant 1 : index
    %c28_355 = arith.constant 28 : index
    %c0_356 = arith.constant 0 : index
    %648 = vector.load %arg9[%c1_354, %c28_355, %c0_356] : memref<7x44x128xf32, #tpu.memory_space<vmem>>, vector<1x16x16xf32>
    %649 = vector.shape_cast %648 : vector<1x16x16xf32> to vector<16x16xf32>
    %650 = vector.broadcast %647 : f32 to vector<16x16xf32>
    %651 = arith.mulf %650, %649 : vector<16x16xf32>
    %652 = arith.addf %646, %651 : vector<16x16xf32>
    %c51 = arith.constant 51 : index
    %653 = memref.load %arg6[%c51] : memref<99xf32, #tpu.memory_space<smem>>
    %c2_357 = arith.constant 2 : index
    %c22_358 = arith.constant 22 : index
    %c0_359 = arith.constant 0 : index
    %654 = vector.load %arg9[%c2_357, %c22_358, %c0_359] : memref<7x44x128xf32, #tpu.memory_space<vmem>>, vector<1x16x16xf32>
    %655 = vector.shape_cast %654 : vector<1x16x16xf32> to vector<16x16xf32>
    %656 = vector.broadcast %653 : f32 to vector<16x16xf32>
    %657 = arith.mulf %656, %655 : vector<16x16xf32>
    %658 = arith.addf %652, %657 : vector<16x16xf32>
    %c58 = arith.constant 58 : index
    %659 = memref.load %arg6[%c58] : memref<99xf32, #tpu.memory_space<smem>>
    %c2_360 = arith.constant 2 : index
    %c23_361 = arith.constant 23 : index
    %c0_362 = arith.constant 0 : index
    %660 = vector.load %arg9[%c2_360, %c23_361, %c0_362] : memref<7x44x128xf32, #tpu.memory_space<vmem>>, vector<1x16x16xf32>
    %661 = vector.shape_cast %660 : vector<1x16x16xf32> to vector<16x16xf32>
    %662 = vector.broadcast %659 : f32 to vector<16x16xf32>
    %663 = arith.mulf %662, %661 : vector<16x16xf32>
    %664 = arith.addf %658, %663 : vector<16x16xf32>
    %c65 = arith.constant 65 : index
    %665 = memref.load %arg6[%c65] : memref<99xf32, #tpu.memory_space<smem>>
    %c2_363 = arith.constant 2 : index
    %c24_364 = arith.constant 24 : index
    %c0_365 = arith.constant 0 : index
    %666 = vector.load %arg9[%c2_363, %c24_364, %c0_365] : memref<7x44x128xf32, #tpu.memory_space<vmem>>, vector<1x16x16xf32>
    %667 = vector.shape_cast %666 : vector<1x16x16xf32> to vector<16x16xf32>
    %668 = vector.broadcast %665 : f32 to vector<16x16xf32>
    %669 = arith.mulf %668, %667 : vector<16x16xf32>
    %670 = arith.addf %664, %669 : vector<16x16xf32>
    %c72 = arith.constant 72 : index
    %671 = memref.load %arg6[%c72] : memref<99xf32, #tpu.memory_space<smem>>
    %c2_366 = arith.constant 2 : index
    %c25_367 = arith.constant 25 : index
    %c0_368 = arith.constant 0 : index
    %672 = vector.load %arg9[%c2_366, %c25_367, %c0_368] : memref<7x44x128xf32, #tpu.memory_space<vmem>>, vector<1x16x16xf32>
    %673 = vector.shape_cast %672 : vector<1x16x16xf32> to vector<16x16xf32>
    %674 = vector.broadcast %671 : f32 to vector<16x16xf32>
    %675 = arith.mulf %674, %673 : vector<16x16xf32>
    %676 = arith.addf %670, %675 : vector<16x16xf32>
    %c79 = arith.constant 79 : index
    %677 = memref.load %arg6[%c79] : memref<99xf32, #tpu.memory_space<smem>>
    %c2_369 = arith.constant 2 : index
    %c26_370 = arith.constant 26 : index
    %c0_371 = arith.constant 0 : index
    %678 = vector.load %arg9[%c2_369, %c26_370, %c0_371] : memref<7x44x128xf32, #tpu.memory_space<vmem>>, vector<1x16x16xf32>
    %679 = vector.shape_cast %678 : vector<1x16x16xf32> to vector<16x16xf32>
    %680 = vector.broadcast %677 : f32 to vector<16x16xf32>
    %681 = arith.mulf %680, %679 : vector<16x16xf32>
    %682 = arith.addf %676, %681 : vector<16x16xf32>
    %c86 = arith.constant 86 : index
    %683 = memref.load %arg6[%c86] : memref<99xf32, #tpu.memory_space<smem>>
    %c2_372 = arith.constant 2 : index
    %c27_373 = arith.constant 27 : index
    %c0_374 = arith.constant 0 : index
    %684 = vector.load %arg9[%c2_372, %c27_373, %c0_374] : memref<7x44x128xf32, #tpu.memory_space<vmem>>, vector<1x16x16xf32>
    %685 = vector.shape_cast %684 : vector<1x16x16xf32> to vector<16x16xf32>
    %686 = vector.broadcast %683 : f32 to vector<16x16xf32>
    %687 = arith.mulf %686, %685 : vector<16x16xf32>
    %688 = arith.addf %682, %687 : vector<16x16xf32>
    %c93 = arith.constant 93 : index
    %689 = memref.load %arg6[%c93] : memref<99xf32, #tpu.memory_space<smem>>
    %c2_375 = arith.constant 2 : index
    %c28_376 = arith.constant 28 : index
    %c0_377 = arith.constant 0 : index
    %690 = vector.load %arg9[%c2_375, %c28_376, %c0_377] : memref<7x44x128xf32, #tpu.memory_space<vmem>>, vector<1x16x16xf32>
    %691 = vector.shape_cast %690 : vector<1x16x16xf32> to vector<16x16xf32>
    %692 = vector.broadcast %689 : f32 to vector<16x16xf32>
    %693 = arith.mulf %692, %691 : vector<16x16xf32>
    %694 = arith.addf %688, %693 : vector<16x16xf32>
    %c52 = arith.constant 52 : index
    %695 = memref.load %arg6[%c52] : memref<99xf32, #tpu.memory_space<smem>>
    %c3_378 = arith.constant 3 : index
    %c22_379 = arith.constant 22 : index
    %c0_380 = arith.constant 0 : index
    %696 = vector.load %arg9[%c3_378, %c22_379, %c0_380] : memref<7x44x128xf32, #tpu.memory_space<vmem>>, vector<1x16x16xf32>
    %697 = vector.shape_cast %696 : vector<1x16x16xf32> to vector<16x16xf32>
    %698 = vector.broadcast %695 : f32 to vector<16x16xf32>
    %699 = arith.mulf %698, %697 : vector<16x16xf32>
    %700 = arith.addf %694, %699 : vector<16x16xf32>
    %c59 = arith.constant 59 : index
    %701 = memref.load %arg6[%c59] : memref<99xf32, #tpu.memory_space<smem>>
    %c3_381 = arith.constant 3 : index
    %c23_382 = arith.constant 23 : index
    %c0_383 = arith.constant 0 : index
    %702 = vector.load %arg9[%c3_381, %c23_382, %c0_383] : memref<7x44x128xf32, #tpu.memory_space<vmem>>, vector<1x16x16xf32>
    %703 = vector.shape_cast %702 : vector<1x16x16xf32> to vector<16x16xf32>
    %704 = vector.broadcast %701 : f32 to vector<16x16xf32>
    %705 = arith.mulf %704, %703 : vector<16x16xf32>
    %706 = arith.addf %700, %705 : vector<16x16xf32>
    %c66 = arith.constant 66 : index
    %707 = memref.load %arg6[%c66] : memref<99xf32, #tpu.memory_space<smem>>
    %c3_384 = arith.constant 3 : index
    %c24_385 = arith.constant 24 : index
    %c0_386 = arith.constant 0 : index
    %708 = vector.load %arg9[%c3_384, %c24_385, %c0_386] : memref<7x44x128xf32, #tpu.memory_space<vmem>>, vector<1x16x16xf32>
    %709 = vector.shape_cast %708 : vector<1x16x16xf32> to vector<16x16xf32>
    %710 = vector.broadcast %707 : f32 to vector<16x16xf32>
    %711 = arith.mulf %710, %709 : vector<16x16xf32>
    %712 = arith.addf %706, %711 : vector<16x16xf32>
    %c73 = arith.constant 73 : index
    %713 = memref.load %arg6[%c73] : memref<99xf32, #tpu.memory_space<smem>>
    %c3_387 = arith.constant 3 : index
    %c25_388 = arith.constant 25 : index
    %c0_389 = arith.constant 0 : index
    %714 = vector.load %arg9[%c3_387, %c25_388, %c0_389] : memref<7x44x128xf32, #tpu.memory_space<vmem>>, vector<1x16x16xf32>
    %715 = vector.shape_cast %714 : vector<1x16x16xf32> to vector<16x16xf32>
    %716 = vector.broadcast %713 : f32 to vector<16x16xf32>
    %717 = arith.mulf %716, %715 : vector<16x16xf32>
    %718 = arith.addf %712, %717 : vector<16x16xf32>
    %c80 = arith.constant 80 : index
    %719 = memref.load %arg6[%c80] : memref<99xf32, #tpu.memory_space<smem>>
    %c3_390 = arith.constant 3 : index
    %c26_391 = arith.constant 26 : index
    %c0_392 = arith.constant 0 : index
    %720 = vector.load %arg9[%c3_390, %c26_391, %c0_392] : memref<7x44x128xf32, #tpu.memory_space<vmem>>, vector<1x16x16xf32>
    %721 = vector.shape_cast %720 : vector<1x16x16xf32> to vector<16x16xf32>
    %722 = vector.broadcast %719 : f32 to vector<16x16xf32>
    %723 = arith.mulf %722, %721 : vector<16x16xf32>
    %724 = arith.addf %718, %723 : vector<16x16xf32>
    %c87 = arith.constant 87 : index
    %725 = memref.load %arg6[%c87] : memref<99xf32, #tpu.memory_space<smem>>
    %c3_393 = arith.constant 3 : index
    %c27_394 = arith.constant 27 : index
    %c0_395 = arith.constant 0 : index
    %726 = vector.load %arg9[%c3_393, %c27_394, %c0_395] : memref<7x44x128xf32, #tpu.memory_space<vmem>>, vector<1x16x16xf32>
    %727 = vector.shape_cast %726 : vector<1x16x16xf32> to vector<16x16xf32>
    %728 = vector.broadcast %725 : f32 to vector<16x16xf32>
    %729 = arith.mulf %728, %727 : vector<16x16xf32>
    %730 = arith.addf %724, %729 : vector<16x16xf32>
    %c94 = arith.constant 94 : index
    %731 = memref.load %arg6[%c94] : memref<99xf32, #tpu.memory_space<smem>>
    %c3_396 = arith.constant 3 : index
    %c28_397 = arith.constant 28 : index
    %c0_398 = arith.constant 0 : index
    %732 = vector.load %arg9[%c3_396, %c28_397, %c0_398] : memref<7x44x128xf32, #tpu.memory_space<vmem>>, vector<1x16x16xf32>
    %733 = vector.shape_cast %732 : vector<1x16x16xf32> to vector<16x16xf32>
    %734 = vector.broadcast %731 : f32 to vector<16x16xf32>
    %735 = arith.mulf %734, %733 : vector<16x16xf32>
    %736 = arith.addf %730, %735 : vector<16x16xf32>
    %c53 = arith.constant 53 : index
    %737 = memref.load %arg6[%c53] : memref<99xf32, #tpu.memory_space<smem>>
    %c4_399 = arith.constant 4 : index
    %c22_400 = arith.constant 22 : index
    %c0_401 = arith.constant 0 : index
    %738 = vector.load %arg9[%c4_399, %c22_400, %c0_401] : memref<7x44x128xf32, #tpu.memory_space<vmem>>, vector<1x16x16xf32>
    %739 = vector.shape_cast %738 : vector<1x16x16xf32> to vector<16x16xf32>
    %740 = vector.broadcast %737 : f32 to vector<16x16xf32>
    %741 = arith.mulf %740, %739 : vector<16x16xf32>
    %742 = arith.addf %736, %741 : vector<16x16xf32>
    %c60 = arith.constant 60 : index
    %743 = memref.load %arg6[%c60] : memref<99xf32, #tpu.memory_space<smem>>
    %c4_402 = arith.constant 4 : index
    %c23_403 = arith.constant 23 : index
    %c0_404 = arith.constant 0 : index
    %744 = vector.load %arg9[%c4_402, %c23_403, %c0_404] : memref<7x44x128xf32, #tpu.memory_space<vmem>>, vector<1x16x16xf32>
    %745 = vector.shape_cast %744 : vector<1x16x16xf32> to vector<16x16xf32>
    %746 = vector.broadcast %743 : f32 to vector<16x16xf32>
    %747 = arith.mulf %746, %745 : vector<16x16xf32>
    %748 = arith.addf %742, %747 : vector<16x16xf32>
    %c67 = arith.constant 67 : index
    %749 = memref.load %arg6[%c67] : memref<99xf32, #tpu.memory_space<smem>>
    %c4_405 = arith.constant 4 : index
    %c24_406 = arith.constant 24 : index
    %c0_407 = arith.constant 0 : index
    %750 = vector.load %arg9[%c4_405, %c24_406, %c0_407] : memref<7x44x128xf32, #tpu.memory_space<vmem>>, vector<1x16x16xf32>
    %751 = vector.shape_cast %750 : vector<1x16x16xf32> to vector<16x16xf32>
    %752 = vector.broadcast %749 : f32 to vector<16x16xf32>
    %753 = arith.mulf %752, %751 : vector<16x16xf32>
    %754 = arith.addf %748, %753 : vector<16x16xf32>
    %c74 = arith.constant 74 : index
    %755 = memref.load %arg6[%c74] : memref<99xf32, #tpu.memory_space<smem>>
    %c4_408 = arith.constant 4 : index
    %c25_409 = arith.constant 25 : index
    %c0_410 = arith.constant 0 : index
    %756 = vector.load %arg9[%c4_408, %c25_409, %c0_410] : memref<7x44x128xf32, #tpu.memory_space<vmem>>, vector<1x16x16xf32>
    %757 = vector.shape_cast %756 : vector<1x16x16xf32> to vector<16x16xf32>
    %758 = vector.broadcast %755 : f32 to vector<16x16xf32>
    %759 = arith.mulf %758, %757 : vector<16x16xf32>
    %760 = arith.addf %754, %759 : vector<16x16xf32>
    %c81 = arith.constant 81 : index
    %761 = memref.load %arg6[%c81] : memref<99xf32, #tpu.memory_space<smem>>
    %c4_411 = arith.constant 4 : index
    %c26_412 = arith.constant 26 : index
    %c0_413 = arith.constant 0 : index
    %762 = vector.load %arg9[%c4_411, %c26_412, %c0_413] : memref<7x44x128xf32, #tpu.memory_space<vmem>>, vector<1x16x16xf32>
    %763 = vector.shape_cast %762 : vector<1x16x16xf32> to vector<16x16xf32>
    %764 = vector.broadcast %761 : f32 to vector<16x16xf32>
    %765 = arith.mulf %764, %763 : vector<16x16xf32>
    %766 = arith.addf %760, %765 : vector<16x16xf32>
    %c88 = arith.constant 88 : index
    %767 = memref.load %arg6[%c88] : memref<99xf32, #tpu.memory_space<smem>>
    %c4_414 = arith.constant 4 : index
    %c27_415 = arith.constant 27 : index
    %c0_416 = arith.constant 0 : index
    %768 = vector.load %arg9[%c4_414, %c27_415, %c0_416] : memref<7x44x128xf32, #tpu.memory_space<vmem>>, vector<1x16x16xf32>
    %769 = vector.shape_cast %768 : vector<1x16x16xf32> to vector<16x16xf32>
    %770 = vector.broadcast %767 : f32 to vector<16x16xf32>
    %771 = arith.mulf %770, %769 : vector<16x16xf32>
    %772 = arith.addf %766, %771 : vector<16x16xf32>
    %c95 = arith.constant 95 : index
    %773 = memref.load %arg6[%c95] : memref<99xf32, #tpu.memory_space<smem>>
    %c4_417 = arith.constant 4 : index
    %c28_418 = arith.constant 28 : index
    %c0_419 = arith.constant 0 : index
    %774 = vector.load %arg9[%c4_417, %c28_418, %c0_419] : memref<7x44x128xf32, #tpu.memory_space<vmem>>, vector<1x16x16xf32>
    %775 = vector.shape_cast %774 : vector<1x16x16xf32> to vector<16x16xf32>
    %776 = vector.broadcast %773 : f32 to vector<16x16xf32>
    %777 = arith.mulf %776, %775 : vector<16x16xf32>
    %778 = arith.addf %772, %777 : vector<16x16xf32>
    %c54 = arith.constant 54 : index
    %779 = memref.load %arg6[%c54] : memref<99xf32, #tpu.memory_space<smem>>
    %c5_420 = arith.constant 5 : index
    %c22_421 = arith.constant 22 : index
    %c0_422 = arith.constant 0 : index
    %780 = vector.load %arg9[%c5_420, %c22_421, %c0_422] : memref<7x44x128xf32, #tpu.memory_space<vmem>>, vector<1x16x16xf32>
    %781 = vector.shape_cast %780 : vector<1x16x16xf32> to vector<16x16xf32>
    %782 = vector.broadcast %779 : f32 to vector<16x16xf32>
    %783 = arith.mulf %782, %781 : vector<16x16xf32>
    %784 = arith.addf %778, %783 : vector<16x16xf32>
    %c61 = arith.constant 61 : index
    %785 = memref.load %arg6[%c61] : memref<99xf32, #tpu.memory_space<smem>>
    %c5_423 = arith.constant 5 : index
    %c23_424 = arith.constant 23 : index
    %c0_425 = arith.constant 0 : index
    %786 = vector.load %arg9[%c5_423, %c23_424, %c0_425] : memref<7x44x128xf32, #tpu.memory_space<vmem>>, vector<1x16x16xf32>
    %787 = vector.shape_cast %786 : vector<1x16x16xf32> to vector<16x16xf32>
    %788 = vector.broadcast %785 : f32 to vector<16x16xf32>
    %789 = arith.mulf %788, %787 : vector<16x16xf32>
    %790 = arith.addf %784, %789 : vector<16x16xf32>
    %c68 = arith.constant 68 : index
    %791 = memref.load %arg6[%c68] : memref<99xf32, #tpu.memory_space<smem>>
    %c5_426 = arith.constant 5 : index
    %c24_427 = arith.constant 24 : index
    %c0_428 = arith.constant 0 : index
    %792 = vector.load %arg9[%c5_426, %c24_427, %c0_428] : memref<7x44x128xf32, #tpu.memory_space<vmem>>, vector<1x16x16xf32>
    %793 = vector.shape_cast %792 : vector<1x16x16xf32> to vector<16x16xf32>
    %794 = vector.broadcast %791 : f32 to vector<16x16xf32>
    %795 = arith.mulf %794, %793 : vector<16x16xf32>
    %796 = arith.addf %790, %795 : vector<16x16xf32>
    %c75 = arith.constant 75 : index
    %797 = memref.load %arg6[%c75] : memref<99xf32, #tpu.memory_space<smem>>
    %c5_429 = arith.constant 5 : index
    %c25_430 = arith.constant 25 : index
    %c0_431 = arith.constant 0 : index
    %798 = vector.load %arg9[%c5_429, %c25_430, %c0_431] : memref<7x44x128xf32, #tpu.memory_space<vmem>>, vector<1x16x16xf32>
    %799 = vector.shape_cast %798 : vector<1x16x16xf32> to vector<16x16xf32>
    %800 = vector.broadcast %797 : f32 to vector<16x16xf32>
    %801 = arith.mulf %800, %799 : vector<16x16xf32>
    %802 = arith.addf %796, %801 : vector<16x16xf32>
    %c82 = arith.constant 82 : index
    %803 = memref.load %arg6[%c82] : memref<99xf32, #tpu.memory_space<smem>>
    %c5_432 = arith.constant 5 : index
    %c26_433 = arith.constant 26 : index
    %c0_434 = arith.constant 0 : index
    %804 = vector.load %arg9[%c5_432, %c26_433, %c0_434] : memref<7x44x128xf32, #tpu.memory_space<vmem>>, vector<1x16x16xf32>
    %805 = vector.shape_cast %804 : vector<1x16x16xf32> to vector<16x16xf32>
    %806 = vector.broadcast %803 : f32 to vector<16x16xf32>
    %807 = arith.mulf %806, %805 : vector<16x16xf32>
    %808 = arith.addf %802, %807 : vector<16x16xf32>
    %c89 = arith.constant 89 : index
    %809 = memref.load %arg6[%c89] : memref<99xf32, #tpu.memory_space<smem>>
    %c5_435 = arith.constant 5 : index
    %c27_436 = arith.constant 27 : index
    %c0_437 = arith.constant 0 : index
    %810 = vector.load %arg9[%c5_435, %c27_436, %c0_437] : memref<7x44x128xf32, #tpu.memory_space<vmem>>, vector<1x16x16xf32>
    %811 = vector.shape_cast %810 : vector<1x16x16xf32> to vector<16x16xf32>
    %812 = vector.broadcast %809 : f32 to vector<16x16xf32>
    %813 = arith.mulf %812, %811 : vector<16x16xf32>
    %814 = arith.addf %808, %813 : vector<16x16xf32>
    %c96 = arith.constant 96 : index
    %815 = memref.load %arg6[%c96] : memref<99xf32, #tpu.memory_space<smem>>
    %c5_438 = arith.constant 5 : index
    %c28_439 = arith.constant 28 : index
    %c0_440 = arith.constant 0 : index
    %816 = vector.load %arg9[%c5_438, %c28_439, %c0_440] : memref<7x44x128xf32, #tpu.memory_space<vmem>>, vector<1x16x16xf32>
    %817 = vector.shape_cast %816 : vector<1x16x16xf32> to vector<16x16xf32>
    %818 = vector.broadcast %815 : f32 to vector<16x16xf32>
    %819 = arith.mulf %818, %817 : vector<16x16xf32>
    %820 = arith.addf %814, %819 : vector<16x16xf32>
    %c55 = arith.constant 55 : index
    %821 = memref.load %arg6[%c55] : memref<99xf32, #tpu.memory_space<smem>>
    %c6_441 = arith.constant 6 : index
    %c22_442 = arith.constant 22 : index
    %c0_443 = arith.constant 0 : index
    %822 = vector.load %arg9[%c6_441, %c22_442, %c0_443] : memref<7x44x128xf32, #tpu.memory_space<vmem>>, vector<1x16x16xf32>
    %823 = vector.shape_cast %822 : vector<1x16x16xf32> to vector<16x16xf32>
    %824 = vector.broadcast %821 : f32 to vector<16x16xf32>
    %825 = arith.mulf %824, %823 : vector<16x16xf32>
    %826 = arith.addf %820, %825 : vector<16x16xf32>
    %c62 = arith.constant 62 : index
    %827 = memref.load %arg6[%c62] : memref<99xf32, #tpu.memory_space<smem>>
    %c6_444 = arith.constant 6 : index
    %c23_445 = arith.constant 23 : index
    %c0_446 = arith.constant 0 : index
    %828 = vector.load %arg9[%c6_444, %c23_445, %c0_446] : memref<7x44x128xf32, #tpu.memory_space<vmem>>, vector<1x16x16xf32>
    %829 = vector.shape_cast %828 : vector<1x16x16xf32> to vector<16x16xf32>
    %830 = vector.broadcast %827 : f32 to vector<16x16xf32>
    %831 = arith.mulf %830, %829 : vector<16x16xf32>
    %832 = arith.addf %826, %831 : vector<16x16xf32>
    %c69 = arith.constant 69 : index
    %833 = memref.load %arg6[%c69] : memref<99xf32, #tpu.memory_space<smem>>
    %c6_447 = arith.constant 6 : index
    %c24_448 = arith.constant 24 : index
    %c0_449 = arith.constant 0 : index
    %834 = vector.load %arg9[%c6_447, %c24_448, %c0_449] : memref<7x44x128xf32, #tpu.memory_space<vmem>>, vector<1x16x16xf32>
    %835 = vector.shape_cast %834 : vector<1x16x16xf32> to vector<16x16xf32>
    %836 = vector.broadcast %833 : f32 to vector<16x16xf32>
    %837 = arith.mulf %836, %835 : vector<16x16xf32>
    %838 = arith.addf %832, %837 : vector<16x16xf32>
    %c76 = arith.constant 76 : index
    %839 = memref.load %arg6[%c76] : memref<99xf32, #tpu.memory_space<smem>>
    %c6_450 = arith.constant 6 : index
    %c25_451 = arith.constant 25 : index
    %c0_452 = arith.constant 0 : index
    %840 = vector.load %arg9[%c6_450, %c25_451, %c0_452] : memref<7x44x128xf32, #tpu.memory_space<vmem>>, vector<1x16x16xf32>
    %841 = vector.shape_cast %840 : vector<1x16x16xf32> to vector<16x16xf32>
    %842 = vector.broadcast %839 : f32 to vector<16x16xf32>
    %843 = arith.mulf %842, %841 : vector<16x16xf32>
    %844 = arith.addf %838, %843 : vector<16x16xf32>
    %c83 = arith.constant 83 : index
    %845 = memref.load %arg6[%c83] : memref<99xf32, #tpu.memory_space<smem>>
    %c6_453 = arith.constant 6 : index
    %c26_454 = arith.constant 26 : index
    %c0_455 = arith.constant 0 : index
    %846 = vector.load %arg9[%c6_453, %c26_454, %c0_455] : memref<7x44x128xf32, #tpu.memory_space<vmem>>, vector<1x16x16xf32>
    %847 = vector.shape_cast %846 : vector<1x16x16xf32> to vector<16x16xf32>
    %848 = vector.broadcast %845 : f32 to vector<16x16xf32>
    %849 = arith.mulf %848, %847 : vector<16x16xf32>
    %850 = arith.addf %844, %849 : vector<16x16xf32>
    %c90 = arith.constant 90 : index
    %851 = memref.load %arg6[%c90] : memref<99xf32, #tpu.memory_space<smem>>
    %c6_456 = arith.constant 6 : index
    %c27_457 = arith.constant 27 : index
    %c0_458 = arith.constant 0 : index
    %852 = vector.load %arg9[%c6_456, %c27_457, %c0_458] : memref<7x44x128xf32, #tpu.memory_space<vmem>>, vector<1x16x16xf32>
    %853 = vector.shape_cast %852 : vector<1x16x16xf32> to vector<16x16xf32>
    %854 = vector.broadcast %851 : f32 to vector<16x16xf32>
    %855 = arith.mulf %854, %853 : vector<16x16xf32>
    %856 = arith.addf %850, %855 : vector<16x16xf32>
    %c97 = arith.constant 97 : index
    %857 = memref.load %arg6[%c97] : memref<99xf32, #tpu.memory_space<smem>>
    %c6_459 = arith.constant 6 : index
    %c28_460 = arith.constant 28 : index
    %c0_461 = arith.constant 0 : index
    %858 = vector.load %arg9[%c6_459, %c28_460, %c0_461] : memref<7x44x128xf32, #tpu.memory_space<vmem>>, vector<1x16x16xf32>
    %859 = vector.shape_cast %858 : vector<1x16x16xf32> to vector<16x16xf32>
    %860 = vector.broadcast %857 : f32 to vector<16x16xf32>
    %861 = arith.mulf %860, %859 : vector<16x16xf32>
    %862 = arith.addf %856, %861 : vector<16x16xf32>
    %863 = arith.negf %862 : vector<16x16xf32>
    %864 = math.exp %863 : vector<16x16xf32>
    %cst_462 = arith.constant 1.000000e+00 : f32
    %865 = vector.broadcast %cst_462 : f32 to vector<16x16xf32>
    %866 = arith.addf %865, %864 : vector<16x16xf32>
    %867 = arith.divf %865, %866 : vector<16x16xf32>
    %868 = vector.extract_strided_slice %867 {offsets = [0, 0], sizes = [1, 16], strides = [1, 1]} : vector<16x16xf32> to vector<1x16xf32>
    %c0_463 = arith.constant 0 : index
    %c0_464 = arith.constant 0 : index
    %869 = vector.load %arg10[%c0_463, %c0_464] : memref<1x256xf32, #tpu.memory_space<vmem>>, vector<1x16xf32>
    tpu.vector_store %arg10[%c0_463, %c0_464], %868 {strides = array<i32>} : memref<1x256xf32, #tpu.memory_space<vmem>>, vector<1x16xf32>,
    %870 = vector.extract_strided_slice %867 {offsets = [1, 0], sizes = [1, 16], strides = [1, 1]} : vector<16x16xf32> to vector<1x16xf32>
    %c0_465 = arith.constant 0 : index
    %c16_466 = arith.constant 16 : index
    %871 = vector.load %arg10[%c0_465, %c16_466] : memref<1x256xf32, #tpu.memory_space<vmem>>, vector<1x16xf32>
    tpu.vector_store %arg10[%c0_465, %c16_466], %870 {strides = array<i32>} : memref<1x256xf32, #tpu.memory_space<vmem>>, vector<1x16xf32>,
    %872 = vector.extract_strided_slice %867 {offsets = [2, 0], sizes = [1, 16], strides = [1, 1]} : vector<16x16xf32> to vector<1x16xf32>
    %c0_467 = arith.constant 0 : index
    %c32_468 = arith.constant 32 : index
    %873 = vector.load %arg10[%c0_467, %c32_468] : memref<1x256xf32, #tpu.memory_space<vmem>>, vector<1x16xf32>
    tpu.vector_store %arg10[%c0_467, %c32_468], %872 {strides = array<i32>} : memref<1x256xf32, #tpu.memory_space<vmem>>, vector<1x16xf32>,
    %874 = vector.extract_strided_slice %867 {offsets = [3, 0], sizes = [1, 16], strides = [1, 1]} : vector<16x16xf32> to vector<1x16xf32>
    %c0_469 = arith.constant 0 : index
    %c48_470 = arith.constant 48 : index
    %875 = vector.load %arg10[%c0_469, %c48_470] : memref<1x256xf32, #tpu.memory_space<vmem>>, vector<1x16xf32>
    tpu.vector_store %arg10[%c0_469, %c48_470], %874 {strides = array<i32>} : memref<1x256xf32, #tpu.memory_space<vmem>>, vector<1x16xf32>,
    %876 = vector.extract_strided_slice %867 {offsets = [4, 0], sizes = [1, 16], strides = [1, 1]} : vector<16x16xf32> to vector<1x16xf32>
    %c0_471 = arith.constant 0 : index
    %c64_472 = arith.constant 64 : index
    %877 = vector.load %arg10[%c0_471, %c64_472] : memref<1x256xf32, #tpu.memory_space<vmem>>, vector<1x16xf32>
    tpu.vector_store %arg10[%c0_471, %c64_472], %876 {strides = array<i32>} : memref<1x256xf32, #tpu.memory_space<vmem>>, vector<1x16xf32>,
    %878 = vector.extract_strided_slice %867 {offsets = [5, 0], sizes = [1, 16], strides = [1, 1]} : vector<16x16xf32> to vector<1x16xf32>
    %c0_473 = arith.constant 0 : index
    %c80_474 = arith.constant 80 : index
    %879 = vector.load %arg10[%c0_473, %c80_474] : memref<1x256xf32, #tpu.memory_space<vmem>>, vector<1x16xf32>
    tpu.vector_store %arg10[%c0_473, %c80_474], %878 {strides = array<i32>} : memref<1x256xf32, #tpu.memory_space<vmem>>, vector<1x16xf32>,
    %880 = vector.extract_strided_slice %867 {offsets = [6, 0], sizes = [1, 16], strides = [1, 1]} : vector<16x16xf32> to vector<1x16xf32>
    %c0_475 = arith.constant 0 : index
    %c96_476 = arith.constant 96 : index
    %881 = vector.load %arg10[%c0_475, %c96_476] : memref<1x256xf32, #tpu.memory_space<vmem>>, vector<1x16xf32>
    tpu.vector_store %arg10[%c0_475, %c96_476], %880 {strides = array<i32>} : memref<1x256xf32, #tpu.memory_space<vmem>>, vector<1x16xf32>,
    %882 = vector.extract_strided_slice %867 {offsets = [7, 0], sizes = [1, 16], strides = [1, 1]} : vector<16x16xf32> to vector<1x16xf32>
    %c0_477 = arith.constant 0 : index
    %c112 = arith.constant 112 : index
    %883 = vector.load %arg10[%c0_477, %c112] : memref<1x256xf32, #tpu.memory_space<vmem>>, vector<1x16xf32>
    tpu.vector_store %arg10[%c0_477, %c112], %882 {strides = array<i32>} : memref<1x256xf32, #tpu.memory_space<vmem>>, vector<1x16xf32>,
    %884 = vector.extract_strided_slice %867 {offsets = [8, 0], sizes = [1, 16], strides = [1, 1]} : vector<16x16xf32> to vector<1x16xf32>
    %c0_478 = arith.constant 0 : index
    %c128 = arith.constant 128 : index
    %885 = vector.load %arg10[%c0_478, %c128] : memref<1x256xf32, #tpu.memory_space<vmem>>, vector<1x16xf32>
    tpu.vector_store %arg10[%c0_478, %c128], %884 {strides = array<i32>} : memref<1x256xf32, #tpu.memory_space<vmem>>, vector<1x16xf32>,
    %886 = vector.extract_strided_slice %867 {offsets = [9, 0], sizes = [1, 16], strides = [1, 1]} : vector<16x16xf32> to vector<1x16xf32>
    %c0_479 = arith.constant 0 : index
    %c144 = arith.constant 144 : index
    %887 = vector.load %arg10[%c0_479, %c144] : memref<1x256xf32, #tpu.memory_space<vmem>>, vector<1x16xf32>
    tpu.vector_store %arg10[%c0_479, %c144], %886 {strides = array<i32>} : memref<1x256xf32, #tpu.memory_space<vmem>>, vector<1x16xf32>,
    %888 = vector.extract_strided_slice %867 {offsets = [10, 0], sizes = [1, 16], strides = [1, 1]} : vector<16x16xf32> to vector<1x16xf32>
    %c0_480 = arith.constant 0 : index
    %c160 = arith.constant 160 : index
    %889 = vector.load %arg10[%c0_480, %c160] : memref<1x256xf32, #tpu.memory_space<vmem>>, vector<1x16xf32>
    tpu.vector_store %arg10[%c0_480, %c160], %888 {strides = array<i32>} : memref<1x256xf32, #tpu.memory_space<vmem>>, vector<1x16xf32>,
    %890 = vector.extract_strided_slice %867 {offsets = [11, 0], sizes = [1, 16], strides = [1, 1]} : vector<16x16xf32> to vector<1x16xf32>
    %c0_481 = arith.constant 0 : index
    %c176 = arith.constant 176 : index
    %891 = vector.load %arg10[%c0_481, %c176] : memref<1x256xf32, #tpu.memory_space<vmem>>, vector<1x16xf32>
    tpu.vector_store %arg10[%c0_481, %c176], %890 {strides = array<i32>} : memref<1x256xf32, #tpu.memory_space<vmem>>, vector<1x16xf32>,
    %892 = vector.extract_strided_slice %867 {offsets = [12, 0], sizes = [1, 16], strides = [1, 1]} : vector<16x16xf32> to vector<1x16xf32>
    %c0_482 = arith.constant 0 : index
    %c192 = arith.constant 192 : index
    %893 = vector.load %arg10[%c0_482, %c192] : memref<1x256xf32, #tpu.memory_space<vmem>>, vector<1x16xf32>
    tpu.vector_store %arg10[%c0_482, %c192], %892 {strides = array<i32>} : memref<1x256xf32, #tpu.memory_space<vmem>>, vector<1x16xf32>,
    %894 = vector.extract_strided_slice %867 {offsets = [13, 0], sizes = [1, 16], strides = [1, 1]} : vector<16x16xf32> to vector<1x16xf32>
    %c0_483 = arith.constant 0 : index
    %c208 = arith.constant 208 : index
    %895 = vector.load %arg10[%c0_483, %c208] : memref<1x256xf32, #tpu.memory_space<vmem>>, vector<1x16xf32>
    tpu.vector_store %arg10[%c0_483, %c208], %894 {strides = array<i32>} : memref<1x256xf32, #tpu.memory_space<vmem>>, vector<1x16xf32>,
    %896 = vector.extract_strided_slice %867 {offsets = [14, 0], sizes = [1, 16], strides = [1, 1]} : vector<16x16xf32> to vector<1x16xf32>
    %c0_484 = arith.constant 0 : index
    %c224 = arith.constant 224 : index
    %897 = vector.load %arg10[%c0_484, %c224] : memref<1x256xf32, #tpu.memory_space<vmem>>, vector<1x16xf32>
    tpu.vector_store %arg10[%c0_484, %c224], %896 {strides = array<i32>} : memref<1x256xf32, #tpu.memory_space<vmem>>, vector<1x16xf32>,
    %898 = vector.extract_strided_slice %867 {offsets = [15, 0], sizes = [1, 16], strides = [1, 1]} : vector<16x16xf32> to vector<1x16xf32>
    %c0_485 = arith.constant 0 : index
    %c240 = arith.constant 240 : index
    %899 = vector.load %arg10[%c0_485, %c240] : memref<1x256xf32, #tpu.memory_space<vmem>>, vector<1x16xf32>
    tpu.vector_store %arg10[%c0_485, %c240], %898 {strides = array<i32>} : memref<1x256xf32, #tpu.memory_space<vmem>>, vector<1x16xf32>,
    %c0_486 = arith.constant 0 : index
    %c0_487 = arith.constant 0 : index
    %c0_488 = arith.constant 0 : index
    %900 = vector.load %arg7[%c0_486, %c0_487, %c0_488] : memref<1x8x256xf32, #tpu.memory_space<vmem>>, vector<1x8x256xf32>
    %901 = vector.shape_cast %900 : vector<1x8x256xf32> to vector<8x256xf32>
    %c0_489 = arith.constant 0 : index
    %c0_490 = arith.constant 0 : index
    %902 = vector.load %arg10[%c0_489, %c0_490] : memref<1x256xf32, #tpu.memory_space<vmem>>, vector<1x256xf32>
    %903 = vector.broadcast %902 : vector<1x256xf32> to vector<8x256xf32>
    %904 = arith.mulf %901, %903 : vector<8x256xf32>
    %c0_491 = arith.constant 0 : index
    %c0_492 = arith.constant 0 : index
    %c0_493 = arith.constant 0 : index
    %905 = vector.load %arg7[%c0_491, %c0_492, %c0_493] : memref<1x8x256xf32, #tpu.memory_space<vmem>>, vector<1x8x256xf32>
    %906 = vector.shape_cast %905 : vector<1x8x256xf32> to vector<8x256xf32>
    %907 = vector.shape_cast %904 : vector<8x256xf32> to vector<1x8x256xf32>
    tpu.vector_store %arg7[%c0_491, %c0_492, %c0_493], %907 {strides = array<i32>} : memref<1x8x256xf32, #tpu.memory_space<vmem>>, vector<1x8x256xf32>,
    return
  }
  func.func @transform_0(%arg0: i32) -> (i32, i32, i32) {
    %c0_i32 = arith.constant 0 : i32
    %c0_i32_0 = arith.constant 0 : i32
    %c0_i32_1 = arith.constant 0 : i32
    return %arg0, %c0_i32, %c0_i32_0 : i32, i32, i32
  }
  func.func @transform_1(%arg0: i32) -> (i32, i32) {
    %c0_i32 = arith.constant 0 : i32
    %c0_i32_0 = arith.constant 0 : i32
    %c0_i32_1 = arith.constant 0 : i32
    return %c0_i32, %c0_i32_0 : i32, i32
  }
  func.func @transform_2(%arg0: i32) -> (i32, i32) {
    %c0_i32 = arith.constant 0 : i32
    %c0_i32_0 = arith.constant 0 : i32
    %c0_i32_1 = arith.constant 0 : i32
    return %c0_i32, %c0_i32_0 : i32, i32
  }
  func.func @transform_3(%arg0: i32) -> (i32, i32) {
    %c0_i32 = arith.constant 0 : i32
    %c0_i32_0 = arith.constant 0 : i32
    %c0_i32_1 = arith.constant 0 : i32
    return %c0_i32, %c0_i32_0 : i32, i32
  }
  func.func @transform_4(%arg0: i32) -> (i32, i32) {
    %c0_i32 = arith.constant 0 : i32
    %c0_i32_0 = arith.constant 0 : i32
    %c0_i32_1 = arith.constant 0 : i32
    return %c0_i32, %c0_i32_0 : i32, i32
  }
  func.func @transform_5(%arg0: i32) -> i32 {
    %c0_i32 = arith.constant 0 : i32
    %c0_i32_0 = arith.constant 0 : i32
    return %c0_i32 : i32
  }
  func.func @transform_6(%arg0: i32) -> (i32, i32, i32) {
    %c0_i32 = arith.constant 0 : i32
    %c0_i32_0 = arith.constant 0 : i32
    %c0_i32_1 = arith.constant 0 : i32
    return %arg0, %c0_i32, %c0_i32_0 : i32, i32, i32
  }
}

</mosaic_0001>

<bundles_post_ra>
// kernel: tpu_custom_call.1
= control target key start
LH: loop header
LB: loop body
LE: loop exit
PB: predicated region body
PF: predicated region fallthrough
CT: control target
= control target key end

     0   :  { %s3148_s0 = inlined_call_operand.hbm [shape: f32[2,8,256], index: 0, kind: input, shape index: {}]   ;;  %s3149_s1 = inlined_call_operand.vmem [shape: f32[8,2], index: 1, kind: input, shape index: {}]   ;;  %s3150_s2 = inlined_call_operand.vmem [shape: f32[1,2], index: 2, kind: input, shape index: {}]   ;;  %s3151_s3 = inlined_call_operand.vmem [shape: f32[8,2], index: 3, kind: input, shape index: {}]   ;;  %s3152_s4 = inlined_call_operand.vmem [shape: f32[8,1], index: 4, kind: input, shape index: {}]   ;;  %s3153_s5 = inlined_call_operand.vmem [shape: f32[99], index: 5, kind: input, shape index: {}]   ;;  %s3154_s6 = inlined_call_operand.hbm [shape: f32[2,8,256], index: 6, kind: output, shape index: {}]  }
   0x1   :  { %3159 = sst [smem:[#allocation14_spill]] %s3153_s5 }
   0x2   :  { %11 = vsyncpa [#allocation6], 0 }
   0x3   :  { %13 = vsyncpa [#allocation6 + $0x1], 0 }
   0x4   :  { %14 = vsyncpa [#allocation8], 0 }
   0x5   :  { %15 = vsyncpa [#allocation7], 0 }
   0x6   :  { %17 = vsyncpa [#allocation7 + $0x1], 0  ;;  %s2301_s21 = smov 0   ;;  %s2303_s22 = smov 0  }
   0x7   :  { %s2305_s23 = smov 0   ;;  %s2307_s24 = smov 0  }
   0x8 LB: > { %s2322_s25 = sadd.s32 4294967295, %s2236_s24   ;;  %s1895_s26 = sadd.s32 4294967294, %s2236_s24   ;;  %s2236_s24 = sphi %s2307_s24, %s3199_s24   ;;  %s2232_s23 = sphi %s2305_s23, %s3198_s23   ;;  %s2228_s22 = sphi %s2303_s22, %s3197_s22   ;;  %s2224_s21 = sphi %s2301_s21, %s3196_s21  }
   0x9   : > { %p43_p0 = scmp.ne.s32.totalorder %s2228_s22, %s2224_s21  ;;  %p3155_p1 = scmp.eq.s32.totalorder %s2322_s25, 0 }
   0xa   : > { %p178_p3 = scmp.eq.s32.totalorder %s1895_s26, 1  ;;  %p1896_p5 = scmp.ge.s32.totalorder %s2236_s24, 1 }
   0xb   : > { %p2331_p4 = por %p3155_p1, %p43_p0  ;;  %p185_p7 = scmp.lt.s32.totalorder %s2236_s24, 3 }
   0xc   : > { %p2336_p6 = por %p178_p3, %p43_p0  ;;  %s3162_s5 = sld [smem:[#allocation14_spill]] }
   0xd   : > { %s3160_s27 = scalar_select %p2331_p4, 1, 0 }
   0xe   : > { %s3161_s28 = scalar_select %p2336_p6, 1, 0 }
   0xf   : > { %p2344_p8 = pnand %p1896_p5, %p185_p7  ;;  %s2352_s9 = sadd.s32 1, %s2236_s24  }
  0x10   : > { %s27_s11 = ssub.s32 %s2236_s24, %s2352_s9  ;;  %s30_s13 = sadd.s32 1, %s2232_s23 }
  0x11   : > { %s3163_s8 = scalar_select %p2344_p8, 1, 0 }
  0x12   : > { %s210_s7 = sshll.u32 %s3162_s5, 4  ;;  %p2022_p10 = pneg %p2344_p8  ;;  %s211_s7 = int_to_ptr.vmem [resolvable:$true] %s210_s7 }
  0x13   : > { %p2362_p12 = scmp.eq.s32.totalorder %s27_s11, 0  ;;  %p37_p13 = scmp.ne.s32.totalorder %s2232_s23, %s2228_s22 }
  0x14   : > { %p2356_p11 = pnand %p2022_p10, %p3155_p1  ;;  %s2125_s14 = scalar_lea.vmem %s211_s7, 16 }
  0x15   : > { %p2126_p0 = scmp.ne.s32.totalorder %s211_s7, %s2125_s14  ;;  %p2133_p9 = scmp.lt.s32.totalorder %s211_s7, %s211_s7 }
  0x16   : > { %p2127_p3 = pneg %p2356_p11  ;;  %p2134_p2 = scmp.lt.s32.totalorder %s2125_s14, %s2125_s14 }
  0x18   : > { %p2128_p5 = pnand %p2127_p3, %p2126_p0  ;;  %p2135_p10 = por %p2134_p2, %p2133_p9 }
  0x1a   : > { %p2129_p7 = pneg %p2128_p5 }
  0x1c   : > { %p2136_p1 = pnand %p2135_p10, %p2129_p7 }
  0x1e   : > { %2139 = shalt.err (!%p2136_p1)
}
  0x1f   : > { %s2238_s15 = smov [#allocation9]   ;;  %p38_p2 = scmp.eq.s32.totalorder %s2236_s24, 0 }
  0x20   : > { %2025 = dma.vmem_to_smem (!%p2356_p11), %s211_s7, 16, %s2238_s15, [#allocation8]  }
  0x21   : > { %s2376_s16 = scalar_select %p2362_p12, %s2232_s23, %s30_s13  }
  0x22   : > { %p3166_p1 = scmp.eq.s32.totalorder %s2322_s25, 1  ;;  %p2035_p0 = scmp.lt.s32.totalorder %s2236_s24, 2 }
  0x23   : > { %s221_s18 = sand.u32 1, %s2232_s23   ;;  %p39_p3 = por %p38_p2, %p37_p13 }
  0x24   : > { %p2384_p9 = por %p3166_p1, %p37_p13  ;;  %s1899_s19 = sshll.u32 %s221_s18, 4 }
  0x25   : > { %s2012_s20 = sshll.u32 %s2236_s24, 8  ;;  %s225_s7 = scalar_lea.vmem [#allocation5], %s1899_s19 }
  0x26   : > { %s3167_s17 = scalar_select %p2384_p9, 1, 0 }
  0x27   : > { %s2397_s30 = scalar_lea.hbm %s3148_s0, %s2012_s20  ;;  %s233_s10 = sshll.u32 %s225_s7, 4  ;;  %s234_s10 = int_to_ptr.vmem [resolvable:$true] %s233_s10 }
  0x28   : > { %p2399_p11 = pnand %p2035_p0, %p39_p3  ;;  %s222_s12 = scalar_lea.sflag [#allocation6], %s221_s18 }
  0x29   : > { %s2140_s13 = scalar_lea.hbm %s2397_s30, 256  ;;  %s2145_s20 = scalar_lea.hbm %s3148_s0, 512 }
  0x2a   : > { %p2141_p12 = scmp.ne.s32.totalorder %s2397_s30, %s2140_s13  ;;  %p2142_p13 = pneg %p2399_p11 }
  0x2b   : > { %p2146_p10 = scmp.lt.s32.totalorder %s2397_s30, %s3148_s0  ;;  %p2147_p2 = scmp.lt.s32.totalorder %s2145_s20, %s2140_s13 }
  0x2c   : > { %p2143_p5 = pnand %p2142_p13, %p2141_p12 }
  0x2d   : > { %p2148_p1 = por %p2147_p2, %p2146_p10 }
  0x2e   : > { %p2144_p7 = pneg %p2143_p5 }
  0x30   : > { %p2149_p0 = pnand %p2148_p1, %p2144_p7 }
  0x32   : > { %2152 = shalt.err (!%p2149_p0)
}
  0x33   : > { %s2153_s29 = scalar_lea.vmem %s234_s10, 256  ;;  %s2239_s18 = smov [#allocation5]  }
  0x34   : > { %p2154_p3 = scmp.ne.s32.totalorder %s234_s10, %s2153_s29  ;;  %s2158_s7 = sshll.u32 %s2239_s18, 4  ;;  %s2159_s7 = int_to_ptr.vmem [resolvable:$false] %s2158_s7 }
  0x35   : > { %s2160_s5 = scalar_lea.vmem %s2159_s7, 512  ;;  %p2161_p12 = scmp.lt.s32.totalorder %s234_s10, %s2159_s7 }
  0x36   : > { %p2156_p6 = pnand %p2154_p3, %p2142_p13  ;;  %p2162_p5 = scmp.lt.s32.totalorder %s2160_s5, %s2153_s29 }
  0x38   : > { %p2157_p9 = pneg %p2156_p6  ;;  %p2163_p4 = por %p2162_p5, %p2161_p12 }
  0x3a   : > { %p2164_p8 = pnand %p2163_p4, %p2157_p9 }
  0x3c   : > { %2167 = shalt.err (!%p2164_p8)
}
  0x3d   : > { %2029 = dma.hbm_to_vmem [thread:$0]  (!%p2399_p11), %s2397_s30, 256, %s234_s10, %s222_s12  }
  0x3e   : > { %p3169_p7 = scmp.ne.s32.totalorder %s3163_s8, 0 }
  0x3f   : > { %s2420_s13 = sand.u32 (!%p3169_p7), 1, %s2228_s22   ;;  %p3170_p4 = scmp.ne.s32.totalorder (!%p3169_p7), %s3160_s27, 0 }
  0x40   : > { %242 = sbr.rel (%p3169_p7) target bundleno = 1647 (0x66f), region = 44  ;;  %s1903_s14 = sshll.u32 (!%p3169_p7), %s2420_s13, 4 }
  0x41   : > { %s245_s15 = scalar_lea.sflag (!%p3169_p7), [#allocation6], %s2420_s13  ;;  %s248_s5 = scalar_lea.vmem (!%p3169_p7), [#allocation5], %s1903_s14 }
  0x45   : > { %2211 = dma.done.wait (%p3170_p4), %s245_s15, 256  }
  0x46   : > { %2213 = vsyncadd (%p3170_p4), %s245_s15, 4294967040  ;;  %p3171_p6 = scmp.eq.s32.totalorder %s2322_s25, 0 }
  0x48   : > { %2215 = dma.done.wait (%p3171_p6), [#allocation8], 16   ;;  %p3172_p8 = pmov %p3171_p6 }
  0x4a   : > { %2217 = vsyncadd (%p3172_p8), [#allocation8], 4294967280 }
  0x4b   : > { %257 = sfence }
  0x4c   : > { %v2434_v0 = vld [vmem:[%s248_s5] sm:$0xff]  ;;  %v2436_v1 = vld [vmem:[%s248_s5 + $0x8] sm:$0xff]  ;;  %vm294_vm0 = vcmask 15360   ;;  %s2241_s19 = smov 3   ;;  %s2242_s29 = smov 99   ;;  %vm459_vm3 = vcmask 147480  }
  0x4d   : > { %v284_v2 = vadd.f32 %v2436_v1, %v2434_v0  ;;  %v289_v3 = vmax.f32 %v2434_v0, %v2436_v1  ;;  %v292_v5 = vld [vmem:[%s3149_s1] sm:$0xff]  ;;  %s2243_s18 = smov 115   ;;  %s2244_s7 = smov 67   ;;  %vm454_vm4 = vcmask 150552   ;;  %vm620_vm5 = vcmask 23552  }
  0x4e   : > { %v302_v21 = vld [vmem:[%s3150_s2] sm:$0x1]  ;;  %s2246_s15 = smov 35   ;;  %s2247_s5 = smov 83   ;;  %vm664_vm6 = vcmask 179352   ;;  %vm626_vm7 = vcmask 19456  }
  0x4f   : > { %285 = vadd.xlane.f32.xlu0 %v284_v2  ;;  %s2248_s27 = smov 51   ;;  %s2249_s8 = smov 19   ;;  %vm670_vm8 = vcmask 175256  }
  0x50   : > { %s2251_s30 = smov 127   ;;  %s2252_s10 = smov 126  }
  0x51   : > { %s2253_s11 = smov 125   ;;  %s2254_s12 = smov 124  }
  0x52   : > { %s2255_s20 = smov 123   ;;  %s2256_s26 = smov 122  }
  0x53   : > { %290 = vmax.xlane.f32.xlu0 %v289_v3  ;;  %p3193_p11 = scmp.ne.s32.totalorder %s3167_s17, 0 }
  0xd8   : > { %v286_v4 = vpop.xlane.xlu0 %285 }
  0xd9   : > { %v288_v6 = vmul.f32 0.00390625, %v286_v4 }
  0xdb   : > { %v293_v7 = vmul.f32 %v292_v5, %v288_v6 }
  0xdc   : > { %v291_v8 = vpop.xlane.xlu0 %290 }
  0xdd   : > { %v295_v9 = vsel %vm294_vm0, %v293_v7, 0.0  ;;  %v352_v10 = vmul.f32 %v292_v5, %v291_v8 }
  0xde   : > { %v296_v11 = vrot.slane %v295_v9, 4 }
  0xdf   : > { %v353_v12 = vsel %vm294_vm0, %v352_v10, 0.0 }
  0xe0   : > { %v297_v13 = vadd.f32 %v296_v11, %v295_v9  ;;  %v354_v14 = vrot.slane %v353_v12, 4 }
  0xe2   : > { %v298_v15 = vrot.slane %v297_v13, 2  ;;  %v355_v16 = vadd.f32 %v354_v14, %v353_v12 }
  0xe4   : > { %v299_v17 = vadd.f32 %v298_v15, %v297_v13  ;;  %v356_v18 = vrot.slane %v355_v16, 2 }
  0xe6   : > { %v300_v19 = vrot.slane %v299_v17, 1  ;;  %v357_v20 = vadd.f32 %v356_v18, %v355_v16 }
  0xe8   : > { %v301_v22 = vadd.f32 %v300_v19, %v299_v17  ;;  %v358_v23 = vrot.slane %v357_v20, 1 }
  0xea   : > { %v359_v24 = vadd.f32 %v358_v23, %v357_v20  ;;  %v2450_v25 = vadd.f32 %v302_v21, %v301_v22  ;;  %v342_v20 = vlaneseq }
  0xec   : > { %v2452_v26 = vadd.f32 %v359_v24, %v302_v21  ;;  %v2455_v27 = vmul.f32 0.70710677, %v2450_v25  ;;  %vm1599_vm9 = vcmp.lt.s32.totalorder %v342_v20, 16  ;;  %vm1628_vm10 = vcmp.ge.s32.totalorder %v342_v20, 16 }
  0xed   : > { %vm1629_vm11 = vcmp.lt.s32.totalorder %v342_v20, 32  ;;  %vm3000_vm13 = vcmp.ge.s32.totalorder %v342_v20, 32  ;;  %vm3005_vm14 = vcmp.lt.s32.totalorder %v342_v20, 48 }
  0xee   : > { %v2458_v28 = vmul.f32 0.70710677, %v2452_v26  ;;  %v306_v29 = vand.u32 2147483647, %v2455_v27  ;;  %vm335_vm1 = vcmp.ge.f32.partialorder %v2455_v27, 0.0  ;;  %vm1630_vm12 = vmand %vm1628_vm10, %vm1629_vm11  ;;  %vm3071_vm10 = vcmp.lt.s32.totalorder %v342_v20, 112 }
  0xef   : > { %vm1638_vm15 = vmand %vm3000_vm13, %vm3005_vm14  ;;  %vm1698_vm13 = vcmp.lt.s32.totalorder %v342_v20, 128 }
  0xf0   : > { %v363_v30 = vand.u32 2147483647, %v2458_v28  ;;  %v307_v31 = vmul.f32 0.5, %v306_v29  ;;  %v329_v6 = vsub.f32 0.0, %v306_v29  ;;  %vm392_vm2 = vcmp.ge.f32.partialorder %v2458_v28, 0.0 }
  0xf2   : > { %v364_v32 = vmul.f32 0.5, %v363_v30  ;;  %v308_v33 = vadd.f32 1.0, %v307_v31  ;;  %v386_v8 = vsub.f32 0.0, %v363_v30  ;;  %v330_v12 = vmul.f32 %v329_v6, %v306_v29 }
  0xf3   : > { %v2464_v31 = vshrl.u32 %v342_v20, 7 }
  0xf4   : > { %v365_v34 = vadd.f32 1.0, %v364_v32  ;;  %2105 = vrcp.f32 %v308_v33  ;;  %v387_v14 = vmul.f32 %v386_v8, %v363_v30 }
  0xf6   : > { %2107 = vrcp.f32 %v365_v34  ;;  %v304_v34 = vmul.f32 0.5, %v2450_v25 }
 0x101   : > { %v2106_v35 = vpop.eup %2105 }
 0x102   : > { %v311_v36 = vmul.f32 0.17087276, %v2106_v35 }
 0x103   : > { %v2108_v37 = vpop.eup %2107 }
 0x104   : > { %v368_v38 = vmul.f32 0.17087276, %v2108_v37  ;;  %v312_v39 = vadd.f32 -0.82215226, %v311_v36 }
 0x106   : > { %v369_v40 = vadd.f32 -0.82215226, %v368_v38  ;;  %v313_v41 = vmul.f32 %v2106_v35, %v312_v39  ;;  %v2469_v38 = vsub.s32 0, %v2464_v31 }
 0x108   : > { %v370_v42 = vmul.f32 %v2108_v37, %v369_v40  ;;  %v314_v43 = vadd.f32 1.4885159, %v313_v41  ;;  %v341_v40 = vld [vmem:[%s3151_s3] sm:$0xff] }
 0x10a   : > { %v371_v44 = vadd.f32 1.4885159, %v370_v42  ;;  %v315_v45 = vmul.f32 %v2106_v35, %v314_v43 }
 0x10c   : > { %v372_v46 = vmul.f32 %v2108_v37, %v371_v44  ;;  %v316_v47 = vadd.f32 -1.135204, %v315_v45 }
 0x10e   : > { %v373_v48 = vadd.f32 -1.135204, %v372_v46  ;;  %v317_v49 = vmul.f32 %v2106_v35, %v316_v47  ;;  %v2240_v46 = vmov 0   ;;  %v350_v47 = vld [vmem:[%s3152_s4] sm:$0xff] }
 0x10f   : > { %2096 = vset.pattern.permute.xlu0 %v2240_v46 }
 0x110   : > { %v374_v50 = vmul.f32 %v2108_v37, %v373_v48  ;;  %v318_v51 = vadd.f32 0.27886808, %v317_v49 }
 0x112   : > { %v375_v52 = vadd.f32 0.27886808, %v374_v50  ;;  %v319_v53 = vmul.f32 %v2106_v35, %v318_v51 }
 0x114   : > { %v376_v54 = vmul.f32 %v2108_v37, %v375_v52  ;;  %v320_v55 = vadd.f32 -0.18628806, %v319_v53 }
 0x116   : > { %v377_v56 = vadd.f32 -0.18628806, %v376_v54  ;;  %v321_v57 = vmul.f32 %v2106_v35, %v320_v55 }
 0x118   : > { %v378_v58 = vmul.f32 %v2108_v37, %v377_v56  ;;  %v322_v59 = vadd.f32 0.09678418, %v321_v57 }
 0x11a   : > { %v379_v60 = vadd.f32 0.09678418, %v378_v58  ;;  %v323_v61 = vmul.f32 %v2106_v35, %v322_v59 }
 0x11c   : > { %v380_v62 = vmul.f32 %v2108_v37, %v379_v60  ;;  %v324_v63 = vadd.f32 0.37409195, %v323_v61 }
 0x11e   : > { %v381_v2 = vadd.f32 0.37409195, %v380_v62  ;;  %v325_v3 = vmul.f32 %v2106_v35, %v324_v63 }
 0x120   : > { %v382_v4 = vmul.f32 %v2108_v37, %v381_v2  ;;  %v326_v5 = vadd.f32 1.0000237, %v325_v3 }
 0x122   : > { %v383_v7 = vadd.f32 1.0000237, %v382_v4  ;;  %v327_v9 = vmul.f32 %v2106_v35, %v326_v5 }
 0x124   : > { %v384_v10 = vmul.f32 %v2108_v37, %v383_v7  ;;  %v328_v11 = vadd.f32 -1.2655122, %v327_v9 }
 0x126   : > { %v385_v13 = vadd.f32 -1.2655122, %v384_v10  ;;  %v331_v15 = vadd.f32 %v330_v12, %v328_v11  ;;  %v2245_v11 = vmov 3  }
 0x127   : > { %2097 = vset.pattern.permute.xlu1 %v2245_v11 }
 0x128   : > { %v388_v16 = vadd.f32 %v387_v14, %v385_v13  ;;  %v332_v17 = vmul.f32 1.442695, %v331_v15 }
 0x12a   : > { %v389_v18 = vmul.f32 1.442695, %v388_v16  ;;  %2109 = vpow2.f32 %v332_v17 }
 0x12c   : > { %2111 = vpow2.f32 %v389_v18 }
 0x137   : > { %v2110_v19 = vpop.eup %2109 }
 0x138   : > { %v334_v21 = vmul.f32 %v2110_v19, %v2106_v35 }
 0x139   : > { %v2112_v22 = vpop.eup %2111 }
 0x13a   : > { %v336_v23 = vsub.f32 2.0, %v334_v21  ;;  %v391_v24 = vmul.f32 %v2112_v22, %v2108_v37  ;;  %v361_v37 = vmul.f32 0.5, %v2452_v26 }
 0x13c   : > { %v337_v29 = vsel %vm335_vm1, %v334_v21, %v336_v23  ;;  %v393_v32 = vsub.f32 2.0, %v391_v24  ;;  %vm3019_vm1 = vcmp.lt.s32.totalorder %v342_v20, 64 }
 0x13d   : > { %v338_v30 = vsub.f32 1.0, %v337_v29 }
 0x13e   : > { %v394_v33 = vsel %vm392_vm2, %v391_v24, %v393_v32  ;;  %vm3024_vm2 = vcmp.ge.s32.totalorder %v342_v20, 64 }
 0x13f   : > { %v339_v36 = vadd.f32 1.0, %v338_v30  ;;  %v395_v35 = vsub.f32 1.0, %v394_v33 }
 0x141   : > { %v340_v39 = vmul.f32 %v339_v36, %v304_v34  ;;  %v396_v27 = vadd.f32 1.0, %v395_v35 }
 0x143   : > { %v345_v41 = vrot.slane %v340_v39, %v2469_v38  ;;  %v397_v42 = vmul.f32 %v396_v27, %v361_v37 }
 0x145   : > { %v346_v28 = vmul.f32 %v345_v41, %v341_v40  ;;  %v401_v43 = vrot.slane %v397_v42, %v2469_v38  ;;  %v2250_v42 = vmov 18  }
 0x147   : > { %v347_v25 = vsel %vm294_vm0, %v346_v28, 0.0  ;;  %v402_v44 = vmul.f32 %v401_v43, %v341_v40 }
 0x148   : > { %348 = vadd.xlane.f32.xlu1 %v347_v25 }
 0x149   : > { %v403_v45 = vsel %vm294_vm0, %v402_v44, 0.0  ;;  %vm3014_vm0 = vcmp.ge.s32.totalorder %v342_v20, 48 }
 0x14c   : > { %404 = vadd.xlane.f32.xlu1 %v403_v45 }
 0x1d1   : > { %v349_v26 = vpop.xlane.xlu1 %348 }
 0x1d2   : > { %v351_v49 = vadd.f32 %v350_v47, %v349_v26 }
 0x1d5   : > { %v405_v48 = vpop.xlane.xlu1 %404 }
 0x1d6   : > { %v406_v50 = vadd.f32 %v405_v48, %v350_v47 }
 0x1d8   : > { %v407_v51 = vadd.f32 %v406_v50, %v351_v49 }
 0x1da   : > { %v1906_v52 = vmul.f32 -1.442695, %v407_v51 }
 0x1dc   : > { %2113 = vpow2.f32 %v1906_v52 }
 0x1e9   : > { %v2114_v53 = vpop.eup %2113 }
 0x1ea   : > { %v411_v54 = vadd.f32 1.0, %v2114_v53 }
 0x1ec   : > { %2115 = vrcp.f32 %v411_v54 }
 0x1f9   : > { %v2116_v55 = vpop.eup %2115 }
 0x1fa   : > { %416 = vperm.xlu0 %2096, %v2116_v55  }
 0x1fe   : > { %2098 = vset.pattern.permute.xlu0 %v2245_v11 }
 0x275   : > { %v417_v56 = vpop.permute.xlu0 %416 }
 0x276   : > { %v2483_v57 = vmul.f32 %v417_v56, %v2434_v0  ;;  %v2486_v58 = vmul.f32 %v417_v56, %v2436_v1 }
 0x278   : > { %v423_v59 = vrot.slane %v2483_v57, 4  ;;  %v429_v60 = vrot.slane %v2486_v58, 4 }
 0x27a   : > { %v424_v61 = vmax.f32 %v2483_v57, %v423_v59  ;;  %v430_v62 = vmax.f32 %v2486_v58, %v429_v60  ;;  %v436_v0 = vadd.f32 %v423_v59, %v2483_v57  ;;  %v442_v35 = vadd.f32 %v429_v60, %v2486_v58 }
 0x27c   : > { %v425_v63 = vrot.slane %v424_v61, 2  ;;  %v431_v2 = vrot.slane %v430_v62, 2  ;;  %v437_v8 = vrot.slane %v436_v0, 2  ;;  %v443_v37 = vrot.slane %v442_v35, 2 }
 0x27e   : > { %v426_v3 = vmax.f32 %v424_v61, %v425_v63  ;;  %v432_v4 = vmax.f32 %v430_v62, %v431_v2  ;;  %v438_v9 = vadd.f32 %v437_v8, %v436_v0  ;;  %v444_v41 = vadd.f32 %v443_v37, %v442_v35 }
 0x280   : > { %v427_v5 = vrot.slane %v426_v3, 1  ;;  %v433_v6 = vrot.slane %v432_v4, 1  ;;  %v439_v10 = vrot.slane %v438_v9, 1  ;;  %v445_v28 = vrot.slane %v444_v41, 1 }
 0x282   : > { %v428_v1 = vmax.f32 %v426_v3, %v427_v5  ;;  %v434_v7 = vmax.f32 %v432_v4, %v433_v6  ;;  %v440_v12 = vadd.f32 %v439_v10, %v438_v9  ;;  %v446_v25 = vadd.f32 %v445_v28, %v444_v41 }
 0x284   : > { %486 = vrot.lane.b32.xlu0 %v434_v7, %s2241_s19  ;;  %451 = vrot.lane.b32.xlu1 %v428_v1, %s2241_s19  ;;  %v2505_v13 = vmul.f32 0.125, %v440_v12  ;;  %v449_v44 = vmul.f32 0.125, %v446_v25 }
 0x288   : > { %494 = vrot.lane.b32.xlu0 %v434_v7, %s2242_s29  ;;  %456 = vrot.lane.b32.xlu1 %v428_v1, %s2243_s18 }
 0x28c   : > { %502 = vrot.lane.b32.xlu0 %v434_v7, %s2244_s7  ;;  %461 = vrot.lane.b32.xlu1 %v428_v1, %s2242_s29 }
 0x290   : > { %510 = vrot.lane.b32.xlu0 %v434_v7, %s2246_s15  ;;  %465 = vrot.lane.b32.xlu1 %v428_v1, %s2247_s5 }
 0x294   : > { %519 = vrot.lane.b32.xlu0 %v2505_v13, %s2241_s19  ;;  %469 = vrot.lane.b32.xlu1 %v428_v1, %s2244_s7 }
 0x298   : > { %473 = vrot.lane.b32.xlu1 %v428_v1, %s2248_s27 }
 0x29c   : > { %477 = vrot.lane.b32.xlu1 %v428_v1, %s2246_s15 }
 0x2a0   : > { %481 = vrot.lane.b32.xlu1 %v428_v1, %s2249_s8 }
 0x2a4   : > { %490 = vrot.lane.b32.xlu1 %v434_v7, %s2243_s18 }
 0x2a8   : > { %498 = vrot.lane.b32.xlu1 %v434_v7, %s2247_s5 }
 0x2ac   : > { %506 = vrot.lane.b32.xlu1 %v434_v7, %s2248_s27 }
 0x2b0   : > { %514 = vrot.lane.b32.xlu1 %v434_v7, %s2249_s8 }
 0x2f6   : > { %v487_v14 = vpop.permute.xlu0 %486  ;;  %v452_v15 = vpop.permute.xlu1 %451 }
 0x2f7   : > { %489 = vst.msk [vmem:[#allocation2 + $0xb] sm:$0x1] %vm459_vm3, %v487_v14 }
 0x2f8   : > { %455 = vst.msk [vmem:[#allocation2] sm:$0xf] %vm454_vm4, %v452_v15 }
 0x2fa   : > { %v495_v16 = vpop.permute.xlu0 %494  ;;  %v457_v17 = vpop.permute.xlu1 %456 }
 0x2fb   : > { %497 = vst.msk [vmem:[#allocation2 + $0xd] sm:$0x1] %vm459_vm3, %v495_v16  ;;  %460 = vst.msk [vmem:[#allocation2 + $0x4] sm:$0x1] %vm459_vm3, %v457_v17 }
 0x2fe   : > { %v503_v18 = vpop.permute.xlu0 %502  ;;  %v462_v19 = vpop.permute.xlu1 %461 }
 0x2ff   : > { %505 = vst.msk [vmem:[#allocation2 + $0xf] sm:$0x1] %vm459_vm3, %v503_v18  ;;  %464 = vst.msk [vmem:[#allocation2 + $0x5] sm:$0x1] %vm459_vm3, %v462_v19 }
 0x302   : > { %v511_v21 = vpop.permute.xlu0 %510  ;;  %v466_v22 = vpop.permute.xlu1 %465 }
 0x303   : > { %513 = vst.msk [vmem:[#allocation2 + $0x11] sm:$0x1] %vm459_vm3, %v511_v21  ;;  %468 = vst.msk [vmem:[#allocation2 + $0x6] sm:$0x1] %vm459_vm3, %v466_v22 }
 0x306   : > { %v520_v23 = vpop.permute.xlu0 %519  ;;  %v470_v24 = vpop.permute.xlu1 %469 }
 0x307   : > { %522 = vst.msk [vmem:[#allocation2 + $0x16] sm:$0xf] %vm454_vm4, %v520_v23 }
 0x308   : > { %472 = vst.msk [vmem:[#allocation2 + $0x7] sm:$0x1] %vm459_vm3, %v470_v24 }
 0x30a   : > { %v474_v29 = vpop.permute.xlu1 %473 }
 0x30b   : > { %476 = vst.msk [vmem:[#allocation2 + $0x8] sm:$0x1] %vm459_vm3, %v474_v29 }
 0x30e   : > { %v478_v32 = vpop.permute.xlu1 %477 }
 0x30f   : > { %v584_v30 = vld [vmem:[#allocation2] sm:$0xff]  ;;  %480 = vst.msk [vmem:[#allocation2 + $0x9] sm:$0x1] %vm459_vm3, %v478_v32 }
 0x310   : > { %592 = vperm.xlu1 %2097, %v584_v30  }
 0x312   : > { %v482_v33 = vpop.permute.xlu1 %481 }
 0x313   : > { %484 = vst.msk [vmem:[#allocation2 + $0xa] sm:$0x1] %vm459_vm3, %v482_v33 }
 0x316   : > { %v491_v34 = vpop.permute.xlu1 %490 }
 0x317   : > { %493 = vst.msk [vmem:[#allocation2 + $0xc] sm:$0x1] %vm459_vm3, %v491_v34 }
 0x31a   : > { %v499_v36 = vpop.permute.xlu1 %498 }
 0x31b   : > { %501 = vst.msk [vmem:[#allocation2 + $0xe] sm:$0x1] %vm459_vm3, %v499_v36 }
 0x31e   : > { %v507_v39 = vpop.permute.xlu1 %506 }
 0x31f   : > { %509 = vst.msk [vmem:[#allocation2 + $0x10] sm:$0x1] %vm459_vm3, %v507_v39 }
 0x322   : > { %v515_v27 = vpop.permute.xlu1 %514  ;;  %v585_v40 = vld [vmem:[#allocation2 + $0x8] sm:$0xff] }
 0x323   : > { %517 = vst.msk [vmem:[#allocation2 + $0x12] sm:$0xf] %vm454_vm4, %v515_v27  ;;  %597 = vperm.xlu0 %2098, %v585_v40  }
 0x327   : > { %527 = vrot.lane.b32.xlu0 %v2505_v13, %s2242_s29 }
 0x328   : > { %2099 = vset.pattern.permute.xlu0 %v2250_v42 }
 0x32a   : > { %v586_v43 = vld [vmem:[#allocation2 + $0x10] sm:$0xff] }
 0x32b   : > { %535 = vrot.lane.b32.xlu0 %v2505_v13, %s2244_s7  ;;  %602 = vperm.xlu1 %2097, %v586_v43  }
 0x32f   : > { %543 = vrot.lane.b32.xlu0 %v2505_v13, %s2246_s15  ;;  %523 = vrot.lane.b32.xlu1 %v2505_v13, %s2243_s18 }
 0x330   : > { %2100 = vset.pattern.permute.xlu1 %v2250_v42 }
 0x333   : > { %552 = vrot.lane.b32.xlu0 %v449_v44, %s2241_s19  ;;  %531 = vrot.lane.b32.xlu1 %v2505_v13, %s2247_s5  ;;  %s801_s19 = sld [smem:[#allocation9]] }
 0x337   : > { %560 = vrot.lane.b32.xlu0 %v449_v44, %s2242_s29  ;;  %539 = vrot.lane.b32.xlu1 %v2505_v13, %s2248_s27  ;;  %s1908_s29 = sld [smem:[#allocation9 + $0x7]] }
 0x339   : > { %v804_v18 = vstv %s801_s19  ;;  %s1914_s19 = sld [smem:[#allocation9 + $0x1]] }
 0x33b   : > { %568 = vrot.lane.b32.xlu0 %v449_v44, %s2244_s7  ;;  %547 = vrot.lane.b32.xlu1 %v2505_v13, %s2249_s8  ;;  %s1909_s7 = sld [smem:[#allocation9 + $0xe]] }
 0x33d   : > { %v812_v22 = vstv %s1908_s29  ;;  %s2612_s29 = sld [smem:[#allocation9 + $0x8]] }
 0x33f   : > { %576 = vrot.lane.b32.xlu0 %v449_v44, %s2246_s15  ;;  %556 = vrot.lane.b32.xlu1 %v449_v44, %s2243_s18  ;;  %s1907_s18 = sld [smem:[#allocation9 + $0x62]] }
 0x340   : > { %s1910_s15 = sld [smem:[#allocation9 + $0x15]] }
 0x341   : > { %v820_v35 = vstv %s1909_s7  ;;  %s2616_s7 = sld [smem:[#allocation9 + $0x16]] }
 0x343   : > { %564 = vrot.lane.b32.xlu1 %v449_v44, %s2247_s5  ;;  %s1911_s5 = sld [smem:[#allocation9 + $0x1c]] }
 0x345   : > { %v799_v24 = vstv %s1907_s18  ;;  %s2614_s18 = sld [smem:[#allocation9 + $0xf]] }
 0x347   : > { %572 = vrot.lane.b32.xlu1 %v449_v44, %s2248_s27  ;;  %s2606_s27 = sld [smem:[#allocation9 + $0x23]] }
 0x34b   : > { %580 = vrot.lane.b32.xlu1 %v449_v44, %s2249_s8  ;;  %s2608_s8 = sld [smem:[#allocation9 + $0x2a]] }
 0x38b   : > { %v593_v45 = vpop.permute.xlu1 %592 }
 0x38c   : > { %621 = vst.msk [vmem:[#allocation2] sm:$0xff] %vm620_vm5, %v593_v45 }
 0x393   : > { %v628_v46 = vld [vmem:[#allocation2] sm:$0xff] }
 0x394   : > { %636 = vperm.xlu0 %2099, %v628_v46  }
 0x398   : > { %2101 = vset.pattern.permute.xlu0 %v2245_v11 }
 0x39e   : > { %v598_v26 = vpop.permute.xlu0 %597 }
 0x39f   : > { %622 = vst.msk [vmem:[#allocation2 + $0x8] sm:$0xff] %vm620_vm5, %v598_v26  ;;  %v836_v26 = vstv %s1911_s5  ;;  %s2621_s5 = sld [smem:[#allocation9 + $0x24]] }
 0x3a2   : > { %v528_v47 = vpop.permute.xlu0 %527 }
 0x3a3   : > { %530 = vst.msk [vmem:[#allocation2 + $0x1b] sm:$0x1] %vm459_vm3, %v528_v47 }
 0x3a6   : > { %v536_v48 = vpop.permute.xlu0 %535  ;;  %v603_v49 = vpop.permute.xlu1 %602  ;;  %v629_v50 = vld [vmem:[#allocation2 + $0x8] sm:$0xff] }
 0x3a7   : > { %538 = vst.msk [vmem:[#allocation2 + $0x1d] sm:$0x1] %vm459_vm3, %v536_v48  ;;  %641 = vperm.xlu1 %2100, %v629_v50  }
 0x3a8   : > { %623 = vst.msk [vmem:[#allocation2 + $0x10] sm:$0xff] %vm620_vm5, %v603_v49 }
 0x3aa   : > { %v544_v51 = vpop.permute.xlu0 %543  ;;  %v524_v52 = vpop.permute.xlu1 %523 }
 0x3ab   : > { %546 = vst.msk [vmem:[#allocation2 + $0x1f] sm:$0x1] %vm459_vm3, %v544_v51  ;;  %526 = vst.msk [vmem:[#allocation2 + $0x1a] sm:$0x1] %vm459_vm3, %v524_v52 }
 0x3ae   : > { %v553_v53 = vpop.permute.xlu0 %552  ;;  %v532_v54 = vpop.permute.xlu1 %531 }
 0x3af   : > { %v630_v55 = vld [vmem:[#allocation2 + $0x10] sm:$0xff]  ;;  %555 = vst.msk [vmem:[#allocation2 + $0x21] sm:$0x1] %vm459_vm3, %v553_v53  ;;  %534 = vst.msk [vmem:[#allocation2 + $0x1c] sm:$0x1] %vm459_vm3, %v532_v54  ;;  %v844_v53 = vstv %s2606_s27  ;;  %s2624_s27 = sld [smem:[#allocation9 + $0x2b]] }
 0x3b0   : > { %646 = vperm.xlu1 %2100, %v630_v55  }
 0x3b2   : > { %v561_v56 = vpop.permute.xlu0 %560  ;;  %v540_v59 = vpop.permute.xlu1 %539 }
 0x3b3   : > { %563 = vst.msk [vmem:[#allocation2 + $0x23] sm:$0x1] %vm459_vm3, %v561_v56  ;;  %542 = vst.msk [vmem:[#allocation2 + $0x1e] sm:$0x1] %vm459_vm3, %v540_v59 }
 0x3b4   : > { %2102 = vset.pattern.permute.xlu1 %v2245_v11 }
 0x3b6   : > { %v569_v60 = vpop.permute.xlu0 %568  ;;  %v548_v61 = vpop.permute.xlu1 %547 }
 0x3b7   : > { %571 = vst.msk [vmem:[#allocation2 + $0x25] sm:$0x1] %vm459_vm3, %v569_v60  ;;  %550 = vst.msk [vmem:[#allocation2 + $0x20] sm:$0x1] %vm459_vm3, %v548_v61 }
 0x3ba   : > { %v577_v62 = vpop.permute.xlu0 %576  ;;  %v557_v63 = vpop.permute.xlu1 %556  ;;  %v587_v2 = vld [vmem:[#allocation2 + $0x18] sm:$0xff] }
 0x3bb   : > { %579 = vst.msk [vmem:[#allocation2 + $0x27] sm:$0x1] %vm459_vm3, %v577_v62  ;;  %559 = vst.msk [vmem:[#allocation2 + $0x22] sm:$0x1] %vm459_vm3, %v557_v63  ;;  %607 = vperm.xlu0 %2101, %v587_v2   ;;  %v852_v62 = vstv %s2608_s8  ;;  %s2627_s8 = sld [smem:[#allocation9 + $0x2]] }
 0x3be   : > { %v565_v3 = vpop.permute.xlu1 %564 }
 0x3bf   : > { %567 = vst.msk [vmem:[#allocation2 + $0x24] sm:$0x1] %vm459_vm3, %v565_v3  ;;  %2103 = vset.pattern.permute.xlu0 %v2250_v42 }
 0x3c2   : > { %v573_v4 = vpop.permute.xlu1 %572 }
 0x3c3   : > { %575 = vst.msk [vmem:[#allocation2 + $0x26] sm:$0x1] %vm459_vm3, %v573_v4  ;;  %v860_v4 = vstv %s1914_s19  ;;  %s2633_s19 = sld [smem:[#allocation9 + $0x9]]  ;;  %vm3029_vm3 = vcmp.lt.s32.totalorder %v342_v20, 80 }
 0x3c6   : > { %v581_v0 = vpop.permute.xlu1 %580 }
 0x3c7   : > { %583 = vst.msk [vmem:[#allocation2 + $0x28] sm:$0xf] %vm454_vm4, %v581_v0  ;;  %vm1646_vm4 = vmand %vm3014_vm0, %vm3019_vm1 }
 0x3ca   : > { %v588_v5 = vld [vmem:[#allocation2 + $0x20] sm:$0xff] }
 0x3cb   : > { %612 = vperm.xlu1 %2102, %v588_v5  }
 0x3ce   : > { %v589_v6 = vld [vmem:[#allocation2 + $0x28] sm:$0xf] }
 0x3cf   : > { %617 = vperm.xlu1 %2102, %v589_v6  }
 0x3d3   : > { %2104 = vset.pattern.permute.xlu1 %v2250_v42  ;;  %v828_v42 = vstv %s1910_s15  ;;  %s2618_s15 = sld [smem:[#allocation9 + $0x1d]] }
 0x40f   : > { %v637_v1 = vpop.permute.xlu0 %636 }
 0x410   : > { %665 = vst.msk [vmem:[#allocation2] sm:$0xff] %vm664_vm6, %v637_v1 }
 0x417   : > { %v672_v7 = vld [vmem:[#allocation2] sm:$0xff] }
 0x418   : > { %678 = vst [vmem:[#allocation3] sm:$0xff] %v672_v7  ;;  %684 = vrot.lane.b32.xlu0 %v672_v7, %s2251_s30  ;;  %v805_v34 = vmul.f32 %v804_v18, %v672_v7 }
 0x41a   : > { %v807_v40 = vadd.f32 %v805_v34, %v799_v24 }
 0x422   : > { %v642_v8 = vpop.permute.xlu1 %641 }
 0x423   : > { %666 = vst.msk [vmem:[#allocation2 + $0x8] sm:$0xff] %vm664_vm6, %v642_v8 }
 0x42a   : > { %v673_v10 = vld [vmem:[#allocation2 + $0x8] sm:$0xff] }
 0x42b   : > { %v647_v9 = vpop.permute.xlu1 %646  ;;  %686 = vrot.lane.b32.xlu1 %v673_v10, %s2251_s30  ;;  %679 = vst [vmem:[#allocation3 + $0x8] sm:$0xff] %v673_v10  ;;  %v806_v21 = vmul.f32 %v804_v18, %v673_v10 }
 0x42c   : > { %667 = vst.msk [vmem:[#allocation2 + $0x10] sm:$0xff] %vm664_vm6, %v647_v9 }
 0x42d   : > { %v808_v29 = vadd.f32 %v806_v21, %v799_v24  ;;  %v884_v21 = vstv %s2616_s7  ;;  %s2639_s7 = sld [smem:[#allocation9 + $0x1e]] }
 0x42f   : > { %703 = vrot.lane.b32.xlu1 %v672_v7, %s2252_s10 }
 0x432   : > { %v810_v32 = vld [vmem:[#allocation3 + $0x1] sm:$0xff] }
 0x433   : > { %v674_v11 = vld [vmem:[#allocation2 + $0x10] sm:$0xff]  ;;  %v813_v39 = vmul.f32 %v812_v22, %v810_v32 }
 0x434   : > { %707 = vrot.lane.b32.xlu1 %v674_v11, %s2252_s10  ;;  %680 = vst [vmem:[#allocation3 + $0x10] sm:$0xff] %v674_v11  ;;  %688 = vrot.lane.b32.xlu0 %v674_v11, %s2251_s30  ;;  %v818_v28 = vld [vmem:[#allocation3 + $0x2] sm:$0xff] }
 0x435   : > { %v815_v43 = vadd.f32 %v813_v39, %v807_v40  ;;  %v821_v45 = vmul.f32 %v820_v35, %v818_v28  ;;  %v826_v47 = vld [vmem:[#allocation3 + $0x3] sm:$0xff] }
 0x436   : > { %v608_v12 = vpop.permute.xlu0 %607  ;;  %v829_v51 = vmul.f32 %v828_v42, %v826_v47  ;;  %v834_v54 = vld [vmem:[#allocation3 + $0x4] sm:$0xff] }
 0x437   : > { %624 = vst.msk [vmem:[#allocation2 + $0x18] sm:$0xff] %vm620_vm5, %v608_v12  ;;  %v823_v48 = vadd.f32 %v821_v45, %v815_v43  ;;  %v837_v60 = vmul.f32 %v836_v26, %v834_v54  ;;  %v842_v63 = vld [vmem:[#allocation3 + $0x5] sm:$0xff] }
 0x438   : > { %705 = vrot.lane.b32.xlu0 %v673_v10, %s2252_s10  ;;  %v845_v5 = vmul.f32 %v844_v53, %v842_v63 }
 0x439   : > { %v831_v55 = vadd.f32 %v829_v51, %v823_v48 }
 0x43b   : > { %v811_v19 = vld [vmem:[#allocation3 + $0x9] sm:$0xff]  ;;  %v839_v2 = vadd.f32 %v837_v60, %v831_v55 }
 0x43c   : > { %v814_v23 = vmul.f32 %v812_v22, %v811_v19  ;;  %v819_v30 = vld [vmem:[#allocation3 + $0xa] sm:$0xff] }
 0x43d   : > { %v822_v37 = vmul.f32 %v820_v35, %v819_v30  ;;  %v827_v27 = vld [vmem:[#allocation3 + $0xb] sm:$0xff]  ;;  %v847_v8 = vadd.f32 %v845_v5, %v839_v2  ;;  %v892_v30 = vstv %s2618_s15  ;;  %v900_v35 = vstv %s2621_s5  ;;  %s2642_s15 = sld [smem:[#allocation9 + $0x25]] }
 0x43e   : > { %v631_v13 = vld [vmem:[#allocation2 + $0x18] sm:$0xff]  ;;  %v816_v36 = vadd.f32 %v814_v23, %v808_v29  ;;  %v830_v25 = vmul.f32 %v828_v42, %v827_v27  ;;  %v924_v5 = vstv %s2633_s19  ;;  %s2646_s5 = sld [smem:[#allocation9 + $0x2c]] }
 0x43f   : > { %651 = vperm.xlu0 %2103, %v631_v13   ;;  %v835_v44 = vld [vmem:[#allocation3 + $0xc] sm:$0xff]  ;;  %v868_v13 = vstv %s2612_s29  ;;  %s2635_s29 = sld [smem:[#allocation9 + $0x10]] }
 0x440   : > { %v824_v41 = vadd.f32 %v822_v37, %v816_v36  ;;  %v838_v49 = vmul.f32 %v836_v26, %v835_v44  ;;  %v843_v50 = vld [vmem:[#allocation3 + $0xd] sm:$0xff]  ;;  %s2665_s19 = sld [smem:[#allocation9 + $0x11]] }
 0x441   : > { %v846_v56 = vmul.f32 %v844_v53, %v843_v50  ;;  %v851_v59 = vld [vmem:[#allocation3 + $0xe] sm:$0xff] }
 0x442   : > { %v832_v46 = vadd.f32 %v830_v25, %v824_v41  ;;  %v854_v3 = vmul.f32 %v852_v62, %v851_v59  ;;  %v908_v41 = vstv %s2624_s27  ;;  %v916_v25 = vstv %s2627_s8  ;;  %s2649_s27 = sld [smem:[#allocation9 + $0x3]] }
 0x443   : > { %724 = vrot.lane.b32.xlu0 %v673_v10, %s2253_s11  ;;  %s2663_s8 = sld [smem:[#allocation9 + $0xa]] }
 0x444   : > { %v840_v52 = vadd.f32 %v838_v49, %v832_v46 }
 0x446   : > { %v613_v14 = vpop.permute.xlu1 %612  ;;  %v848_v61 = vadd.f32 %v846_v56, %v840_v52 }
 0x447   : > { %625 = vst.msk [vmem:[#allocation2 + $0x20] sm:$0xff] %vm620_vm5, %v613_v14  ;;  %vm1668_vm5 = vmand %vm3024_vm2, %vm3029_vm3 }
 0x448   : > { %v856_v6 = vadd.f32 %v854_v3, %v848_v61 }
 0x44a   : > { %v618_v15 = vpop.permute.xlu1 %617 }
 0x44b   : > { %627 = vst.msk [vmem:[#allocation2 + $0x28] sm:$0xf] %vm626_vm7, %v618_v15  ;;  %v876_v15 = vstv %s2614_s18  ;;  %s2637_s18 = sld [smem:[#allocation9 + $0x17]]  ;;  %vm3047_vm7 = vcmp.lt.s32.totalorder %v342_v20, 96 }
 0x44e   : > { %v632_v16 = vld [vmem:[#allocation2 + $0x20] sm:$0xff] }
 0x44f   : > { %656 = vperm.xlu1 %2104, %v632_v16  }
 0x452   : > { %v633_v17 = vld [vmem:[#allocation2 + $0x28] sm:$0xf] }
 0x453   : > { %722 = vrot.lane.b32.xlu1 %v672_v7, %s2253_s11  ;;  %661 = vperm.xlu0 %2103, %v633_v17  }
 0x457   : > { %726 = vrot.lane.b32.xlu1 %v674_v11, %s2253_s11  ;;  %743 = vrot.lane.b32.xlu0 %v673_v10, %s2254_s12 }
 0x45b   : > { %741 = vrot.lane.b32.xlu1 %v672_v7, %s2254_s12  ;;  %760 = vrot.lane.b32.xlu0 %v672_v7, %s2255_s20 }
 0x45f   : > { %745 = vrot.lane.b32.xlu1 %v674_v11, %s2254_s12  ;;  %764 = vrot.lane.b32.xlu0 %v674_v11, %s2255_s20 }
 0x463   : > { %762 = vrot.lane.b32.xlu1 %v673_v10, %s2255_s20  ;;  %781 = vrot.lane.b32.xlu0 %v673_v10, %s2256_s26 }
 0x467   : > { %779 = vrot.lane.b32.xlu1 %v672_v7, %s2256_s26  ;;  %v850_v7 = vld [vmem:[#allocation3 + $0x6] sm:$0xff] }
 0x46b   : > { %783 = vrot.lane.b32.xlu1 %v674_v11, %s2256_s26  ;;  %v853_v11 = vmul.f32 %v852_v62, %v850_v7 }
 0x46d   : > { %v855_v14 = vadd.f32 %v853_v11, %v847_v8 }
 0x48a   : > { %v685_v33 = vpop.permute.xlu0 %684 }
 0x48b   : > { %697 = vst [vmem:[#allocation3 + $0x30] sm:$0xff] %v685_v33  ;;  %v861_v12 = vmul.f32 %v860_v4, %v685_v33 }
 0x48d   : > { %v863_v18 = vadd.f32 %v861_v12, %v855_v14  ;;  %v940_v14 = vstv %s2637_s18  ;;  %s2669_s18 = sld [smem:[#allocation9 + $0x1f]] }
 0x49d   : > { %v687_v0 = vpop.permute.xlu1 %686 }
 0x49e   : > { %698 = vst [vmem:[#allocation3 + $0x38] sm:$0xff] %v687_v0  ;;  %v862_v1 = vmul.f32 %v860_v4, %v687_v0 }
 0x4a0   : > { %v864_v9 = vadd.f32 %v862_v1, %v856_v6 }
 0x4a1   : > { %v704_v10 = vpop.permute.xlu1 %703 }
 0x4a2   : > { %716 = vst [vmem:[#allocation3 + $0x60] sm:$0xff] %v704_v10  ;;  %v917_v50 = vmul.f32 %v916_v25, %v704_v10 }
 0x4a5   : > { %v866_v16 = vld [vmem:[#allocation3 + $0x31] sm:$0xff] }
 0x4a6   : > { %v874_v17 = vld [vmem:[#allocation3 + $0x32] sm:$0xff]  ;;  %v869_v19 = vmul.f32 %v868_v13, %v866_v16  ;;  %v689_v23 = vpop.permute.xlu0 %688  ;;  %v708_v24 = vpop.permute.xlu1 %707 }
 0x4a7   : > { %v882_v22 = vld [vmem:[#allocation3 + $0x33] sm:$0xff]  ;;  %v877_v32 = vmul.f32 %v876_v15, %v874_v17  ;;  %699 = vst [vmem:[#allocation3 + $0x40] sm:$0xff] %v689_v23  ;;  %718 = vst [vmem:[#allocation3 + $0x70] sm:$0xff] %v708_v24 }
 0x4a8   : > { %v871_v29 = vadd.f32 %v869_v19, %v863_v18  ;;  %v890_v33 = vld [vmem:[#allocation3 + $0x34] sm:$0xff]  ;;  %v885_v36 = vmul.f32 %v884_v21, %v882_v22 }
 0x4a9   : > { %v898_v39 = vld [vmem:[#allocation3 + $0x35] sm:$0xff]  ;;  %v893_v40 = vmul.f32 %v892_v30, %v890_v33 }
 0x4aa   : > { %v879_v34 = vadd.f32 %v877_v32, %v871_v29  ;;  %v706_v37 = vpop.permute.xlu0 %705  ;;  %v906_v42 = vld [vmem:[#allocation3 + $0x36] sm:$0xff]  ;;  %v901_v43 = vmul.f32 %v900_v35, %v898_v39 }
 0x4ab   : > { %717 = vst [vmem:[#allocation3 + $0x68] sm:$0xff] %v706_v37  ;;  %v909_v26 = vmul.f32 %v908_v41, %v906_v42  ;;  %v918_v7 = vmul.f32 %v916_v25, %v706_v37  ;;  %v964_v37 = vstv %s2646_s5  ;;  %s2696_s5 = sld [smem:[#allocation9 + $0x4]] }
 0x4ac   : > { %v887_v27 = vadd.f32 %v885_v36, %v879_v34 }
 0x4ae   : > { %v895_v28 = vadd.f32 %v893_v40, %v887_v27  ;;  %v867_v44 = vld [vmem:[#allocation3 + $0x39] sm:$0xff] }
 0x4af   : > { %v875_v45 = vld [vmem:[#allocation3 + $0x3a] sm:$0xff]  ;;  %v870_v47 = vmul.f32 %v868_v13, %v867_v44 }
 0x4b0   : > { %v903_v46 = vadd.f32 %v901_v43, %v895_v28  ;;  %v883_v48 = vld [vmem:[#allocation3 + $0x3b] sm:$0xff]  ;;  %v878_v52 = vmul.f32 %v876_v15, %v875_v45  ;;  %v972_v43 = vstv %s2649_s27  ;;  %s2702_s27 = sld [smem:[#allocation9 + $0xb]] }
 0x4b1   : > { %v872_v51 = vadd.f32 %v870_v47, %v864_v9  ;;  %v891_v53 = vld [vmem:[#allocation3 + $0x3c] sm:$0xff]  ;;  %v886_v56 = vmul.f32 %v884_v21, %v883_v48  ;;  %v932_v9 = vstv %s2635_s29  ;;  %v948_v21 = vstv %s2639_s7  ;;  %s2667_s29 = sld [smem:[#allocation9 + $0x18]] }
 0x4b2   : > { %v911_v49 = vadd.f32 %v909_v26, %v903_v46  ;;  %v899_v59 = vld [vmem:[#allocation3 + $0x3d] sm:$0xff]  ;;  %v894_v61 = vmul.f32 %v892_v30, %v891_v53  ;;  %v923_v6 = vld [vmem:[#allocation3 + $0x69] sm:$0xff]  ;;  %v956_v30 = vstv %s2642_s15  ;;  %s2680_s7 = sld [smem:[#allocation9 + $0x26]] }
 0x4b3   : > { %v880_v55 = vadd.f32 %v878_v52, %v872_v51  ;;  %v907_v62 = vld [vmem:[#allocation3 + $0x3e] sm:$0xff]  ;;  %v902_v2 = vmul.f32 %v900_v35, %v899_v59  ;;  %v931_v10 = vld [vmem:[#allocation3 + $0x6a] sm:$0xff]  ;;  %v926_v12 = vmul.f32 %v924_v5, %v923_v6  ;;  %s2683_s15 = sld [smem:[#allocation9 + $0x2d]] }
 0x4b4   : > { %v919_v54 = vadd.f32 %v917_v50, %v911_v49  ;;  %v910_v4 = vmul.f32 %v908_v41, %v907_v62  ;;  %v922_v8 = vld [vmem:[#allocation3 + $0x61] sm:$0xff]  ;;  %v939_v16 = vld [vmem:[#allocation3 + $0x6b] sm:$0xff]  ;;  %v934_v19 = vmul.f32 %v932_v9, %v931_v10 }
 0x4b5   : > { %v888_v60 = vadd.f32 %v886_v56, %v880_v55  ;;  %v925_v15 = vmul.f32 %v924_v5, %v922_v8  ;;  %v930_v18 = vld [vmem:[#allocation3 + $0x62] sm:$0xff]  ;;  %v947_v23 = vld [vmem:[#allocation3 + $0x6c] sm:$0xff]  ;;  %v942_v29 = vmul.f32 %v940_v14, %v939_v16 }
 0x4b6   : > { %v933_v33 = vmul.f32 %v932_v9, %v930_v18  ;;  %v955_v34 = vld [vmem:[#allocation3 + $0x6d] sm:$0xff]  ;;  %v938_v36 = vld [vmem:[#allocation3 + $0x63] sm:$0xff]  ;;  %v950_v39 = vmul.f32 %v948_v21, %v947_v23 }
 0x4b7   : > { %v896_v63 = vadd.f32 %v894_v61, %v888_v60  ;;  %v927_v22 = vadd.f32 %v925_v15, %v919_v54  ;;  %v963_v40 = vld [vmem:[#allocation3 + $0x6e] sm:$0xff]  ;;  %v958_v42 = vmul.f32 %v956_v30, %v955_v34  ;;  %v941_v28 = vmul.f32 %v940_v14, %v938_v36  ;;  %v946_v25 = vld [vmem:[#allocation3 + $0x64] sm:$0xff] }
 0x4b8   : > { %v966_v45 = vmul.f32 %v964_v37, %v963_v40  ;;  %v949_v49 = vmul.f32 %v948_v21, %v946_v25  ;;  %v954_v50 = vld [vmem:[#allocation3 + $0x65] sm:$0xff]  ;;  %v996_v10 = vstv %s2667_s29  ;;  %v1004_v15 = vstv %s2669_s18  ;;  %s2738_s29 = sld [smem:[#allocation9 + $0x2e]] }
 0x4b9   : > { %v904_v3 = vadd.f32 %v902_v2, %v896_v63  ;;  %v935_v27 = vadd.f32 %v933_v33, %v927_v22  ;;  %v957_v55 = vmul.f32 %v956_v30, %v954_v50  ;;  %v962_v56 = vld [vmem:[#allocation3 + $0x66] sm:$0xff]  ;;  %s2742_s18 = sld [smem:[#allocation9 + $0x5]] }
 0x4ba   : > { %v652_v0 = vpop.permute.xlu0 %651  ;;  %v965_v63 = vmul.f32 %v964_v37, %v962_v56  ;;  %v1020_v37 = vstv %s2683_s15  ;;  %s2759_s15 = sld [smem:[#allocation9 + $0x1a]] }
 0x4bb   : > { %668 = vst.msk [vmem:[#allocation2 + $0x18] sm:$0xff] %vm664_vm6, %v652_v0  ;;  %v912_v1 = vadd.f32 %v910_v4, %v904_v3  ;;  %v943_v46 = vadd.f32 %v941_v28, %v935_v27  ;;  %v980_v3 = vstv %s2663_s8  ;;  %v988_v0 = vstv %s2665_s19  ;;  %s2713_s8 = sld [smem:[#allocation9 + $0x19]] }
 0x4bc   : > { %s2729_s19 = sld [smem:[#allocation9 + $0x27]] }
 0x4bd   : > { %v920_v11 = vadd.f32 %v918_v7, %v912_v1  ;;  %v951_v52 = vadd.f32 %v949_v49, %v943_v46  ;;  %v1028_v49 = vstv %s2696_s5  ;;  %s2769_s5 = sld [smem:[#allocation9 + $0x28]] }
 0x4be   : > { %v725_v13 = vpop.permute.xlu0 %724 }
 0x4bf   : > { %736 = vst [vmem:[#allocation3 + $0x98] sm:$0xff] %v725_v13  ;;  %v928_v17 = vadd.f32 %v926_v12, %v920_v11  ;;  %v974_v47 = vmul.f32 %v972_v43, %v725_v13  ;;  %v959_v59 = vadd.f32 %v957_v55, %v951_v52 }
 0x4c1   : > { %v936_v24 = vadd.f32 %v934_v19, %v928_v17  ;;  %v967_v4 = vadd.f32 %v965_v63, %v959_v59 }
 0x4c2   : > { %v2652_v32 = vld [vmem:[#allocation2 + $0x18] sm:$0xff] }
 0x4c3   : > { %681 = vst [vmem:[#allocation3 + $0x18] sm:$0xff] %v2652_v32  ;;  %690 = vrot.lane.b32.xlu0 %v2652_v32, %s2251_s30  ;;  %v944_v35 = vadd.f32 %v942_v29, %v936_v24  ;;  %v1012_v29 = vstv %s2680_s7  ;;  %s2754_s7 = sld [smem:[#allocation9 + $0x13]] }
 0x4c5   : > { %v952_v41 = vadd.f32 %v950_v39, %v944_v35 }
 0x4c7   : > { %v960_v44 = vadd.f32 %v958_v42, %v952_v41 }
 0x4c9   : > { %v968_v26 = vadd.f32 %v966_v45, %v960_v44 }
 0x4ca   : > { %v657_v48 = vpop.permute.xlu1 %656 }
 0x4cb   : > { %669 = vst.msk [vmem:[#allocation2 + $0x20] sm:$0xff] %vm664_vm6, %v657_v48  ;;  %v2661_v51 = vadd.f32 %v974_v47, %v968_v26  ;;  %vm3042_vm6 = vcmp.ge.s32.totalorder %v342_v20, 80 }
 0x4ce   : > { %v662_v53 = vpop.permute.xlu0 %661  ;;  %v723_v54 = vpop.permute.xlu1 %722 }
 0x4cf   : > { %671 = vst.msk [vmem:[#allocation2 + $0x28] sm:$0xf] %vm670_vm8, %v662_v53  ;;  %735 = vst [vmem:[#allocation3 + $0x90] sm:$0xff] %v723_v54  ;;  %v973_v2 = vmul.f32 %v972_v43, %v723_v54 }
 0x4d0   : > { %vm1683_vm8 = vmand %vm3042_vm6, %vm3047_vm7 }
 0x4d1   : > { %v975_v8 = vadd.f32 %v973_v2, %v967_v4 }
 0x4d2   : > { %v2671_v60 = vpop.permute.xlu0 %743  ;;  %v727_v61 = vpop.permute.xlu1 %726  ;;  %v2673_v62 = vld [vmem:[#allocation2 + $0x20] sm:$0xff] }
 0x4d3   : > { %755 = vst [vmem:[#allocation3 + $0xc8] sm:$0xff] %v2671_v60  ;;  %737 = vst [vmem:[#allocation3 + $0xa0] sm:$0xff] %v727_v61  ;;  %692 = vrot.lane.b32.xlu1 %v2673_v62, %s2251_s30 }
 0x4d4   : > { %682 = vst [vmem:[#allocation3 + $0x20] sm:$0xff] %v2673_v62 }
 0x4d6   : > { %v978_v5 = vld [vmem:[#allocation3 + $0x91] sm:$0xff]  ;;  %v2685_v1 = vpop.permute.xlu0 %760  ;;  %v2687_v7 = vpop.permute.xlu1 %741 }
 0x4d7   : > { %v986_v6 = vld [vmem:[#allocation3 + $0x92] sm:$0xff]  ;;  %v981_v9 = vmul.f32 %v980_v3, %v978_v5  ;;  %773 = vst [vmem:[#allocation3 + $0xf0] sm:$0xff] %v2685_v1  ;;  %754 = vst [vmem:[#allocation3 + $0xc0] sm:$0xff] %v2687_v7  ;;  %709 = vrot.lane.b32.xlu1 %v2652_v32, %s2252_s10  ;;  %v1029_v59 = vmul.f32 %v1028_v49, %v2687_v7  ;;  %v1052_v5 = vstv %s2713_s8  ;;  %s2789_s8 = sld [smem:[#allocation9 + $0x14]] }
 0x4d8   : > { %v994_v11 = vld [vmem:[#allocation3 + $0x93] sm:$0xff]  ;;  %v989_v14 = vmul.f32 %v988_v0, %v986_v6 }
 0x4d9   : > { %v2694_v12 = vld [vmem:[#allocation2 + $0x28] sm:$0xf]  ;;  %v983_v13 = vadd.f32 %v981_v9, %v975_v8  ;;  %v997_v23 = vmul.f32 %v996_v10, %v994_v11  ;;  %v1030_v9 = vmul.f32 %v1028_v49, %v2671_v60  ;;  %v1068_v60 = vstv %s2729_s19  ;;  %s2798_s19 = sld [smem:[#allocation9 + $0x29]] }
 0x4da   : > { %694 = vrot.lane.b32.xlu0 %v2694_v12, %s2251_s30  ;;  %683 = vst [vmem:[#allocation3 + $0x28] sm:$0xf] %v2694_v12  ;;  %v1002_v16 = vld [vmem:[#allocation3 + $0x94] sm:$0xff]  ;;  %v765_v19 = vpop.permute.xlu0 %764  ;;  %v746_v21 = vpop.permute.xlu1 %745  ;;  %s2707_s30 = sld [smem:[#allocation9 + $0x12]]  ;;  %v1003_v40 = vld [vmem:[#allocation3 + $0x9c] sm:$0xff] }
 0x4db   : > { %v979_v17 = vld [vmem:[#allocation3 + $0x99] sm:$0xff]  ;;  %v991_v22 = vadd.f32 %v989_v14, %v983_v13  ;;  %775 = vst [vmem:[#allocation3 + $0x100] sm:$0xff] %v765_v19  ;;  %756 = vst [vmem:[#allocation3 + $0xd0] sm:$0xff] %v746_v21  ;;  %713 = vrot.lane.b32.xlu1 %v2694_v12, %s2252_s10  ;;  %v1005_v36 = vmul.f32 %v1004_v15, %v1002_v16  ;;  %v1006_v48 = vmul.f32 %v1004_v15, %v1003_v40 }
 0x4dc   : > { %v987_v18 = vld [vmem:[#allocation3 + $0x9a] sm:$0xff]  ;;  %v982_v24 = vmul.f32 %v980_v3, %v979_v17 }
 0x4dd   : > { %v1010_v30 = vld [vmem:[#allocation3 + $0x95] sm:$0xff]  ;;  %v999_v34 = vadd.f32 %v997_v23, %v991_v22  ;;  %v990_v39 = vmul.f32 %v988_v0, %v987_v18  ;;  %v1011_v45 = vld [vmem:[#allocation3 + $0x9d] sm:$0xff] }
 0x4de   : > { %v995_v33 = vld [vmem:[#allocation3 + $0x9b] sm:$0xff]  ;;  %v984_v35 = vadd.f32 %v982_v24, %v2661_v51  ;;  %711 = vrot.lane.b32.xlu0 %v2673_v62, %s2252_s10  ;;  %v2715_v41 = vpop.permute.xlu0 %781  ;;  %v2717_v42 = vpop.permute.xlu1 %762  ;;  %v1013_v43 = vmul.f32 %v1012_v29, %v1010_v30  ;;  %s2723_s10 = sld [smem:[#allocation9 + $0x20]]  ;;  %v1036_v51 = vstv %s2702_s27  ;;  %v1014_v56 = vmul.f32 %v1012_v29, %v1011_v45  ;;  %v1050_v6 = vld [vmem:[#allocation3 + $0xc3] sm:$0xff] }
 0x4df   : > { %v1018_v27 = vld [vmem:[#allocation3 + $0x96] sm:$0xff]  ;;  %v1007_v28 = vadd.f32 %v1005_v36, %v999_v34  ;;  %v998_v44 = vmul.f32 %v996_v10, %v995_v33  ;;  %793 = vst [vmem:[#allocation3 + $0x128] sm:$0xff] %v2715_v41  ;;  %774 = vst [vmem:[#allocation3 + $0xf8] sm:$0xff] %v2717_v42  ;;  %730 = vrot.lane.b32.xlu1 %v2673_v62, %s2253_s11  ;;  %v1019_v50 = vld [vmem:[#allocation3 + $0x9e] sm:$0xff]  ;;  %v1053_v19 = vmul.f32 %v1052_v5, %v1050_v6  ;;  %s2775_s27 = sld [smem:[#allocation9 + $0x2f]] }
 0x4e0   : > { %v992_v25 = vadd.f32 %v990_v39, %v984_v35  ;;  %v1021_v26 = vmul.f32 %v1020_v37, %v1018_v27  ;;  %v1034_v52 = vld [vmem:[#allocation3 + $0xc1] sm:$0xff]  ;;  %v1044_v61 = vstv %s2707_s30  ;;  %v1022_v3 = vmul.f32 %v1020_v37, %v1019_v50  ;;  %s2780_s30 = sld [smem:[#allocation9 + $0x6]] }
 0x4e1   : > { %v1015_v46 = vadd.f32 %v1013_v43, %v1007_v28  ;;  %v1042_v63 = vld [vmem:[#allocation3 + $0xc2] sm:$0xff]  ;;  %v1037_v0 = vmul.f32 %v1036_v51, %v1034_v52  ;;  %v1076_v34 = vstv %s2738_s29  ;;  %v1084_v28 = vstv %s2742_s18  ;;  %s2802_s29 = sld [smem:[#allocation9 + $0x30]] }
 0x4e2   : > { %v1000_v47 = vadd.f32 %v998_v44, %v992_v25  ;;  %728 = vrot.lane.b32.xlu0 %v2652_v32, %s2253_s11  ;;  %v2731_v53 = vpop.permute.xlu1 %779  ;;  %v1035_v7 = vld [vmem:[#allocation3 + $0xc9] sm:$0xff]  ;;  %v1045_v13 = vmul.f32 %v1044_v61, %v1042_v63  ;;  %v1085_v49 = vmul.f32 %v1084_v28, %v2685_v1  ;;  %s2804_s18 = sld [smem:[#allocation9 + $0x31]] }
 0x4e3   : > { %v1023_v54 = vadd.f32 %v1021_v26, %v1015_v46  ;;  %792 = vst [vmem:[#allocation3 + $0x120] sm:$0xff] %v2731_v53  ;;  %747 = vrot.lane.b32.xlu1 %v2652_v32, %s2254_s12  ;;  %v1058_v15 = vld [vmem:[#allocation3 + $0xc4] sm:$0xff]  ;;  %v1038_v21 = vmul.f32 %v1036_v51, %v1035_v7  ;;  %v1059_v35 = vld [vmem:[#allocation3 + $0xcc] sm:$0xff] }
 0x4e4   : > { %v1008_v55 = vadd.f32 %v1006_v48, %v1000_v47  ;;  %v1060_v14 = vstv %s2723_s10  ;;  %v1043_v16 = vld [vmem:[#allocation3 + $0xca] sm:$0xff]  ;;  %s2794_s10 = sld [smem:[#allocation9 + $0x22]] }
 0x4e5   : > { %v1031_v4 = vadd.f32 %v1029_v59, %v1023_v54  ;;  %v1066_v22 = vld [vmem:[#allocation3 + $0xc5] sm:$0xff]  ;;  %v1061_v29 = vmul.f32 %v1060_v14, %v1058_v15  ;;  %v1046_v33 = vmul.f32 %v1044_v61, %v1043_v16  ;;  %v1067_v43 = vld [vmem:[#allocation3 + $0xcd] sm:$0xff]  ;;  %v1062_v46 = vmul.f32 %v1060_v14, %v1059_v35 }
 0x4e6   : > { %v1016_v2 = vadd.f32 %v1014_v56, %v1008_v55  ;;  %732 = vrot.lane.b32.xlu0 %v2694_v12, %s2253_s11  ;;  %v784_v8 = vpop.permute.xlu1 %783  ;;  %s2749_s11 = sld [smem:[#allocation9 + $0xc]]  ;;  %v1051_v23 = vld [vmem:[#allocation3 + $0xcb] sm:$0xff]  ;;  %v1069_v37 = vmul.f32 %v1068_v60, %v1066_v22  ;;  %v1070_v52 = vmul.f32 %v1068_v60, %v1067_v43  ;;  %v1100_v54 = vstv %s2754_s7  ;;  %v1091_v1 = vld [vmem:[#allocation3 + $0xf9] sm:$0xff] }
 0x4e7   : > { %v1039_v11 = vadd.f32 %v1037_v0, %v1031_v4  ;;  %794 = vst [vmem:[#allocation3 + $0x130] sm:$0xff] %v784_v8  ;;  %751 = vrot.lane.b32.xlu1 %v2694_v12, %s2254_s12  ;;  %v1074_v36 = vld [vmem:[#allocation3 + $0xc6] sm:$0xff]  ;;  %v1054_v40 = vmul.f32 %v1052_v5, %v1051_v23  ;;  %v1075_v26 = vld [vmem:[#allocation3 + $0xce] sm:$0xff]  ;;  %v1086_v0 = vmul.f32 %v1084_v28, %v2717_v42  ;;  %v1099_v8 = vld [vmem:[#allocation3 + $0xfa] sm:$0xff]  ;;  %v1124_v14 = vstv %s2769_s5  ;;  %s2811_s7 = sld [smem:[#allocation9 + $0x3f]] }
 0x4e8   : > { %v1024_v10 = vadd.f32 %v1022_v3, %v1016_v2  ;;  %v1077_v44 = vmul.f32 %v1076_v34, %v1074_v36  ;;  %v1090_v48 = vld [vmem:[#allocation3 + $0xf1] sm:$0xff]  ;;  %v1078_v61 = vmul.f32 %v1076_v34, %v1075_v26  ;;  %v1108_v2 = vstv %s2759_s15  ;;  %v1107_v15 = vld [vmem:[#allocation3 + $0xfb] sm:$0xff]  ;;  %s1959_s15 = sld [smem:[#allocation9 + $0x46]] }
 0x4e9   : > { %v1047_v18 = vadd.f32 %v1045_v13, %v1039_v11  ;;  %v1098_v55 = vld [vmem:[#allocation3 + $0xf2] sm:$0xff]  ;;  %v1115_v60 = vld [vmem:[#allocation3 + $0xfc] sm:$0xff]  ;;  %s2822_s5 = sld [smem:[#allocation9 + $0x54]] }
 0x4ea   : > { %v1032_v17 = vadd.f32 %v1030_v9, %v1024_v10  ;;  %749 = vrot.lane.b32.xlu0 %v2673_v62, %s2254_s12  ;;  %s2764_s12 = sld [smem:[#allocation9 + $0x21]]  ;;  %v1106_v3 = vld [vmem:[#allocation3 + $0xf3] sm:$0xff]  ;;  %v1101_v6 = vmul.f32 %v1100_v54, %v1098_v55  ;;  %v1146_v28 = vld [vmem:[#allocation3 + $0x121] sm:$0xff] }
 0x4eb   : > { %v1055_v24 = vadd.f32 %v1053_v19, %v1047_v18  ;;  %768 = vrot.lane.b32.xlu1 %v2673_v62, %s2255_s20  ;;  %v1114_v9 = vld [vmem:[#allocation3 + $0xf4] sm:$0xff]  ;;  %v1109_v13 = vmul.f32 %v1108_v2, %v1106_v3  ;;  %v1154_v26 = vld [vmem:[#allocation3 + $0x122] sm:$0xff] }
 0x4ec   : > { %v1040_v30 = vadd.f32 %v1038_v21, %v1032_v17  ;;  %v1092_v47 = vstv %s2749_s11  ;;  %v1122_v16 = vld [vmem:[#allocation3 + $0xf5] sm:$0xff]  ;;  %v1102_v17 = vmul.f32 %v1100_v54, %v1099_v8  ;;  %v1132_v21 = vstv %s2775_s27  ;;  %s2808_s11 = sld [smem:[#allocation9 + $0x38]] }
 0x4ed   : > { %v1063_v39 = vadd.f32 %v1061_v29, %v1055_v24  ;;  %v1093_v63 = vmul.f32 %v1092_v47, %v1090_v48  ;;  %v1094_v10 = vmul.f32 %v1092_v47, %v1091_v1  ;;  %v1130_v22 = vld [vmem:[#allocation3 + $0xf6] sm:$0xff]  ;;  %v1110_v24 = vmul.f32 %v1108_v2, %v1107_v15  ;;  %s2824_s27 = sld [smem:[#allocation9 + $0x5b]] }
 0x4ee   : > { %v1048_v27 = vadd.f32 %v1046_v33, %v1040_v30  ;;  %766 = vrot.lane.b32.xlu0 %v2652_v32, %s2255_s20  ;;  %v1125_v30 = vmul.f32 %v1124_v14, %v1122_v16  ;;  %v1123_v33 = vld [vmem:[#allocation3 + $0xfd] sm:$0xff]  ;;  %v1147_v54 = vld [vmem:[#allocation3 + $0x129] sm:$0xff] }
 0x4ef   : > { %v1071_v25 = vadd.f32 %v1069_v37, %v1063_v39  ;;  %785 = vrot.lane.b32.xlu1 %v2652_v32, %s2256_s26  ;;  %v1133_v39 = vmul.f32 %v1132_v21, %v1130_v22  ;;  %v1140_v37 = vstv %s2780_s30  ;;  %v1155_v2 = vld [vmem:[#allocation3 + $0x12a] sm:$0xff]  ;;  %s2827_s30 = sld [smem:[#allocation9 + $0x32]] }
 0x4f0   : > { %v1056_v45 = vadd.f32 %v1054_v40, %v1048_v27  ;;  %v1116_v7 = vstv %s2764_s12  ;;  %v1131_v27 = vld [vmem:[#allocation3 + $0xfe] sm:$0xff]  ;;  %v1142_v55 = vmul.f32 %v1140_v37, %v2715_v41  ;;  %s2820_s12 = sld [smem:[#allocation9 + $0x4d]] }
 0x4f1   : > { %v1079_v50 = vadd.f32 %v1077_v44, %v1071_v25  ;;  %v1117_v19 = vmul.f32 %v1116_v7, %v1114_v9  ;;  %v1118_v36 = vmul.f32 %v1116_v7, %v1115_v60  ;;  %v1126_v25 = vmul.f32 %v1124_v14, %v1123_v33  ;;  %v1163_v7 = vld [vmem:[#allocation3 + $0x12b] sm:$0xff] }
 0x4f2   : > { %v1064_v51 = vadd.f32 %v1062_v46, %v1056_v45  ;;  %770 = vrot.lane.b32.xlu0 %v2694_v12, %s2255_s20  ;;  %s2786_s20 = sld [smem:[#allocation9 + $0xd]]  ;;  %v1141_v45 = vmul.f32 %v1140_v37, %v2731_v53  ;;  %v1156_v46 = vstv %s2789_s8  ;;  %v1134_v48 = vmul.f32 %v1132_v21, %v1131_v27  ;;  %v1195_v37 = vld [vmem:[#allocation3 + $0x1e] sm:$0xff] }
 0x4f3   : > { %v1087_v56 = vadd.f32 %v1085_v49, %v1079_v50  ;;  %789 = vrot.lane.b32.xlu1 %v2694_v12, %s2256_s26  ;;  %v1157_v53 = vmul.f32 %v1156_v46, %v1154_v26  ;;  %s2834_s8 = sld [smem:[#allocation9 + $0x40]] }
 0x4f4   : > { %v1072_v59 = vadd.f32 %v1070_v52, %v1064_v51  ;;  %v1162_v52 = vld [vmem:[#allocation3 + $0x123] sm:$0xff] }
 0x4f5   : > { %v1095_v5 = vadd.f32 %v1093_v63, %v1087_v56  ;;  %v1170_v63 = vld [vmem:[#allocation3 + $0x124] sm:$0xff] }
 0x4f6   : > { %v1080_v4 = vadd.f32 %v1078_v61, %v1072_v59  ;;  %787 = vrot.lane.b32.xlu0 %v2673_v62, %s2256_s26  ;;  %s2792_s26 = sld [smem:[#allocation9 + $0x1b]]  ;;  %v1172_v61 = vstv %s2794_s10 }
 0x4f7   : > { %v1103_v11 = vadd.f32 %v1101_v6, %v1095_v5  ;;  %v1180_v5 = vstv %s2798_s19  ;;  %v1178_v6 = vld [vmem:[#allocation3 + $0x125] sm:$0xff]  ;;  %v1173_v8 = vmul.f32 %v1172_v61, %v1170_v63  ;;  %v1236_v63 = vstv %s2822_s5  ;;  %s2839_s10 = sld [smem:[#allocation9 + $0x4e]] }
 0x4f8   : > { %v1088_v12 = vadd.f32 %v1086_v0, %v1080_v4  ;;  %v1148_v40 = vstv %s2786_s20  ;;  %v1181_v15 = vmul.f32 %v1180_v5, %v1178_v6  ;;  %s2830_s20 = sld [smem:[#allocation9 + $0x39]]  ;;  %v1252_v6 = vstv %s2827_s30 }
 0x4f9   : > { %v1111_v18 = vadd.f32 %v1109_v13, %v1103_v11  ;;  %v1149_v50 = vmul.f32 %v1148_v40, %v1146_v28  ;;  %v1150_v0 = vmul.f32 %v1148_v40, %v1147_v54  ;;  %v1186_v11 = vld [vmem:[#allocation3 + $0x126] sm:$0xff]  ;;  %v1220_v54 = vstv %s1959_s15  ;;  %s2841_s19 = sld [smem:[#allocation9 + $0x55]] }
 0x4fa   : > { %v1096_v42 = vadd.f32 %v1094_v10, %v1088_v12  ;;  %v1158_v12 = vmul.f32 %v1156_v46, %v1155_v2  ;;  %v1188_v10 = vstv %s2802_s29  ;;  %v1171_v13 = vld [vmem:[#allocation3 + $0x12c] sm:$0xff]  ;;  %v1234_v2 = vld [vmem:[#allocation3 + $0x1b] sm:$0xff]  ;;  %s2844_s29 = sld [smem:[#allocation9 + $0x5c]] }
 0x4fb   : > { %v1119_v29 = vadd.f32 %v1117_v19, %v1111_v18  ;;  %v1196_v18 = vstv %s2804_s18  ;;  %v1179_v19 = vld [vmem:[#allocation3 + $0x12d] sm:$0xff]  ;;  %v1189_v60 = vmul.f32 %v1188_v10, %v1186_v11  ;;  %s2850_s18 = sld [smem:[#allocation9 + $0x33]] }
 0x4fc   : > { %v1104_v23 = vadd.f32 %v1102_v17, %v1096_v42  ;;  %v1164_v51 = vstv %s2792_s26  ;;  %v1194_v17 = vld [vmem:[#allocation3 + $0x16] sm:$0xff]  ;;  %s2836_s26 = sld [smem:[#allocation9 + $0x47]] }
 0x4fd   : > { %v1127_v35 = vadd.f32 %v1125_v30, %v1119_v29  ;;  %v1165_v4 = vmul.f32 %v1164_v51, %v1162_v52  ;;  %v1166_v42 = vmul.f32 %v1164_v51, %v1163_v7  ;;  %v1204_v29 = vstv %s2808_s11  ;;  %v1187_v30 = vld [vmem:[#allocation3 + $0x12e] sm:$0xff]  ;;  %s2853_s11 = sld [smem:[#allocation9 + $0x3a]] }
 0x4fe   : > { %v1112_v34 = vadd.f32 %v1110_v24, %v1104_v23  ;;  %v1174_v23 = vmul.f32 %v1172_v61, %v1171_v13  ;;  %v1202_v24 = vld [vmem:[#allocation3 + $0x17] sm:$0xff]  ;;  %v1197_v33 = vmul.f32 %v1196_v18, %v1194_v17  ;;  %s2862_s15 = sld [smem:[#allocation9 + $0x48]] }
 0x4ff   : > { %v1135_v44 = vadd.f32 %v1133_v39, %v1127_v35  ;;  %v1182_v35 = vmul.f32 %v1180_v5, %v1179_v19  ;;  %v1212_v39 = vstv %s2811_s7  ;;  %v1205_v27 = vmul.f32 %v1204_v29, %v1202_v24  ;;  %v1242_v5 = vld [vmem:[#allocation3 + $0x1c] sm:$0xff]  ;;  %s2856_s7 = sld [smem:[#allocation9 + $0x41]] }
 0x500   : > { %v1120_v43 = vadd.f32 %v1118_v36, %v1112_v34  ;;  %s2874_s5 = sld [smem:[#allocation9 + $0x56]] }
 0x501   : > { %v1143_v49 = vadd.f32 %v1141_v45, %v1135_v44  ;;  %v1213_v44 = vmul.f32 %v1212_v39, %v2652_v32  ;;  %v1198_v45 = vmul.f32 %v1196_v18, %v1195_v37  ;;  %s2883_s30 = sld [smem:[#allocation9 + $0x34]] }
 0x502   : > { %v1128_v47 = vadd.f32 %v1126_v25, %v1120_v43  ;;  %v1190_v43 = vmul.f32 %v1188_v10, %v1187_v30  ;;  %v1203_v25 = vld [vmem:[#allocation3 + $0x1f] sm:$0xff] }
 0x503   : > { %v1151_v59 = vadd.f32 %v1149_v50, %v1143_v49  ;;  %v1214_v50 = vmul.f32 %v1212_v39, %v2673_v62  ;;  %v1284_v39 = vstv %s2839_s10  ;;  %s2906_s10 = sld [smem:[#allocation9 + $0x50]] }
 0x504   : > { %v1136_v56 = vadd.f32 %v1134_v48, %v1128_v47  ;;  %v1206_v47 = vmul.f32 %v1204_v29, %v1203_v25 }
 0x505   : > { %v1159_v3 = vadd.f32 %v1157_v53, %v1151_v59  ;;  %v1228_v59 = vstv %s2820_s12  ;;  %v1226_v53 = vld [vmem:[#allocation3 + $0x1a] sm:$0xff]  ;;  %s2868_s12 = sld [smem:[#allocation9 + $0x4f]] }
 0x506   : > { %v1144_v1 = vadd.f32 %v1142_v55, %v1136_v56  ;;  %v1218_v55 = vld [vmem:[#allocation3 + $0x19] sm:$0xff]  ;;  %v1229_v61 = vmul.f32 %v1228_v59, %v1226_v53 }
 0x507   : > { %v1167_v41 = vadd.f32 %v1165_v4, %v1159_v3  ;;  %v1221_v56 = vmul.f32 %v1220_v54, %v1218_v55  ;;  %v1219_v3 = vld [vmem:[#allocation3 + $0x21] sm:$0xff]  ;;  %v1237_v4 = vmul.f32 %v1236_v63, %v1234_v2  ;;  %v1308_v2 = vstv %s2850_s18  ;;  %s2918_s18 = sld [smem:[#allocation9 + $0x35]] }
 0x508   : > { %v1152_v9 = vadd.f32 %v1150_v0, %v1144_v1  ;;  %v1244_v0 = vstv %s2824_s27  ;;  %s2880_s27 = sld [smem:[#allocation9 + $0x5d]] }
 0x509   : > { %v1175_v14 = vadd.f32 %v1173_v8, %v1167_v41  ;;  %v1222_v41 = vmul.f32 %v1220_v54, %v1219_v3  ;;  %v1300_v54 = vstv %s2844_s29  ;;  %s2915_s29 = sld [smem:[#allocation9 + $0x5e]] }
 0x50a   : > { %v1160_v16 = vadd.f32 %v1158_v12, %v1152_v9  ;;  %v1227_v9 = vld [vmem:[#allocation3 + $0x22] sm:$0xff]  ;;  %v1245_v12 = vmul.f32 %v1244_v0, %v1242_v5 }
 0x50b   : > { %v1183_v21 = vadd.f32 %v1181_v15, %v1175_v14  ;;  %v1230_v13 = vmul.f32 %v1228_v59, %v1227_v9  ;;  %v1235_v15 = vld [vmem:[#allocation3 + $0x23] sm:$0xff] }
 0x50c   : > { %v1168_v22 = vadd.f32 %v1166_v42, %v1160_v16  ;;  %v1260_v16 = vstv %s2830_s20  ;;  %s2887_s20 = sld [smem:[#allocation9 + $0x3b]] }
 0x50d   : > { %v1191_v34 = vadd.f32 %v1189_v60, %v1183_v21  ;;  %v1238_v21 = vmul.f32 %v1236_v63, %v1235_v15  ;;  %v1324_v15 = vstv %s2856_s7  ;;  %s2928_s7 = sld [smem:[#allocation9 + $0x43]] }
 0x50e   : > { %v1176_v36 = vadd.f32 %v1174_v23, %v1168_v22  ;;  %v1243_v22 = vld [vmem:[#allocation3 + $0x24] sm:$0xff]  ;;  %v1268_v23 = vstv %s2834_s8  ;;  %s2893_s8 = sld [smem:[#allocation9 + $0x42]] }
 0x50f   : > { %v1199_v40 = vadd.f32 %v1197_v33, %v1191_v34  ;;  %v1276_v33 = vstv %s2836_s26  ;;  %s2899_s26 = sld [smem:[#allocation9 + $0x49]] }
 0x510   : > { %v1184_v28 = vadd.f32 %v1182_v35, %v1176_v36  ;;  %v1246_v36 = vmul.f32 %v1244_v0, %v1243_v22 }
 0x511   : > { %v1207_v46 = vadd.f32 %v1205_v27, %v1199_v40 }
 0x512   : > { %v1192_v26 = vadd.f32 %v1190_v43, %v1184_v28 }
 0x513   : > { %v1215_v48 = vadd.f32 %v1213_v44, %v1207_v46 }
 0x514   : > { %v1200_v49 = vadd.f32 %v1198_v45, %v1192_v26  ;;  %v1292_v26 = vstv %s2841_s19  ;;  %s2912_s19 = sld [smem:[#allocation9 + $0x57]] }
 0x515   : > { %v1223_v62 = vadd.f32 %v1221_v56, %v1215_v48 }
 0x516   : > { %v1208_v51 = vadd.f32 %v1206_v47, %v1200_v49 }
 0x517   : > { %v1231_v1 = vadd.f32 %v1229_v61, %v1223_v62 }
 0x518   : > { %v1216_v52 = vadd.f32 %v1214_v50, %v1208_v51 }
 0x519   : > { %v1239_v8 = vadd.f32 %v1237_v4, %v1231_v1 }
 0x51a   : > { %v1224_v10 = vadd.f32 %v1222_v41, %v1216_v52  ;;  %v1316_v41 = vstv %s2853_s11  ;;  %s2925_s11 = sld [smem:[#allocation9 + $0x3c]] }
 0x51b   : > { %v1247_v14 = vadd.f32 %v1245_v12, %v1239_v8 }
 0x51c   : > { %v1232_v18 = vadd.f32 %v1230_v13, %v1224_v10 }
 0x51e   : > { %v1240_v29 = vadd.f32 %v1238_v21, %v1232_v18  ;;  %v1332_v21 = vstv %s2862_s15  ;;  %s2931_s15 = sld [smem:[#allocation9 + $0x4a]] }
 0x520   : > { %v1248_v43 = vadd.f32 %v1246_v36, %v1240_v29  ;;  %v1340_v36 = vstv %s2868_s12  ;;  %s2935_s12 = sld [smem:[#allocation9 + $0x51]] }
 0x535   : > { %v691_v32 = vpop.permute.xlu0 %690 }
 0x536   : > { %700 = vst [vmem:[#allocation3 + $0x48] sm:$0xff] %v691_v32  ;;  %v1269_v35 = vmul.f32 %v1268_v23, %v691_v32 }
 0x53d   : > { %v1250_v7 = vld [vmem:[#allocation3 + $0x46] sm:$0xff] }
 0x53e   : > { %v1253_v11 = vmul.f32 %v1252_v6, %v1250_v7  ;;  %v1258_v42 = vld [vmem:[#allocation3 + $0x47] sm:$0xff] }
 0x53f   : > { %v1261_v60 = vmul.f32 %v1260_v16, %v1258_v42 }
 0x540   : > { %v1255_v19 = vadd.f32 %v1253_v11, %v1247_v14 }
 0x542   : > { %v1263_v30 = vadd.f32 %v1261_v60, %v1255_v19 }
 0x544   : > { %v1271_v25 = vadd.f32 %v1269_v35, %v1263_v30 }
 0x545   : > { %v693_v17 = vpop.permute.xlu1 %692 }
 0x546   : > { %701 = vst [vmem:[#allocation3 + $0x50] sm:$0xff] %v693_v17  ;;  %v1270_v59 = vmul.f32 %v1268_v23, %v693_v17 }
 0x549   : > { %v2846_v24 = vpop.permute.xlu1 %709 }
 0x54a   : > { %719 = vst [vmem:[#allocation3 + $0x78] sm:$0xff] %v2846_v24 }
 0x54c   : > { %v695_v34 = vpop.permute.xlu0 %694 }
 0x54d   : > { %702 = vst [vmem:[#allocation3 + $0x58] sm:$0xf] %v695_v34  ;;  %v1251_v37 = vld [vmem:[#allocation3 + $0x4e] sm:$0xff]  ;;  %v714_v28 = vpop.permute.xlu1 %713  ;;  %v1325_v34 = vmul.f32 %v1324_v15, %v2846_v24 }
 0x54e   : > { %v1259_v27 = vld [vmem:[#allocation3 + $0x4f] sm:$0xff]  ;;  %v1254_v44 = vmul.f32 %v1252_v6, %v1251_v37  ;;  %721 = vst [vmem:[#allocation3 + $0x88] sm:$0xf] %v714_v28 }
 0x54f   : > { %v1274_v40 = vld [vmem:[#allocation3 + $0x49] sm:$0xff]  ;;  %v1262_v50 = vmul.f32 %v1260_v16, %v1259_v27 }
 0x550   : > { %v1277_v45 = vmul.f32 %v1276_v33, %v1274_v40  ;;  %v1282_v46 = vld [vmem:[#allocation3 + $0x4a] sm:$0xff]  ;;  %v2858_v48 = vpop.permute.xlu0 %711  ;;  %v1256_v49 = vadd.f32 %v1254_v44, %v1248_v43 }
 0x551   : > { %v1290_v47 = vld [vmem:[#allocation3 + $0x4b] sm:$0xff]  ;;  %v1285_v52 = vmul.f32 %v1284_v39, %v1282_v46  ;;  %720 = vst [vmem:[#allocation3 + $0x80] sm:$0xff] %v2858_v48  ;;  %v2864_v32 = vpop.permute.xlu1 %730  ;;  %v1306_v1 = vld [vmem:[#allocation3 + $0x76] sm:$0xff] }
 0x552   : > { %v1279_v51 = vadd.f32 %v1277_v45, %v1271_v25  ;;  %v1298_v55 = vld [vmem:[#allocation3 + $0x4c] sm:$0xff]  ;;  %v1264_v56 = vadd.f32 %v1262_v50, %v1256_v49  ;;  %v1293_v62 = vmul.f32 %v1292_v26, %v1290_v47  ;;  %739 = vst [vmem:[#allocation3 + $0xb0] sm:$0xff] %v2864_v32  ;;  %v1314_v8 = vld [vmem:[#allocation3 + $0x77] sm:$0xff]  ;;  %v1309_v13 = vmul.f32 %v1308_v2, %v1306_v1 }
 0x553   : > { %v1301_v5 = vmul.f32 %v1300_v54, %v1298_v55  ;;  %v1317_v19 = vmul.f32 %v1316_v41, %v1314_v8  ;;  %v1348_v25 = vstv %s2874_s5  ;;  %v1356_v49 = vstv %s2880_s27  ;;  %s2938_s5 = sld [smem:[#allocation9 + $0x58]] }
 0x554   : > { %v1287_v53 = vadd.f32 %v1285_v52, %v1279_v51  ;;  %v1275_v61 = vld [vmem:[#allocation3 + $0x51] sm:$0xff]  ;;  %v2870_v3 = vpop.permute.xlu0 %728  ;;  %v1272_v4 = vadd.f32 %v1270_v59, %v1264_v56  ;;  %v1326_v55 = vmul.f32 %v1324_v15, %v2858_v48  ;;  %v1372_v48 = vstv %s2887_s20  ;;  %s2941_s27 = sld [smem:[#allocation9 + $0x5f]] }
 0x555   : > { %v1283_v63 = vld [vmem:[#allocation3 + $0x52] sm:$0xff]  ;;  %v1278_v6 = vmul.f32 %v1276_v33, %v1275_v61  ;;  %738 = vst [vmem:[#allocation3 + $0xa8] sm:$0xff] %v2870_v3  ;;  %v2876_v9 = vpop.permute.xlu1 %747  ;;  %s2948_s20 = sld [smem:[#allocation9 + $0x3d]] }
 0x556   : > { %v1295_v0 = vadd.f32 %v1293_v62, %v1287_v53  ;;  %v1291_v7 = vld [vmem:[#allocation3 + $0x53] sm:$0xff]  ;;  %v1286_v11 = vmul.f32 %v1284_v39, %v1283_v63  ;;  %757 = vst [vmem:[#allocation3 + $0xd8] sm:$0xff] %v2876_v9  ;;  %v1364_v62 = vstv %s2883_s30  ;;  %s2944_s30 = sld [smem:[#allocation9 + $0x36]] }
 0x557   : > { %v1280_v10 = vadd.f32 %v1278_v6, %v1272_v4  ;;  %v1299_v14 = vld [vmem:[#allocation3 + $0x54] sm:$0xff]  ;;  %v1294_v17 = vmul.f32 %v1292_v26, %v1291_v7 }
 0x558   : > { %v1303_v12 = vadd.f32 %v1301_v5, %v1295_v0  ;;  %v733_v16 = vpop.permute.xlu0 %732  ;;  %v1307_v60 = vld [vmem:[#allocation3 + $0x7e] sm:$0xff]  ;;  %v1302_v30 = vmul.f32 %v1300_v54, %v1299_v14 }
 0x559   : > { %v1288_v42 = vadd.f32 %v1286_v11, %v1280_v10  ;;  %740 = vst [vmem:[#allocation3 + $0xb8] sm:$0xf] %v733_v16  ;;  %v1330_v22 = vld [vmem:[#allocation3 + $0x79] sm:$0xff]  ;;  %v752_v23 = vpop.permute.xlu1 %751  ;;  %v1310_v28 = vmul.f32 %v1308_v2, %v1307_v60  ;;  %v1331_v51 = vld [vmem:[#allocation3 + $0x81] sm:$0xff] }
 0x55a   : > { %v1311_v18 = vadd.f32 %v1309_v13, %v1303_v12  ;;  %759 = vst [vmem:[#allocation3 + $0xe8] sm:$0xf] %v752_v23  ;;  %v1315_v35 = vld [vmem:[#allocation3 + $0x7f] sm:$0xff]  ;;  %v1333_v43 = vmul.f32 %v1332_v21, %v1330_v22  ;;  %v1334_v0 = vmul.f32 %v1332_v21, %v1331_v51  ;;  %v1380_v13 = vstv %s2893_s8  ;;  %s2951_s8 = sld [smem:[#allocation9 + $0x44]] }
 0x55b   : > { %v1296_v29 = vadd.f32 %v1294_v17, %v1288_v42  ;;  %v1338_v39 = vld [vmem:[#allocation3 + $0x7a] sm:$0xff]  ;;  %v1318_v46 = vmul.f32 %v1316_v41, %v1315_v35  ;;  %v1339_v53 = vld [vmem:[#allocation3 + $0x82] sm:$0xff] }
 0x55c   : > { %v1319_v33 = vadd.f32 %v1317_v19, %v1311_v18  ;;  %v2889_v37 = vpop.permute.xlu0 %749  ;;  %v1346_v44 = vld [vmem:[#allocation3 + $0x7b] sm:$0xff]  ;;  %v1341_v47 = vmul.f32 %v1340_v36, %v1338_v39  ;;  %v1362_v61 = vld [vmem:[#allocation3 + $0xa6] sm:$0xff]  ;;  %v1342_v12 = vmul.f32 %v1340_v36, %v1339_v53  ;;  %v1388_v18 = vstv %s2899_s26  ;;  %v1363_v19 = vld [vmem:[#allocation3 + $0xae] sm:$0xff]  ;;  %s2954_s26 = sld [smem:[#allocation9 + $0x4b]] }
 0x55d   : > { %v1304_v27 = vadd.f32 %v1302_v30, %v1296_v29  ;;  %758 = vst [vmem:[#allocation3 + $0xe0] sm:$0xff] %v2889_v37  ;;  %v2895_v24 = vpop.permute.xlu1 %768  ;;  %v1354_v50 = vld [vmem:[#allocation3 + $0x7c] sm:$0xff]  ;;  %v1349_v59 = vmul.f32 %v1348_v25, %v1346_v44  ;;  %v1370_v6 = vld [vmem:[#allocation3 + $0xa7] sm:$0xff]  ;;  %v1365_v10 = vmul.f32 %v1364_v62, %v1362_v61  ;;  %v1381_v30 = vmul.f32 %v1380_v13, %v2870_v3 }
 0x55e   : > { %v1327_v40 = vadd.f32 %v1325_v34, %v1319_v33  ;;  %777 = vst [vmem:[#allocation3 + $0x110] sm:$0xff] %v2895_v24  ;;  %v1357_v4 = vmul.f32 %v1356_v49, %v1354_v50  ;;  %v1347_v5 = vld [vmem:[#allocation3 + $0x83] sm:$0xff]  ;;  %v1373_v17 = vmul.f32 %v1372_v48, %v1370_v6  ;;  %v1396_v33 = vstv %s2906_s10  ;;  %v1371_v34 = vld [vmem:[#allocation3 + $0xaf] sm:$0xff]  ;;  %s2958_s10 = sld [smem:[#allocation9 + $0x52]] }
 0x55f   : > { %v1312_v45 = vadd.f32 %v1310_v28, %v1304_v27  ;;  %v1355_v11 = vld [vmem:[#allocation3 + $0x84] sm:$0xff]  ;;  %v1350_v16 = vmul.f32 %v1348_v25, %v1347_v5  ;;  %v1366_v27 = vmul.f32 %v1364_v62, %v1363_v19  ;;  %v1404_v28 = vstv %s2912_s19  ;;  %s2961_s19 = sld [smem:[#allocation9 + $0x59]] }
 0x560   : > { %v1335_v26 = vadd.f32 %v1333_v43, %v1327_v40  ;;  %v2901_v52 = vpop.permute.xlu0 %766  ;;  %v1386_v21 = vld [vmem:[#allocation3 + $0xa9] sm:$0xff]  ;;  %v1358_v23 = vmul.f32 %v1356_v49, %v1355_v11  ;;  %v1374_v44 = vmul.f32 %v1372_v48, %v1371_v34  ;;  %v1382_v50 = vmul.f32 %v1380_v13, %v2864_v32 }
 0x561   : > { %v1320_v54 = vadd.f32 %v1318_v46, %v1312_v45  ;;  %776 = vst [vmem:[#allocation3 + $0x108] sm:$0xff] %v2901_v52  ;;  %v2908_v63 = vpop.permute.xlu1 %785  ;;  %v1394_v36 = vld [vmem:[#allocation3 + $0xaa] sm:$0xff]  ;;  %v1389_v40 = vmul.f32 %v1388_v18, %v1386_v21  ;;  %v1412_v46 = vstv %s2915_s29  ;;  %v1444_v13 = vstv %s2931_s15  ;;  %s2964_s29 = sld [smem:[#allocation9 + $0x60]] }
 0x562   : > { %v1343_v56 = vadd.f32 %v1341_v47, %v1335_v26  ;;  %795 = vst [vmem:[#allocation3 + $0x138] sm:$0xff] %v2908_v63  ;;  %v1402_v43 = vld [vmem:[#allocation3 + $0xab] sm:$0xff]  ;;  %v1397_v45 = vmul.f32 %v1396_v33, %v1394_v36  ;;  %v1452_v19 = vstv %s2935_s12  ;;  %v1460_v34 = vstv %s2938_s5  ;;  %s2977_s15 = sld [smem:[#allocation9 + $0x4c]] }
 0x563   : > { %v1328_v2 = vadd.f32 %v1326_v55, %v1320_v54  ;;  %v1410_v26 = vld [vmem:[#allocation3 + $0xac] sm:$0xff]  ;;  %v1405_v54 = vmul.f32 %v1404_v28, %v1402_v43  ;;  %s2981_s12 = sld [smem:[#allocation9 + $0x53]] }
 0x564   : > { %v1351_v1 = vadd.f32 %v1349_v59, %v1343_v56  ;;  %v771_v7 = vpop.permute.xlu0 %770  ;;  %v1387_v47 = vld [vmem:[#allocation3 + $0xb1] sm:$0xff]  ;;  %v1420_v56 = vstv %s2918_s18  ;;  %v1413_v61 = vmul.f32 %v1412_v46, %v1410_v26  ;;  %v1427_v21 = vld [vmem:[#allocation3 + $0xdf] sm:$0xff]  ;;  %v1476_v26 = vstv %s2944_s30  ;;  %s2967_s18 = sld [smem:[#allocation9 + $0x37]]  ;;  %s2258_s30 = smov 16  }
 0x565   : > { %v1336_v8 = vadd.f32 %v1334_v0, %v1328_v2  ;;  %778 = vst [vmem:[#allocation3 + $0x118] sm:$0xf] %v771_v7  ;;  %v790_v14 = vpop.permute.xlu1 %789  ;;  %v1395_v55 = vld [vmem:[#allocation3 + $0xb2] sm:$0xff]  ;;  %v1390_v2 = vmul.f32 %v1388_v18, %v1387_v47  ;;  %v1458_v36 = vld [vmem:[#allocation3 + $0xdb] sm:$0xff]  ;;  %s2984_s5 = sld [smem:[#allocation9 + $0x5a]] }
 0x566   : > { %v1359_v41 = vadd.f32 %v1357_v4, %v1351_v1  ;;  %797 = vst [vmem:[#allocation3 + $0x148] sm:$0xf] %v790_v14  ;;  %v1418_v59 = vld [vmem:[#allocation3 + $0xd6] sm:$0xff]  ;;  %v1428_v4 = vstv %s2925_s11  ;;  %v1398_v48 = vmul.f32 %v1396_v33, %v1395_v55  ;;  %v1419_v14 = vld [vmem:[#allocation3 + $0xde] sm:$0xff]  ;;  %s2971_s11 = sld [smem:[#allocation9 + $0x3e]] }
 0x567   : > { %v1344_v15 = vadd.f32 %v1342_v12, %v1336_v8  ;;  %v1403_v1 = vld [vmem:[#allocation3 + $0xb3] sm:$0xff]  ;;  %v1421_v6 = vmul.f32 %v1420_v56, %v1418_v59  ;;  %v1443_v43 = vld [vmem:[#allocation3 + $0xe1] sm:$0xff] }
 0x568   : > { %v1367_v42 = vadd.f32 %v1365_v10, %v1359_v41  ;;  %v2920_v60 = vpop.permute.xlu0 %787  ;;  %v1426_v0 = vld [vmem:[#allocation3 + $0xd7] sm:$0xff]  ;;  %v1436_v41 = vstv %s2928_s7  ;;  %v1406_v12 = vmul.f32 %v1404_v28, %v1403_v1  ;;  %v1474_v47 = vld [vmem:[#allocation3 + $0x106] sm:$0xff]  ;;  %v1492_v1 = vstv %s2951_s8  ;;  %s2974_s7 = sld [smem:[#allocation9 + $0x45]]  ;;  %s2260_s8 = smov 64  }
 0x569   : > { %v1352_v22 = vadd.f32 %v1350_v16, %v1344_v15  ;;  %796 = vst [vmem:[#allocation3 + $0x140] sm:$0xff] %v2920_v60  ;;  %v1411_v7 = vld [vmem:[#allocation3 + $0xb4] sm:$0xff]  ;;  %v1429_v11 = vmul.f32 %v1428_v4, %v1426_v0  ;;  %v1437_v18 = vmul.f32 %v1436_v41, %v2876_v9  ;;  %v1468_v9 = vstv %s2941_s27  ;;  %v1466_v28 = vld [vmem:[#allocation3 + $0xdc] sm:$0xff]  ;;  %v1482_v59 = vld [vmem:[#allocation3 + $0x107] sm:$0xff]  ;;  %s2987_s27 = sld [smem:[#allocation9 + $0x61]] }
 0x56a   : > { %v1375_v29 = vadd.f32 %v1373_v17, %v1367_v42  ;;  %v1442_v15 = vld [vmem:[#allocation3 + $0xd9] sm:$0xff]  ;;  %v1414_v42 = vmul.f32 %v1412_v46, %v1411_v7  ;;  %v1451_v46 = vld [vmem:[#allocation3 + $0xe2] sm:$0xff] }
 0x56b   : > { %v1360_v35 = vadd.f32 %v1358_v23, %v1352_v22  ;;  %v1450_v22 = vld [vmem:[#allocation3 + $0xda] sm:$0xff]  ;;  %v1445_v33 = vmul.f32 %v1444_v13, %v1442_v15  ;;  %v1459_v55 = vld [vmem:[#allocation3 + $0xe3] sm:$0xff] }
 0x56c   : > { %v1383_v39 = vadd.f32 %v1381_v30, %v1375_v29  ;;  %v1422_v30 = vmul.f32 %v1420_v56, %v1419_v14  ;;  %v1484_v56 = vstv %s2948_s20  ;;  %v1462_v0 = vmul.f32 %v1460_v34, %v1459_v55  ;;  %v1498_v7 = vld [vmem:[#allocation3 + $0x109] sm:$0xff]  ;;  %s2259_s20 = smov 32  }
 0x56d   : > { %v1368_v25 = vadd.f32 %v1366_v27, %v1360_v35  ;;  %v1506_v14 = vld [vmem:[#allocation3 + $0x10a] sm:$0xff] }
 0x56e   : > { %v1391_v3 = vadd.f32 %v1389_v40, %v1383_v39  ;;  %v1430_v39 = vmul.f32 %v1428_v4, %v1427_v21  ;;  %v1453_v40 = vmul.f32 %v1452_v19, %v1450_v22 }
 0x56f   : > { %v1376_v49 = vadd.f32 %v1374_v44, %v1368_v25  ;;  %v1438_v44 = vmul.f32 %v1436_v41, %v2889_v37 }
 0x570   : > { %v1399_v51 = vadd.f32 %v1397_v45, %v1391_v3  ;;  %v1461_v45 = vmul.f32 %v1460_v34, %v1458_v36  ;;  %v1494_v36 = vmul.f32 %v1492_v1, %v2895_v24 }
 0x571   : > { %v1384_v53 = vadd.f32 %v1382_v50, %v1376_v49 }
 0x572   : > { %v1407_v62 = vadd.f32 %v1405_v54, %v1399_v51  ;;  %v1469_v51 = vmul.f32 %v1468_v9, %v1466_v28  ;;  %v1446_v54 = vmul.f32 %v1444_v13, %v1443_v43  ;;  %v1483_v13 = vld [vmem:[#allocation3 + $0x10f] sm:$0xff] }
 0x573   : > { %v1392_v32 = vadd.f32 %v1390_v2, %v1384_v53  ;;  %v1467_v2 = vld [vmem:[#allocation3 + $0xe4] sm:$0xff]  ;;  %v1486_v22 = vmul.f32 %v1484_v56, %v1483_v13 }
 0x574   : > { %v1415_v5 = vadd.f32 %v1413_v61, %v1407_v62  ;;  %v1454_v62 = vmul.f32 %v1452_v19, %v1451_v46  ;;  %v1477_v61 = vmul.f32 %v1476_v26, %v1474_v47  ;;  %v1514_v19 = vld [vmem:[#allocation3 + $0x10b] sm:$0xff]  ;;  %v1538_v46 = vld [vmem:[#allocation3 + $0x137] sm:$0xff] }
 0x575   : > { %v1400_v8 = vadd.f32 %v1398_v48, %v1392_v32  ;;  %v1485_v32 = vmul.f32 %v1484_v56, %v1482_v59  ;;  %v1500_v48 = vstv %s2954_s26  ;;  %s2261_s26 = smov 48  }
 0x576   : > { %v1423_v10 = vadd.f32 %v1421_v6, %v1415_v5  ;;  %v1475_v6 = vld [vmem:[#allocation3 + $0x10e] sm:$0xff] }
 0x577   : > { %v1408_v16 = vadd.f32 %v1406_v12, %v1400_v8  ;;  %v1470_v8 = vmul.f32 %v1468_v9, %v1467_v2  ;;  %v1530_v9 = vld [vmem:[#allocation3 + $0x136] sm:$0xff] }
 0x578   : > { %v1431_v17 = vadd.f32 %v1429_v11, %v1423_v10  ;;  %v1493_v10 = vmul.f32 %v1492_v1, %v2901_v52  ;;  %v1508_v11 = vstv %s2958_s10  ;;  %v1524_v52 = vstv %s2964_s29  ;;  %s2262_s10 = smov 80   ;;  %s2264_s29 = smov 112  }
 0x579   : > { %v1416_v23 = vadd.f32 %v1414_v42, %v1408_v16  ;;  %v1478_v42 = vmul.f32 %v1476_v26, %v1475_v6 }
 0x57a   : > { %v1439_v29 = vadd.f32 %v1437_v18, %v1431_v17  ;;  %v1501_v17 = vmul.f32 %v1500_v48, %v1498_v7  ;;  %v1516_v18 = vstv %s2961_s19  ;;  %s2263_s19 = smov 96  }
 0x57b   : > { %v1424_v35 = vadd.f32 %v1422_v30, %v1416_v23  ;;  %v1522_v30 = vld [vmem:[#allocation3 + $0x10c] sm:$0xff] }
 0x57c   : > { %v1447_v27 = vadd.f32 %v1445_v33, %v1439_v29  ;;  %v1509_v29 = vmul.f32 %v1508_v11, %v1506_v14  ;;  %v1499_v33 = vld [vmem:[#allocation3 + $0x111] sm:$0xff] }
 0x57d   : > { %v1432_v25 = vadd.f32 %v1430_v39, %v1424_v35  ;;  %v1517_v39 = vmul.f32 %v1516_v18, %v1514_v19 }
 0x57e   : > { %v1455_v3 = vadd.f32 %v1453_v40, %v1447_v27  ;;  %v1507_v27 = vld [vmem:[#allocation3 + $0x112] sm:$0xff]  ;;  %v1532_v40 = vstv %s2967_s18  ;;  %s2013_s18 = sshll.u32 %s2322_s25, 8 }
 0x57f   : > { %v1440_v49 = vadd.f32 %v1438_v44, %v1432_v25  ;;  %v1525_v25 = vmul.f32 %v1524_v52, %v1522_v30  ;;  %v1502_v44 = vmul.f32 %v1500_v48, %v1499_v33  ;;  %v1510_v47 = vmul.f32 %v1508_v11, %v1507_v27  ;;  %v1571_v30 = vld [vmem:[#allocation3 + $0x143] sm:$0xff] }
 0x580   : > { %v1463_v50 = vadd.f32 %v1461_v45, %v1455_v3  ;;  %v1515_v3 = vld [vmem:[#allocation3 + $0x113] sm:$0xff]  ;;  %v1540_v45 = vstv %s2971_s11  ;;  %s281_s11 = scalar_lea.vmem [#allocation10], %s1903_s14  ;;  %s2265_s14 = smov [#allocation10]  }
 0x581   : > { %v1448_v37 = vadd.f32 %v1446_v54, %v1440_v49  ;;  %v1533_v49 = vmul.f32 %v1532_v40, %v1530_v9  ;;  %v1518_v55 = vmul.f32 %v1516_v18, %v1515_v3  ;;  %v1541_v59 = vmul.f32 %v1540_v45, %v1538_v46 }
 0x582   : > { %v1471_v53 = vadd.f32 %v1469_v51, %v1463_v50  ;;  %v1523_v50 = vld [vmem:[#allocation3 + $0x114] sm:$0xff]  ;;  %v1548_v51 = vstv %s2974_s7  ;;  %v2257_v3 = vmov 1966171168   ;;  %s1813_s7 = sshll.u32 %s281_s11, 4  ;;  %s1814_s7 = int_to_ptr.vmem [resolvable:$true] %s1813_s7 }
 0x583   : > { %v1456_v4 = vadd.f32 %v1454_v62, %v1448_v37  ;;  %v1531_v37 = vld [vmem:[#allocation3 + $0x13e] sm:$0xff]  ;;  %v1526_v2 = vmul.f32 %v1524_v52, %v1523_v50  ;;  %v1550_v18 = vmul.f32 %v1548_v51, %v2920_v60  ;;  %s2168_s25 = scalar_lea.vmem %s1814_s7, 256 }
 0x584   : > { %v1479_v5 = vadd.f32 %v1477_v61, %v1471_v53  ;;  %v1556_v53 = vstv %s2977_s15  ;;  %v1554_v62 = vld [vmem:[#allocation3 + $0x139] sm:$0xff]  ;;  %v1534_v7 = vmul.f32 %v1532_v40, %v1531_v37  ;;  %p2169_p9 = scmp.ne.s32.totalorder %s1814_s7, %s2168_s25 }
 0x585   : > { %v1464_v41 = vadd.f32 %v1462_v0, %v1456_v4  ;;  %v1549_v4 = vmul.f32 %v1548_v51, %v2908_v63  ;;  %v1564_v0 = vstv %s2981_s12 }
 0x586   : > { %v1487_v12 = vadd.f32 %v1485_v32, %v1479_v5  ;;  %v1539_v5 = vld [vmem:[#allocation3 + $0x13f] sm:$0xff]  ;;  %p2170_p13 = pnand %p2169_p9, %p3193_p11 }
 0x587   : > { %v1472_v15 = vadd.f32 %v1470_v8, %v1464_v41  ;;  %v1562_v32 = vld [vmem:[#allocation3 + $0x13a] sm:$0xff]  ;;  %v1557_v41 = vmul.f32 %v1556_v53, %v1554_v62  ;;  %v1572_v8 = vstv %s2984_s5  ;;  %v1542_v11 = vmul.f32 %v1540_v45, %v1539_v5  ;;  %s3111_s5 = scalar_lea.hbm %s3154_s6, %s2013_s18 }
 0x588   : > { %v1495_v16 = vadd.f32 %v1493_v10, %v1487_v12  ;;  %v1570_v12 = vld [vmem:[#allocation3 + $0x13b] sm:$0xff]  ;;  %v1565_v14 = vmul.f32 %v1564_v0, %v1562_v32  ;;  %v1574_v40 = vmul.f32 %v1572_v8, %v1571_v30  ;;  %v1604_v45 = vunpack.c.l.s4 %v2257_v3  ;;  %p2171_p10 = pneg %p2170_p13 }
 0x589   : > { %v1480_v21 = vadd.f32 %v1478_v42, %v1472_v15  ;;  %v1580_v15 = vstv %s2987_s27  ;;  %v1555_v42 = vld [vmem:[#allocation3 + $0x141] sm:$0xff]  ;;  %v1573_v19 = vmul.f32 %v1572_v8, %v1570_v12  ;;  %s1799_s27 = scalar_lea.sflag [#allocation7], %s2420_s13 }
 0x58a   : > { %v1503_v23 = vadd.f32 %v1501_v17, %v1495_v16  ;;  %v1578_v16 = vld [vmem:[#allocation3 + $0x13c] sm:$0xff]  ;;  %v1558_v52 = vmul.f32 %v1556_v53, %v1555_v42 }
 0x58b   : > { %v1488_v34 = vadd.f32 %v1486_v22, %v1480_v21  ;;  %v1563_v21 = vld [vmem:[#allocation3 + $0x142] sm:$0xff] }
 0x58c   : > { %v1511_v35 = vadd.f32 %v1509_v29, %v1503_v23  ;;  %v1581_v29 = vmul.f32 %v1580_v15, %v1578_v16 }
 0x58d   : > { %v1496_v28 = vadd.f32 %v1494_v36, %v1488_v34  ;;  %v1566_v36 = vmul.f32 %v1564_v0, %v1563_v21 }
 0x58e   : > { %v1519_v43 = vadd.f32 %v1517_v39, %v1511_v35  ;;  %v1579_v35 = vld [vmem:[#allocation3 + $0x144] sm:$0xff] }
 0x58f   : > { %v1504_v24 = vadd.f32 %v1502_v44, %v1496_v28  ;;  %v1582_v28 = vmul.f32 %v1580_v15, %v1579_v35 }
 0x590   : > { %v1527_v26 = vadd.f32 %v1525_v25, %v1519_v43 }
 0x591   : > { %v1512_v54 = vadd.f32 %v1510_v47, %v1504_v24  ;;  %v1605_v24 = vunpack.c.0.s8 %v1604_v45 }
 0x592   : > { %v1535_v56 = vadd.f32 %v1533_v49, %v1527_v26 }
 0x593   : > { %v1520_v61 = vadd.f32 %v1518_v55, %v1512_v54  ;;  %v1608_v47 = vsub.s32 %v1605_v24, %v2464_v31 }
 0x594   : > { %v1543_v1 = vadd.f32 %v1541_v59, %v1535_v56 }
 0x595   : > { %v1528_v48 = vadd.f32 %v1526_v2, %v1520_v61 }
 0x596   : > { %v1551_v6 = vadd.f32 %v1549_v4, %v1543_v1 }
 0x597   : > { %v1536_v10 = vadd.f32 %v1534_v7, %v1528_v48 }
 0x598   : > { %v1559_v13 = vadd.f32 %v1557_v41, %v1551_v6 }
 0x599   : > { %v1544_v17 = vadd.f32 %v1542_v11, %v1536_v10 }
 0x59a   : > { %v1567_v63 = vadd.f32 %v1565_v14, %v1559_v13 }
 0x59b   : > { %v1552_v22 = vadd.f32 %v1550_v18, %v1544_v17 }
 0x59c   : > { %v1575_v23 = vadd.f32 %v1573_v19, %v1567_v63 }
 0x59d   : > { %v1560_v34 = vadd.f32 %v1558_v52, %v1552_v22 }
 0x59e   : > { %v1583_v33 = vadd.f32 %v1581_v29, %v1575_v23 }
 0x59f   : > { %v1568_v27 = vadd.f32 %v1566_v36, %v1560_v34 }
 0x5a0   : > { %v2005_v39 = vmul.f32 -1.442695, %v1583_v33 }
 0x5a1   : > { %v1576_v9 = vadd.f32 %v1574_v40, %v1568_v27 }
 0x5a2   : > { %2117 = vpow2.f32 %v2005_v39 }
 0x5a3   : > { %v1584_v43 = vadd.f32 %v1582_v28, %v1576_v9 }
 0x5a5   : > { %v2006_v60 = vmul.f32 -1.442695, %v1584_v43 }
 0x5a7   : > { %2119 = vpow2.f32 %v2006_v60 }
 0x5af   : > { %v2118_v25 = vpop.eup %2117 }
 0x5b0   : > { %v1591_v44 = vadd.f32 1.0, %v2118_v25  ;;  %v1790_v25 = vsub.s32 1, %v2464_v31 }
 0x5b2   : > { %2121 = vrcp.f32 %v1591_v44 }
 0x5b4   : > { %v2120_v46 = vpop.eup %2119 }
 0x5b5   : > { %v1592_v26 = vadd.f32 1.0, %v2120_v46 }
 0x5b7   : > { %2123 = vrcp.f32 %v1592_v26 }
 0x5bf   : > { %v2122_v49 = vpop.eup %2121 }
 0x5c0   : > { %v1609_v50 = vrot.slane %v2122_v49, %v1608_v47  ;;  %1601 = vst.msk [vmem:[#allocation4] sm:$0x1] %vm1599_vm9, %v2122_v49  ;;  %v1648_v56 = vcombine.high %v2122_v49, %v2122_v49 }
 0x5c2   : > { %v1610_v51 = vcombine.high %v1609_v50, %v1609_v50  ;;  %v1617_v55 = vrot.slane %v1609_v50, %v1608_v47  ;;  %v1655_v61 = vrot.slane %v1648_v56, %v1608_v47 }
 0x5c4   : > { %v1624_v54 = vrot.slane %v1610_v51, %v1608_v47  ;;  %v2124_v59 = vpop.eup %2123  ;;  %v1632_v37 = vcombine.high %v1617_v55, %v1617_v55  ;;  %v1662_v0 = vrot.slane %v1655_v61, %v1608_v47  ;;  %v1670_v6 = vcombine.high %v1655_v61, %v1655_v61 }
 0x5c5   : > { %v1709_v53 = vrot.slane %v2124_v59, %v1608_v47  ;;  %1701 = vst.msk [vmem:[#allocation4 + $0x1] sm:$0x1] %vm1599_vm9, %v2124_v59  ;;  %v1739_v4 = vcombine.high %v2124_v59, %v2124_v59  ;;  %vm3066_vm9 = vcmp.ge.s32.totalorder %v342_v20, 96 }
 0x5c6   : > { %1625 = vrot.lane.b32.xlu0 %v1624_v54, %s2258_s30  ;;  %v1640_v48 = vcombine.high %v1624_v54, %v1624_v54  ;;  %v1677_v41 = vrot.slane %v1670_v6, %v1608_v47  ;;  %v1685_v10 = vcombine.high %v1662_v0, %v1662_v0  ;;  %vm1691_vm11 = vmand %vm3066_vm9, %vm3071_vm10 }
 0x5c7   : > { %v1710_v62 = vcombine.high %v1709_v53, %v1709_v53  ;;  %v1717_v1 = vrot.slane %v1709_v53, %v1608_v47  ;;  %v1746_v32 = vrot.slane %v1739_v4, %v1608_v47 }
 0x5c8   : > { %v1693_v13 = vcombine.high %v1677_v41, %v1677_v41 }
 0x5c9   : > { %v1724_v2 = vrot.slane %v1710_v62, %v1608_v47  ;;  %v1729_v5 = vcombine.high %v1717_v1, %v1717_v1  ;;  %v1753_v7 = vrot.slane %v1746_v32, %v1608_v47  ;;  %v1758_v12 = vcombine.high %v1746_v32, %v1746_v32 }
 0x5ca   : > { %1633 = vrot.lane.b32.xlu0 %v1632_v37, %s2259_s20 }
 0x5cb   : > { %1725 = vrot.lane.b32.xlu1 %v1724_v2, %s2258_s30  ;;  %v1734_v8 = vcombine.high %v1724_v2, %v1724_v2  ;;  %v1765_v11 = vrot.slane %v1758_v12, %v1608_v47  ;;  %v1770_v14 = vcombine.high %v1753_v7, %v1753_v7  ;;  %s2172_s30 = sshll.u32 %s2265_s14, 4  ;;  %s2173_s30 = int_to_ptr.vmem [resolvable:$false] %s2172_s30 }
 0x5cc   : > { %p2175_p2 = scmp.lt.s32.totalorder %s1814_s7, %s2173_s30 }
 0x5cd   : > { %v1775_v15 = vcombine.high %v1765_v11, %v1765_v11 }
 0x5ce   : > { %1663 = vrot.lane.b32.xlu0 %v1662_v0, %s2260_s8 }
 0x5cf   : > { %1730 = vrot.lane.b32.xlu1 %v1729_v5, %s2259_s20  ;;  %s2174_s20 = scalar_lea.vmem %s2173_s30, 512 }
 0x5d0   : > { %p2176_p1 = scmp.lt.s32.totalorder %s2174_s20, %s2168_s25 }
 0x5d2   : > { %1641 = vrot.lane.b32.xlu0 %v1640_v48, %s2261_s26  ;;  %p2177_p0 = por %p2176_p1, %p2175_p2 }
 0x5d3   : > { %1754 = vrot.lane.b32.xlu1 %v1753_v7, %s2260_s8 }
 0x5d4   : > { %p2178_p3 = pnand %p2177_p0, %p2171_p10 }
 0x5d6   : > { %1678 = vrot.lane.b32.xlu0 %v1677_v41, %s2262_s10 }
 0x5d7   : > { %1735 = vrot.lane.b32.xlu1 %v1734_v8, %s2261_s26 }
 0x5da   : > { %1686 = vrot.lane.b32.xlu0 %v1685_v10, %s2263_s19 }
 0x5db   : > { %1766 = vrot.lane.b32.xlu1 %v1765_v11, %s2262_s10 }
 0x5de   : > { %1694 = vrot.lane.b32.xlu0 %v1693_v13, %s2264_s29 }
 0x5df   : > { %1771 = vrot.lane.b32.xlu1 %v1770_v14, %s2263_s19 }
 0x5e3   : > { %1776 = vrot.lane.b32.xlu1 %v1775_v15, %s2264_s29 }
 0x638   : > { %v1626_v17 = vpop.permute.xlu0 %1625 }
 0x639   : > { %1631 = vst.msk [vmem:[#allocation4] sm:$0x1] %vm1630_vm12, %v1626_v17 }
 0x63c   : > { %v1634_v18 = vpop.permute.xlu0 %1633 }
 0x63d   : > { %1639 = vst.msk [vmem:[#allocation4] sm:$0x1] %vm1638_vm15, %v1634_v18  ;;  %v1726_v63 = vpop.permute.xlu1 %1725 }
 0x63e   : > { %1728 = vst.msk [vmem:[#allocation4 + $0x1] sm:$0x1] %vm1630_vm12, %v1726_v63  ;;  %vm1697_vm12 = vcmp.ge.s32.totalorder %v342_v20, 112 }
 0x63f   : > { %vm1699_vm14 = vmand %vm1697_vm12, %vm1698_vm13 }
 0x640   : > { %v1664_v22 = vpop.permute.xlu0 %1663 }
 0x641   : > { %v1731_v52 = vpop.permute.xlu1 %1730 }
 0x642   : > { %1733 = vst.msk [vmem:[#allocation4 + $0x1] sm:$0x1] %vm1638_vm15, %v1731_v52 }
 0x644   : > { %v1642_v34 = vpop.permute.xlu0 %1641 }
 0x645   : > { %1647 = vst.msk [vmem:[#allocation4] sm:$0x1] %vm1646_vm4, %v1642_v34  ;;  %v1755_v36 = vpop.permute.xlu1 %1754 }
 0x646   : > { %1669 = vst.msk [vmem:[#allocation4] sm:$0x1] %vm1668_vm5, %v1664_v22 }
 0x648   : > { %v1679_v27 = vpop.permute.xlu0 %1678 }
 0x649   : > { %1684 = vst.msk [vmem:[#allocation4] sm:$0x1] %vm1683_vm8, %v1679_v27  ;;  %v1736_v40 = vpop.permute.xlu1 %1735 }
 0x64a   : > { %1738 = vst.msk [vmem:[#allocation4 + $0x1] sm:$0x1] %vm1646_vm4, %v1736_v40 }
 0x64b   : > { %1757 = vst.msk [vmem:[#allocation4 + $0x1] sm:$0x1] %vm1668_vm5, %v1755_v36 }
 0x64c   : > { %v1687_v9 = vpop.permute.xlu0 %1686 }
 0x64d   : > { %1692 = vst.msk [vmem:[#allocation4] sm:$0x1] %vm1691_vm11, %v1687_v9  ;;  %v1767_v28 = vpop.permute.xlu1 %1766 }
 0x64e   : > { %1769 = vst.msk [vmem:[#allocation4 + $0x1] sm:$0x1] %vm1683_vm8, %v1767_v28 }
 0x650   : > { %v1695_v43 = vpop.permute.xlu0 %1694 }
 0x651   : > { %1700 = vst.msk [vmem:[#allocation4] sm:$0x1] %vm1699_vm14, %v1695_v43  ;;  %v1772_v20 = vpop.permute.xlu1 %1771 }
 0x652   : > { %1774 = vst.msk [vmem:[#allocation4 + $0x1] sm:$0x1] %vm1691_vm11, %v1772_v20 }
 0x655   : > { %v1777_v60 = vpop.permute.xlu1 %1776 }
 0x656   : > { %1779 = vst.msk [vmem:[#allocation4 + $0x1] sm:$0x1] %vm1699_vm14, %v1777_v60 }
 0x65d   : > { %v1782_v44 = vld [vmem:[#allocation4] sm:$0x3] }
 0x65e   : > { %v1787_v3 = vrot.slane %v1782_v44, %v2469_v38  ;;  %v1791_v45 = vrot.slane %v1782_v44, %v1790_v25 }
 0x660   : > { %v1794_v46 = vmul.f32 %v1787_v3, %v2483_v57  ;;  %v1795_v26 = vmul.f32 %v1791_v45, %v2486_v58 }
 0x662   : > { %1796 = vst [vmem:[%s281_s11] sm:$0xff] %v1794_v46  ;;  %1797 = vst [vmem:[%s281_s11 + $0x8] sm:$0xff] %v1795_v26 }
 0x663   : > { %2181 = shalt.err (!%p2178_p3)
}
 0x664   : > { %s2182_s8 = scalar_lea.hbm %s3111_s5, 256  ;;  %s2186_s10 = scalar_lea.hbm %s3154_s6, 512 }
 0x665   : > { %p2183_p12 = scmp.ne.s32.totalorder %s3111_s5, %s2182_s8  ;;  %p2187_p4 = scmp.lt.s32.totalorder %s3111_s5, %s3154_s6 }
 0x666   : > { %p2188_p6 = scmp.lt.s32.totalorder %s2186_s10, %s2182_s8 }
 0x667   : > { %p2184_p5 = pnand %p2183_p12, %p3193_p11 }
 0x668   : > { %p2189_p8 = por %p2188_p6, %p2187_p4 }
 0x669   : > { %p2185_p7 = pneg %p2184_p5 }
 0x66b   : > { %p2190_p9 = pnand %p2189_p8, %p2185_p7 }
 0x66d   : > { %2193 = shalt.err (!%p2190_p9)
}
 0x66e   : > { %2020 = dma.vmem_to_hbm [thread:$0]  (%p3193_p11), %s1814_s7, 256, %s3111_s5, %s1799_s27  }
 0x66f PF: > { %s1825_s18 = sand.u32 1, %s2224_s21   ;;  %p3194_p13 = scmp.ne.s32.totalorder %s3161_s28, 0 }
 0x670   : > { %p3195_p10 = scmp.ge.s32.totalorder %s2236_s24, 2  ;;  %s1826_s11 = scalar_lea.sflag [#allocation7], %s1825_s18 }
 0x672   : > { %p2031_p2 = pnand %p3195_p10, %p3194_p13 }
 0x674   : > { %p2032_p1 = pneg %p2031_p2 }
 0x676   : > { %2219 = dma.done.wait (%p2032_p1), %s1826_s11, 256  }
 0x677   : > { %2221 = vsyncadd (%p2032_p1), %s1826_s11, 4294967040  ;;  %p20_p0 = scmp.ge.s32.totalorder %s2352_s9, 4   ;;  %s3196_s21 = smov %s2228_s22 }
 0x678   : > { %s3197_s22 = smov %s2232_s23  ;;  %s3198_s23 = smov %s2376_s16 }
 0x679   : > { %s3199_s24 = smov %s2352_s9  ;;  %22 = sbr.rel (!%p20_p0) target bundleno = 8 (0x8), region = 100 }
 0x67e   :  { %1831 = vsyncpa [#allocation6], 1 }
 0x67f   :  { %1833 = vsyncpa [#allocation6 + $0x1], 1 }
 0x680   :  { %1834 = vsyncpa [#allocation7], 1 }
 0x681   :  { %1836 = vsyncpa [#allocation7 + $0x1], 1 }
 0x682   :  { %1837 = vsyncpa [#allocation8], 1 }
 0x683   :  { %1839 = vsyncpa [#allocation8 + $0x1], 1 }

</bundles_post_ra>
